<compile_context>
chip_gen: v5e
topology: v5e:2x2
jax: 0.10.0
libtpu: 0.0.40
codegen_flags: <defaults>
</compile_context>

<pallas_src>
import jax
import jax.numpy as jnp
from jax.experimental import pallas as pl
from jax.experimental.pallas import tpu as pltpu

IMG_SHAPE = [28, 28, 1]
IMG_SIZE = 28 * 28          # 784
INNER_SIZE = 600
LATENT_DIM = 50
BN_EPS = 1e-5

# Padded (hardware-friendly) dims.
LATENT_PAD = 64             # 50  -> 64  (bf16 sublane multiple)
INNER_PAD = 640             # 600 -> 5 * 128 lanes
IMG_PAD = 896               # 784 -> 7 * 128 lanes


def _softplus(x):
    # PyTorch Softplus(beta=1, threshold=20), single select form.
    return jnp.where(x > 20.0, x, jnp.log1p(jnp.exp(jnp.minimum(x, 20.0))))


def _bn_train_folded(h, gamma, beta, inv_b):
    # Training-mode BatchNorm1d with one-pass stats, folded to scale/shift.
    s1 = jnp.sum(h, axis=0, keepdims=True)
    s2 = jnp.sum(h * h, axis=0, keepdims=True)
    mean = s1 * inv_b
    # Clamp: E[x^2] - E[x]^2 can go slightly negative under cancellation.
    var = jnp.maximum(s2 * inv_b - mean * mean, 0.0)   # biased variance
    scale = gamma * jax.lax.rsqrt(var + BN_EPS)
    shift = beta - mean * scale
    return h * scale + shift


def decoder_kernel(
    x_ref,          # (B, LATENT_PAD) f32, VMEM
    w1_ref,         # (LATENT_PAD, INNER_PAD) bf16, VMEM
    bn_ref,         # (6, IMG_PAD) f32, VMEM: rows = g1, b1, g2, b2, g3, b3
    w2_hbm,         # (INNER_PAD, INNER_PAD) bf16, HBM (manual DMA)
    w3_hbm,         # (INNER_PAD, IMG_PAD)   bf16, HBM (manual DMA)
    o_ref,          # (B, IMG_PAD) f32, VMEM
    w2_buf, w3_buf, sem,
):
    cp2 = pltpu.make_async_copy(w2_hbm, w2_buf, sem.at[0])
    cp3 = pltpu.make_async_copy(w3_hbm, w3_buf, sem.at[1])
    # Issue w2 alone first: it gets the full HBM bandwidth while Block-1 runs.
    cp2.start()

    inv_b = 1.0 / float(x_ref.shape[0])

    # Block 1: Linear(64pad -> 640pad) + BN + Softplus
    x = x_ref[...].astype(jnp.bfloat16)
    h = jnp.dot(x, w1_ref[...], preferred_element_type=jnp.float32)
    h = _softplus(
        _bn_train_folded(h, bn_ref[0:1, :INNER_PAD], bn_ref[1:2, :INNER_PAD],
                         inv_b))

    # Block 2: Linear(640pad -> 640pad) + BN + Softplus
    cp2.wait()
    cp3.start()   # w3 overlaps Block-2 compute, never contends with w2.
    h = jnp.dot(h.astype(jnp.bfloat16), w2_buf[...],
                preferred_element_type=jnp.float32)
    h = _softplus(
        _bn_train_folded(h, bn_ref[2:3, :INNER_PAD], bn_ref[3:4, :INNER_PAD],
                         inv_b))

    # Block 3: Linear(640pad -> 896pad) + BN + Sigmoid
    cp3.wait()
    h = jnp.dot(h.astype(jnp.bfloat16), w3_buf[...],
                preferred_element_type=jnp.float32)
    h = _bn_train_folded(h, bn_ref[4:5, :], bn_ref[5:6, :], inv_b)
    o_ref[...] = jax.nn.sigmoid(h).astype(o_ref.dtype)


def init_decoder_params(key):
    """PyTorch nn.Linear default weight init U(-k, k), k = 1/sqrt(fan_in);
    BatchNorm1d defaults gamma=1, beta=0.  Weights are stored (in, out),
    zero-padded to hardware-aligned shapes, and cast to bfloat16.

    Linear biases are intentionally omitted: a per-feature constant added
    before training-mode BatchNorm is exactly cancelled by the batch-mean
    subtraction, so the decoder output is unchanged.

    gamma/beta for all three BN layers are packed into one (6, IMG_PAD) f32
    array (rows: g1, b1, g2, b2, g3, b3); padded lanes keep gamma = 0 so the
    padded columns are exactly zeroed by the folded BN scale."""
    k1, k2, k3 = jax.random.split(key, 3)

    def linear_w(k, fan_in, fan_out, pad_in, pad_out):
        bound = 1.0 / (float(fan_in) ** 0.5)
        w = jax.random.uniform(k, (fan_in, fan_out), jnp.float32, -bound, bound)
        w = jnp.pad(w, ((0, pad_in - fan_in), (0, pad_out - fan_out)))
        return w.astype(jnp.bfloat16)

    w1 = linear_w(k1, LATENT_DIM, INNER_SIZE, LATENT_PAD, INNER_PAD)
    w2 = linear_w(k2, INNER_SIZE, INNER_SIZE, INNER_PAD, INNER_PAD)
    w3 = linear_w(k3, INNER_SIZE, IMG_SIZE, INNER_PAD, IMG_PAD)

    bn = jnp.zeros((6, IMG_PAD), jnp.float32)
    bn = bn.at[0, :INNER_SIZE].set(1.0)   # gamma1 (beta1 = row 1 = zeros)
    bn = bn.at[2, :INNER_SIZE].set(1.0)   # gamma2 (beta2 = row 3 = zeros)
    bn = bn.at[4, :IMG_SIZE].set(1.0)     # gamma3 (beta3 = row 5 = zeros)

    return (w1, bn, w2, w3)


def decoder_forward(x, params):
    """x: (B, LATENT_DIM) float32 -> (B, 1, 28, 28) float32 (NCHW)."""
    B = x.shape[0]
    w1, bn, w2, w3 = params

    # Zero-pad the latent so the first contraction dim is sublane-aligned.
    x_pad = jnp.pad(x, ((0, 0), (0, LATENT_PAD - LATENT_DIM)))

    vmem = pl.BlockSpec(memory_space=pltpu.MemorySpace.VMEM)
    hbm = pl.BlockSpec(memory_space=pl.ANY)       # manual DMA inside kernel

    mac = LATENT_PAD * INNER_PAD + INNER_PAD * INNER_PAD + INNER_PAD * IMG_PAD
    cost = pl.CostEstimate(
        flops=2 * B * mac,
        transcendentals=B * (INNER_PAD + INNER_PAD + IMG_PAD),
        bytes_accessed=2 * mac                 # bf16 weights
        + 4 * 6 * IMG_PAD                      # packed BN params
        + 4 * B * LATENT_PAD                   # x
        + 4 * B * IMG_PAD,                     # output
    )

    out = pl.pallas_call(
        decoder_kernel,
        out_shape=jax.ShapeDtypeStruct((B, IMG_PAD), jnp.float32),
        in_specs=[
            vmem,        # x
            vmem,        # w1
            vmem,        # packed gamma/beta
            hbm,         # w2 (HBM, manual DMA)
            hbm,         # w3 (HBM, manual DMA)
        ],
        out_specs=vmem,
        scratch_shapes=[
            pltpu.VMEM((INNER_PAD, INNER_PAD), jnp.bfloat16),   # w2 buffer
            pltpu.VMEM((INNER_PAD, IMG_PAD), jnp.bfloat16),     # w3 buffer
            pltpu.SemaphoreType.DMA((2,)),
        ],
        cost_estimate=cost,
    )(x_pad, w1, bn, w2, w3)

    # Drop lane padding, then view(B, 1, 28, 28) as in the PyTorch module.
    return out[:, :IMG_SIZE].reshape(B, IMG_SHAPE[2], IMG_SHAPE[0], IMG_SHAPE[1])


def decoder_reference(x, params):
    """Pure-JAX reference using the same (padded, bf16) parameters and the
    canonical two-pass BatchNorm formulation."""
    w1, bn, w2, w3 = params
    g1, be1 = bn[0:1, :INNER_PAD], bn[1:2, :INNER_PAD]
    g2, be2 = bn[2:3, :INNER_PAD], bn[3:4, :INNER_PAD]
    g3, be3 = bn[4:5, :], bn[5:6, :]

    def bnorm(h, g, b):
        mean = jnp.mean(h, axis=0, keepdims=True)
        var = jnp.mean((h - mean) ** 2, axis=0, keepdims=True)
        return g * (h - mean) * jax.lax.rsqrt(var + BN_EPS) + b

    x_pad = jnp.pad(x, ((0, 0), (0, LATENT_PAD - LATENT_DIM)))
    h = jnp.dot(x_pad.astype(jnp.bfloat16), w1, preferred_element_type=jnp.float32)
    h = _softplus(bnorm(h, g1, be1))
    h = jnp.dot(h.astype(jnp.bfloat16), w2, preferred_element_type=jnp.float32)
    h = _softplus(bnorm(h, g2, be2))
    h = jnp.dot(h.astype(jnp.bfloat16), w3, preferred_element_type=jnp.float32)
    h = jax.nn.sigmoid(bnorm(h, g3, be3))
    return h[:, :IMG_SIZE].reshape(x.shape[0], IMG_SHAPE[2], IMG_SHAPE[0],
                                   IMG_SHAPE[1])


if __name__ == "__main__":
    key = jax.random.PRNGKey(0)
    k_params, k_x = jax.random.split(key)

    params = init_decoder_params(k_params)
    B = 8
    x = jax.random.normal(k_x, (B, LATENT_DIM), dtype=jnp.float32)

    y = decoder_forward(x, params)
    y = jax.block_until_ready(y)

    assert y.shape == (B, 1, 28, 28), y.shape
    assert bool(jnp.all(jnp.isfinite(y)))
    assert bool(jnp.all((y >= 0.0) & (y <= 1.0)))  # sigmoid output range

    y_ref = jax.block_until_ready(decoder_reference(x, params))
    max_err = float(jnp.max(jnp.abs(y - y_ref)))
    assert max_err < 2e-3, f"kernel vs reference max abs err {max_err}"

    print("KERNEL_OK")
</pallas_src>

<mosaic_0001>
module attributes {stable_mosaic.version = 11 : i64} {
  func.func @decoder_kernel(%arg0: memref<8x64xf32, #tpu.memory_space<vmem>>, %arg1: memref<64x640xbf16, #tpu.memory_space<vmem>>, %arg2: memref<6x896xf32, #tpu.memory_space<vmem>>, %arg3: memref<640x640xbf16, #tpu.memory_space<any>>, %arg4: memref<640x896xbf16, #tpu.memory_space<any>>, %arg5: memref<8x896xf32, #tpu.memory_space<vmem>>, %arg6: memref<640x640xbf16, #tpu.memory_space<vmem>>, %arg7: memref<640x896xbf16, #tpu.memory_space<vmem>>, %arg8: memref<2x!tpu.dma_semaphore, #tpu.memory_space<semaphore_mem>>) attributes {dimension_semantics = [], scalar_prefetch = 0 : i64, scratch_operands = 3 : i64, tpu.core_type = #tpu.core_type<tc>} {
    %c0_i32 = arith.constant 0 : i32
    %0 = tpu.memref_slice %arg8[%c0_i32] : memref<2x!tpu.dma_semaphore, #tpu.memory_space<semaphore_mem>> -> memref<1x!tpu.dma_semaphore, #tpu.memory_space<semaphore_mem>>
    %1 = tpu.memref_squeeze %0 : memref<1x!tpu.dma_semaphore, #tpu.memory_space<semaphore_mem>> -> memref<!tpu.dma_semaphore, #tpu.memory_space<semaphore_mem>>
    tpu.enqueue_dma source(%arg3 : memref<640x640xbf16, #tpu.memory_space<any>>) target(%arg6 : memref<640x640xbf16, #tpu.memory_space<vmem>>) target_semaphore(%1 : memref<!tpu.dma_semaphore, #tpu.memory_space<semaphore_mem>>)
    %c0 = arith.constant 0 : index
    %c0_0 = arith.constant 0 : index
    %2 = vector.load %arg0[%c0, %c0_0] : memref<8x64xf32, #tpu.memory_space<vmem>>, vector<8x64xf32>
    %3 = arith.truncf %2 : vector<8x64xf32> to vector<8x64xbf16>
    %c0_1 = arith.constant 0 : index
    %c0_2 = arith.constant 0 : index
    %4 = vector.load %arg1[%c0_1, %c0_2] : memref<64x640xbf16, #tpu.memory_space<vmem>>, vector<64x640xbf16>
    %cst = arith.constant dense<0.000000e+00> : vector<8x640xf32>
    %5 = tpu.matmul %3, %4, %cst {dimension_numbers = #tpu.dot_dimension_numbers<[1], [0], [0], [1], [0, 0, 1, 1], [], []>} : vector<8x64xbf16>, vector<64x640xbf16>, vector<8x640xf32> -> vector<8x640xf32>
    %c0_3 = arith.constant 0 : index
    %c0_4 = arith.constant 0 : index
    %6 = vector.load %arg2[%c0_3, %c0_4] : memref<6x896xf32, #tpu.memory_space<vmem>>, vector<1x640xf32>
    %c1 = arith.constant 1 : index
    %c0_5 = arith.constant 0 : index
    %7 = vector.load %arg2[%c1, %c0_5] : memref<6x896xf32, #tpu.memory_space<vmem>>, vector<1x640xf32>
    %cst_6 = arith.constant dense<0.000000e+00> : vector<640xf32>
    %8 = vector.multi_reduction <add>, %5, %cst_6 [0] : vector<8x640xf32> to vector<640xf32>
    %9 = vector.shape_cast %8 : vector<640xf32> to vector<1x640xf32>
    %10 = arith.mulf %5, %5 : vector<8x640xf32>
    %cst_7 = arith.constant dense<0.000000e+00> : vector<640xf32>
    %11 = vector.multi_reduction <add>, %10, %cst_7 [0] : vector<8x640xf32> to vector<640xf32>
    %12 = vector.shape_cast %11 : vector<640xf32> to vector<1x640xf32>
    %cst_8 = arith.constant 1.250000e-01 : f32
    %13 = vector.broadcast %cst_8 : f32 to vector<1x640xf32>
    %14 = arith.mulf %9, %13 : vector<1x640xf32>
    %cst_9 = arith.constant 1.250000e-01 : f32
    %15 = vector.broadcast %cst_9 : f32 to vector<1x640xf32>
    %16 = arith.mulf %12, %15 : vector<1x640xf32>
    %17 = arith.mulf %14, %14 : vector<1x640xf32>
    %18 = arith.subf %16, %17 : vector<1x640xf32>
    %cst_10 = arith.constant 0.000000e+00 : f32
    %19 = vector.broadcast %cst_10 : f32 to vector<1x640xf32>
    %20 = arith.maximumf %18, %19 : vector<1x640xf32>
    %cst_11 = arith.constant 9.99999974E-6 : f32
    %21 = vector.broadcast %cst_11 : f32 to vector<1x640xf32>
    %22 = arith.addf %20, %21 : vector<1x640xf32>
    %23 = math.rsqrt %22 : vector<1x640xf32>
    %24 = arith.mulf %6, %23 : vector<1x640xf32>
    %25 = arith.mulf %14, %24 : vector<1x640xf32>
    %26 = arith.subf %7, %25 : vector<1x640xf32>
    %27 = vector.broadcast %24 : vector<1x640xf32> to vector<8x640xf32>
    %28 = arith.mulf %5, %27 : vector<8x640xf32>
    %29 = vector.broadcast %26 : vector<1x640xf32> to vector<8x640xf32>
    %30 = arith.addf %28, %29 : vector<8x640xf32>
    %cst_12 = arith.constant 2.000000e+01 : f32
    %31 = vector.broadcast %cst_12 : f32 to vector<8x640xf32>
    %32 = arith.cmpf ogt, %30, %31 : vector<8x640xf32>
    %cst_13 = arith.constant 2.000000e+01 : f32
    %33 = vector.broadcast %cst_13 : f32 to vector<8x640xf32>
    %34 = arith.minimumf %30, %33 : vector<8x640xf32>
    %35 = math.exp %34 : vector<8x640xf32>
    %36 = math.log1p %35 : vector<8x640xf32>
    %37 = arith.select %32, %30, %36 : vector<8x640xi1>, vector<8x640xf32>
    %c0_i32_14 = arith.constant 0 : i32
    %38 = tpu.memref_slice %arg8[%c0_i32_14] : memref<2x!tpu.dma_semaphore, #tpu.memory_space<semaphore_mem>> -> memref<1x!tpu.dma_semaphore, #tpu.memory_space<semaphore_mem>>
    %39 = tpu.memref_squeeze %38 : memref<1x!tpu.dma_semaphore, #tpu.memory_space<semaphore_mem>> -> memref<!tpu.dma_semaphore, #tpu.memory_space<semaphore_mem>>
    tpu.wait_dma2 semaphore(%39 : memref<!tpu.dma_semaphore, #tpu.memory_space<semaphore_mem>>) src(%arg3 : memref<640x640xbf16, #tpu.memory_space<any>>) dst(%arg6 : memref<640x640xbf16, #tpu.memory_space<vmem>>)
    %c1_i32 = arith.constant 1 : i32
    %40 = tpu.memref_slice %arg8[%c1_i32] : memref<2x!tpu.dma_semaphore, #tpu.memory_space<semaphore_mem>> -> memref<1x!tpu.dma_semaphore, #tpu.memory_space<semaphore_mem>>
    %41 = tpu.memref_squeeze %40 : memref<1x!tpu.dma_semaphore, #tpu.memory_space<semaphore_mem>> -> memref<!tpu.dma_semaphore, #tpu.memory_space<semaphore_mem>>
    tpu.enqueue_dma source(%arg4 : memref<640x896xbf16, #tpu.memory_space<any>>) target(%arg7 : memref<640x896xbf16, #tpu.memory_space<vmem>>) target_semaphore(%41 : memref<!tpu.dma_semaphore, #tpu.memory_space<semaphore_mem>>)
    %42 = arith.truncf %37 : vector<8x640xf32> to vector<8x640xbf16>
    %c0_15 = arith.constant 0 : index
    %c0_16 = arith.constant 0 : index
    %43 = vector.load %arg6[%c0_15, %c0_16] : memref<640x640xbf16, #tpu.memory_space<vmem>>, vector<640x640xbf16>
    %cst_17 = arith.constant dense<0.000000e+00> : vector<8x640xf32>
    %44 = tpu.matmul %42, %43, %cst_17 {dimension_numbers = #tpu.dot_dimension_numbers<[1], [0], [0], [1], [0, 0, 1, 1], [], []>} : vector<8x640xbf16>, vector<640x640xbf16>, vector<8x640xf32> -> vector<8x640xf32>
    %c2 = arith.constant 2 : index
    %c0_18 = arith.constant 0 : index
    %45 = vector.load %arg2[%c2, %c0_18] : memref<6x896xf32, #tpu.memory_space<vmem>>, vector<1x640xf32>
    %c3 = arith.constant 3 : index
    %c0_19 = arith.constant 0 : index
    %46 = vector.load %arg2[%c3, %c0_19] : memref<6x896xf32, #tpu.memory_space<vmem>>, vector<1x640xf32>
    %cst_20 = arith.constant dense<0.000000e+00> : vector<640xf32>
    %47 = vector.multi_reduction <add>, %44, %cst_20 [0] : vector<8x640xf32> to vector<640xf32>
    %48 = vector.shape_cast %47 : vector<640xf32> to vector<1x640xf32>
    %49 = arith.mulf %44, %44 : vector<8x640xf32>
    %cst_21 = arith.constant dense<0.000000e+00> : vector<640xf32>
    %50 = vector.multi_reduction <add>, %49, %cst_21 [0] : vector<8x640xf32> to vector<640xf32>
    %51 = vector.shape_cast %50 : vector<640xf32> to vector<1x640xf32>
    %cst_22 = arith.constant 1.250000e-01 : f32
    %52 = vector.broadcast %cst_22 : f32 to vector<1x640xf32>
    %53 = arith.mulf %48, %52 : vector<1x640xf32>
    %cst_23 = arith.constant 1.250000e-01 : f32
    %54 = vector.broadcast %cst_23 : f32 to vector<1x640xf32>
    %55 = arith.mulf %51, %54 : vector<1x640xf32>
    %56 = arith.mulf %53, %53 : vector<1x640xf32>
    %57 = arith.subf %55, %56 : vector<1x640xf32>
    %cst_24 = arith.constant 0.000000e+00 : f32
    %58 = vector.broadcast %cst_24 : f32 to vector<1x640xf32>
    %59 = arith.maximumf %57, %58 : vector<1x640xf32>
    %cst_25 = arith.constant 9.99999974E-6 : f32
    %60 = vector.broadcast %cst_25 : f32 to vector<1x640xf32>
    %61 = arith.addf %59, %60 : vector<1x640xf32>
    %62 = math.rsqrt %61 : vector<1x640xf32>
    %63 = arith.mulf %45, %62 : vector<1x640xf32>
    %64 = arith.mulf %53, %63 : vector<1x640xf32>
    %65 = arith.subf %46, %64 : vector<1x640xf32>
    %66 = vector.broadcast %63 : vector<1x640xf32> to vector<8x640xf32>
    %67 = arith.mulf %44, %66 : vector<8x640xf32>
    %68 = vector.broadcast %65 : vector<1x640xf32> to vector<8x640xf32>
    %69 = arith.addf %67, %68 : vector<8x640xf32>
    %cst_26 = arith.constant 2.000000e+01 : f32
    %70 = vector.broadcast %cst_26 : f32 to vector<8x640xf32>
    %71 = arith.cmpf ogt, %69, %70 : vector<8x640xf32>
    %cst_27 = arith.constant 2.000000e+01 : f32
    %72 = vector.broadcast %cst_27 : f32 to vector<8x640xf32>
    %73 = arith.minimumf %69, %72 : vector<8x640xf32>
    %74 = math.exp %73 : vector<8x640xf32>
    %75 = math.log1p %74 : vector<8x640xf32>
    %76 = arith.select %71, %69, %75 : vector<8x640xi1>, vector<8x640xf32>
    %c1_i32_28 = arith.constant 1 : i32
    %77 = tpu.memref_slice %arg8[%c1_i32_28] : memref<2x!tpu.dma_semaphore, #tpu.memory_space<semaphore_mem>> -> memref<1x!tpu.dma_semaphore, #tpu.memory_space<semaphore_mem>>
    %78 = tpu.memref_squeeze %77 : memref<1x!tpu.dma_semaphore, #tpu.memory_space<semaphore_mem>> -> memref<!tpu.dma_semaphore, #tpu.memory_space<semaphore_mem>>
    tpu.wait_dma2 semaphore(%78 : memref<!tpu.dma_semaphore, #tpu.memory_space<semaphore_mem>>) src(%arg4 : memref<640x896xbf16, #tpu.memory_space<any>>) dst(%arg7 : memref<640x896xbf16, #tpu.memory_space<vmem>>)
    %79 = arith.truncf %76 : vector<8x640xf32> to vector<8x640xbf16>
    %c0_29 = arith.constant 0 : index
    %c0_30 = arith.constant 0 : index
    %80 = vector.load %arg7[%c0_29, %c0_30] : memref<640x896xbf16, #tpu.memory_space<vmem>>, vector<640x896xbf16>
    %cst_31 = arith.constant dense<0.000000e+00> : vector<8x896xf32>
    %81 = tpu.matmul %79, %80, %cst_31 {dimension_numbers = #tpu.dot_dimension_numbers<[1], [0], [0], [1], [0, 0, 1, 1], [], []>} : vector<8x640xbf16>, vector<640x896xbf16>, vector<8x896xf32> -> vector<8x896xf32>
    %c4 = arith.constant 4 : index
    %c0_32 = arith.constant 0 : index
    %82 = vector.load %arg2[%c4, %c0_32] : memref<6x896xf32, #tpu.memory_space<vmem>>, vector<1x896xf32>
    %c5 = arith.constant 5 : index
    %c0_33 = arith.constant 0 : index
    %83 = vector.load %arg2[%c5, %c0_33] : memref<6x896xf32, #tpu.memory_space<vmem>>, vector<1x896xf32>
    %cst_34 = arith.constant dense<0.000000e+00> : vector<896xf32>
    %84 = vector.multi_reduction <add>, %81, %cst_34 [0] : vector<8x896xf32> to vector<896xf32>
    %85 = vector.shape_cast %84 : vector<896xf32> to vector<1x896xf32>
    %86 = arith.mulf %81, %81 : vector<8x896xf32>
    %cst_35 = arith.constant dense<0.000000e+00> : vector<896xf32>
    %87 = vector.multi_reduction <add>, %86, %cst_35 [0] : vector<8x896xf32> to vector<896xf32>
    %88 = vector.shape_cast %87 : vector<896xf32> to vector<1x896xf32>
    %cst_36 = arith.constant 1.250000e-01 : f32
    %89 = vector.broadcast %cst_36 : f32 to vector<1x896xf32>
    %90 = arith.mulf %85, %89 : vector<1x896xf32>
    %cst_37 = arith.constant 1.250000e-01 : f32
    %91 = vector.broadcast %cst_37 : f32 to vector<1x896xf32>
    %92 = arith.mulf %88, %91 : vector<1x896xf32>
    %93 = arith.mulf %90, %90 : vector<1x896xf32>
    %94 = arith.subf %92, %93 : vector<1x896xf32>
    %cst_38 = arith.constant 0.000000e+00 : f32
    %95 = vector.broadcast %cst_38 : f32 to vector<1x896xf32>
    %96 = arith.maximumf %94, %95 : vector<1x896xf32>
    %cst_39 = arith.constant 9.99999974E-6 : f32
    %97 = vector.broadcast %cst_39 : f32 to vector<1x896xf32>
    %98 = arith.addf %96, %97 : vector<1x896xf32>
    %99 = math.rsqrt %98 : vector<1x896xf32>
    %100 = arith.mulf %82, %99 : vector<1x896xf32>
    %101 = arith.mulf %90, %100 : vector<1x896xf32>
    %102 = arith.subf %83, %101 : vector<1x896xf32>
    %103 = vector.broadcast %100 : vector<1x896xf32> to vector<8x896xf32>
    %104 = arith.mulf %81, %103 : vector<8x896xf32>
    %105 = vector.broadcast %102 : vector<1x896xf32> to vector<8x896xf32>
    %106 = arith.addf %104, %105 : vector<8x896xf32>
    %107 = arith.negf %106 : vector<8x896xf32>
    %108 = math.exp %107 : vector<8x896xf32>
    %cst_40 = arith.constant 1.000000e+00 : f32
    %109 = vector.broadcast %cst_40 : f32 to vector<8x896xf32>
    %110 = arith.addf %109, %108 : vector<8x896xf32>
    %111 = arith.divf %109, %110 : vector<8x896xf32>
    %c0_41 = arith.constant 0 : index
    %c0_42 = arith.constant 0 : index
    %112 = vector.load %arg5[%c0_41, %c0_42] : memref<8x896xf32, #tpu.memory_space<vmem>>, vector<8x896xf32>
    tpu.vector_store %arg5[%c0_41, %c0_42], %111 {strides = array<i32>} : memref<8x896xf32, #tpu.memory_space<vmem>>, vector<8x896xf32>,
    return
  }
}

</mosaic_0001>

<bundles_post_ra>
// kernel: tpu_custom_call.1
= control target key start
LH: loop header
LB: loop body
LE: loop exit
PB: predicated region body
PF: predicated region fallthrough
CT: control target
= control target key end

     0   :  { %10 = vsyncpa [#allocation6], 0  ;;  %s8598_s0 = inlined_call_operand.hbm [shape: f32[8,64], index: 0, kind: input, shape index: {}]   ;;  %s8599_s1 = inlined_call_operand.hbm [shape: bf16[64,640], index: 1, kind: input, shape index: {}]   ;;  %s8600_s2 = inlined_call_operand.hbm [shape: f32[6,896], index: 2, kind: input, shape index: {}]   ;;  %s8601_s3 = inlined_call_operand.hbm [shape: bf16[640,640], index: 3, kind: input, shape index: {}]   ;;  %s8602_s4 = inlined_call_operand.hbm [shape: bf16[640,896], index: 4, kind: input, shape index: {}]   ;;  %s8603_s5 = inlined_call_operand.hbm [shape: f32[8,896], index: 5, kind: output, shape index: {}]  }
   0x1   :  { %11 = vsyncpa [#allocation9], 0  ;;  %s28_s20 = sshll.u32 %s8599_s1, 4  ;;  %s29_s20 = int_to_ptr.hbm [resolvable:$true] %s28_s20 }
   0x2   :  { %12 = vsyncpa [#allocation7], 0  ;;  %s7964_s21 = smov [#allocation8]   ;;  %s18_s25 = sshll.u32 %s8598_s0, 4  ;;  %s19_s25 = int_to_ptr.hbm [resolvable:$true] %s18_s25 }
   0x3   :  { %s30_s22 = sshll.u32 %s7964_s21, 4  ;;  %s7965_s26 = smov 320   ;;  %s31_s22 = int_to_ptr.vmem [resolvable:$true] %s30_s22 }
   0x4   :  { %s7966_s27 = smov 20   ;;  %s7967_s28 = smov [#allocation5]  }
   0x5   :  { %36 = dma.hbm_to_vmem [thread:$0]  %s29_s20, 2560, %s31_s22, [#allocation9], %s7965_s26, %s7965_s26, %s7966_s27  }
   0x6   :  { %s20_s29 = sshll.u32 %s7967_s28, 4  ;;  %s42_s7 = sshll.u32 %s8600_s2, 4  ;;  %s21_s29 = int_to_ptr.vmem [resolvable:$true] %s20_s29  ;;  %s43_s7 = int_to_ptr.hbm [resolvable:$true] %s42_s7 }
   0x7   :  { %23 = dma.hbm_to_vmem [thread:$0]  %s19_s25, 128, %s21_s29, [#allocation6]  }
   0x8   :  { %s7968_s1 = smov [#allocation10]  }
   0x9   :  { %s44_s8 = sshll.u32 %s7968_s1, 4  ;;  %s45_s8 = int_to_ptr.vmem [resolvable:$true] %s44_s8 }
   0xa   :  { %47 = dma.hbm_to_vmem [thread:$0]  %s43_s7, 896, %s45_s8, [#allocation9]  }
   0xb   :  { %7954 = dma.done.wait [#allocation6], 128  }
   0xc   :  { %7955 = vsyncadd [#allocation6], 4294967168 }
   0xd   :  { %7956 = dma.done.wait [#allocation9], 3456  }
   0xe   :  { %7957 = vsyncadd [#allocation9], 4294963840  ;;  %v5248_v0 = vld [vmem:[#allocation8 + $0x78] sm:$0xf]  ;;  %v7217_v1 = vld [vmem:[#allocation8 + $0x88] sm:$0xf0] }
   0xf   :  { %v7215_v2 = vld [vmem:[#allocation8 + $0x7c] sm:$0xf]  ;;  %v5249_v3 = vor.u32 %v7217_v1, %v5248_v0  ;;  %v5250_v4 = vld [vmem:[#allocation8 + $0x8c] sm:$0xf0]  ;;  %v5256_v5 = vld [vmem:[#allocation8 + $0x80] sm:$0xf] }
  0x10   :  { %v7218_v6 = vld [vmem:[#allocation8 + $0x90] sm:$0xf0]  ;;  %v5253_v7 = vor.u32 %v7215_v2, %v5250_v4  ;;  %v7216_v9 = vld [vmem:[#allocation8 + $0x84] sm:$0xf]  ;;  %v5258_v10 = vld [vmem:[#allocation8 + $0x94] sm:$0xf0] }
  0x11   :  { %v5257_v8 = vor.u32 %v7218_v6, %v5256_v5  ;;  %v5228_v11 = vld [vmem:[#allocation8 + $0x50] sm:$0xf]  ;;  %212 = vmatpush.bf16.msra.mxu0 %v5249_v3  ;;  %v5261_v12 = vor.u32 %v7216_v9, %v5258_v10  ;;  %v7212_v13 = vld [vmem:[#allocation8 + $0x60] sm:$0xf0]  ;;  %v7210_v14 = vld [vmem:[#allocation8 + $0x54] sm:$0xf] }
  0x12   :  { %v5230_v15 = vld [vmem:[#allocation8 + $0x64] sm:$0xf0]  ;;  %225 = vmatpush.bf16.msra.mxu1 %v5253_v7  ;;  %v5229_v16 = vor.u32 %v7212_v13, %v5228_v11  ;;  %v5236_v18 = vld [vmem:[#allocation8 + $0x58] sm:$0xf]  ;;  %v7213_v19 = vld [vmem:[#allocation8 + $0x68] sm:$0xf0] }
  0x13   :  { %238 = vmatpush.bf16.msra.mxu2 %v5257_v8  ;;  %v5233_v17 = vor.u32 %v7210_v14, %v5230_v15  ;;  %v7211_v20 = vld [vmem:[#allocation8 + $0x5c] sm:$0xf]  ;;  %251 = vmatpush.bf16.msra.mxu3 %v5261_v12  ;;  %v5237_v21 = vor.u32 %v7213_v19, %v5236_v18  ;;  %v5238_v22 = vld [vmem:[#allocation8 + $0x6c] sm:$0xf0]  ;;  %v5208_v23 = vld [vmem:[#allocation8 + $0x28] sm:$0xf] }
  0x14   :  { %v7207_v24 = vld [vmem:[#allocation8 + $0x38] sm:$0xf0]  ;;  %v5241_v25 = vor.u32 %v7211_v20, %v5238_v22  ;;  %v7205_v26 = vld [vmem:[#allocation8 + $0x2c] sm:$0xf]  ;;  %v5210_v27 = vld [vmem:[#allocation8 + $0x3c] sm:$0xf0] }
  0x15   :  { %v5216_v28 = vld [vmem:[#allocation8 + $0x30] sm:$0xf]  ;;  %213 = vmatpush.bf16.msra.mxu0 %v5229_v16  ;;  %v5209_v29 = vor.u32 %v7207_v24, %v5208_v23  ;;  %v7208_v30 = vld [vmem:[#allocation8 + $0x40] sm:$0xf0]  ;;  %v7206_v31 = vld [vmem:[#allocation8 + $0x34] sm:$0xf]  ;;  %v5213_v33 = vor.u32 %v7205_v26, %v5210_v27 }
  0x16   :  { %v5218_v32 = vld [vmem:[#allocation8 + $0x44] sm:$0xf0]  ;;  %226 = vmatpush.bf16.msra.mxu1 %v5233_v17  ;;  %v5217_v34 = vor.u32 %v7208_v30, %v5216_v28  ;;  %v5188_v35 = vld [vmem:[#allocation8] sm:$0xf]  ;;  %v7202_v36 = vld [vmem:[#allocation8 + $0x10] sm:$0xf0] }
  0x17   :  { %239 = vmatpush.bf16.msra.mxu2 %v5237_v21  ;;  %v7200_v37 = vld [vmem:[#allocation8 + $0x4] sm:$0xf]  ;;  %252 = vmatpush.bf16.msra.mxu3 %v5241_v25  ;;  %v5221_v38 = vor.u32 %v7206_v31, %v5218_v32  ;;  %v5190_v39 = vld [vmem:[#allocation8 + $0x14] sm:$0xf0]  ;;  %v5196_v40 = vld [vmem:[#allocation8 + $0x8] sm:$0xf]  ;;  %v5189_v44 = vor.u32 %v7202_v36, %v5188_v35 }
  0x18   :  { %v7203_v41 = vld [vmem:[#allocation8 + $0x18] sm:$0xf0]  ;;  %v7201_v42 = vld [vmem:[#allocation8 + $0xc] sm:$0xf]  ;;  %v5198_v43 = vld [vmem:[#allocation8 + $0x1c] sm:$0xf0]  ;;  %v5193_v48 = vor.u32 %v7200_v37, %v5190_v39 }
  0x19   :  { %214 = vmatpush.bf16.msra.mxu0 %v5209_v29  ;;  %v74_v45 = vld [vmem:[#allocation5] sm:$0xff]  ;;  %v5264_v46 = vld [vmem:[#allocation8 + $0x88] sm:$0xf]  ;;  %v5197_v49 = vor.u32 %v7203_v41, %v5196_v40  ;;  %v5201_v50 = vor.u32 %v7201_v42, %v5198_v43  ;;  %v5244_v53 = vld [vmem:[#allocation8 + $0x60] sm:$0xf]  ;;  %vm204_vm0 = vcmask 523264  }
  0x1a   :  { %v7219_v47 = vld [vmem:[#allocation8 + $0x98] sm:$0xf0]  ;;  %227 = vmatpush.bf16.msra.mxu1 %v5213_v33  ;;  %v75_v52 = vpack.c.bf16 %v74_v45, %v74_v45  ;;  %v7214_v54 = vld [vmem:[#allocation8 + $0x70] sm:$0xf0]  ;;  %v5224_v56 = vld [vmem:[#allocation8 + $0x38] sm:$0xf] }
  0x1b   :  { %240 = vmatpush.bf16.msra.mxu2 %v5217_v34  ;;  %253 = vmatpush.bf16.msra.mxu3 %v5221_v38  ;;  %v5265_v51 = vor.u32 %v7219_v47, %v5264_v46  ;;  %v5245_v55 = vor.u32 %v7214_v54, %v5244_v53  ;;  %v7209_v57 = vld [vmem:[#allocation8 + $0x48] sm:$0xf0]  ;;  %v5204_v59 = vld [vmem:[#allocation8 + $0x10] sm:$0xf]  ;;  %v7204_v60 = vld [vmem:[#allocation8 + $0x20] sm:$0xf0] }
  0x1c   :  { %v5225_v58 = vor.u32 %v7209_v57, %v5224_v56  ;;  %v5205_v61 = vor.u32 %v7204_v60, %v5204_v59  ;;  %s68_s9 = sshll.u32 %s8601_s3, 4  ;;  %s7969_s10 = smov [#allocation2]   ;;  %vm434_vm15 = vcmask 1040384   ;;  %s69_s9 = int_to_ptr.hbm [resolvable:$true] %s68_s9 }
  0x1d   :  { %215 = vmatpush.bf16.msra.mxu0 %v5189_v44  ;;  %s70_s11 = sshll.u32 %s7969_s10, 4  ;;  %s71_s11 = int_to_ptr.vmem [resolvable:$true] %s70_s11 }
  0x1e   :  { %228 = vmatpush.bf16.msra.mxu1 %v5193_v48  ;;  %73 = dma.hbm_to_vmem [thread:$0]  %s69_s9, 25600, %s71_s11, [#allocation4] }
  0x1f   :  { %241 = vmatpush.bf16.msra.mxu2 %v5197_v49  ;;  %254 = vmatpush.bf16.msra.mxu3 %v5201_v50 }
  0x20   :  { %5266 = vmatmul.msk.bf16.vlgmr.msra.gmra.mxu0 %vm204_vm0, %v75_v52 }
  0x21   :  { %264 = vmatpush.bf16.msrb.mxu0 %v5265_v51  ;;  %5267 = vmatmul.msk.bf16.vlgmr.msra.gmra.mxu1 %vm204_vm0, %v75_v52 }
  0x22   :  { %5268 = vmatmul.msk.bf16.vlgmr.msra.gmra.mxu2 %vm204_vm0, %v75_v52  ;;  %5269 = vmatmul.msk.bf16.vlgmr.msra.gmra.mxu3 %vm204_vm0, %v75_v52 }
  0x25   :  { %265 = vmatpush.bf16.msrb.mxu0 %v5245_v55 }
  0x29   :  { %266 = vmatpush.bf16.msrb.mxu0 %v5225_v58 }
  0x2d   :  { %267 = vmatpush.bf16.msrb.mxu0 %v5205_v61 }
  0x30   :  { %5270 = vmatmul.msk.bf16.vlgmr.msrb.gmra.mxu0 %vm204_vm0, %v75_v52 }
  0x9d   :  { %v8019_v62 = vpop.f32.mrf.mxu0 }
  0x9e   :  { %v280_v63 = vrot.slane %v8019_v62, 4  ;;  %v310_v0 = vmul.f32 %v8019_v62, %v8019_v62  ;;  %v8024_v1 = vpop.f32.mrf.mxu1 }
  0x9f   :  { %v286_v2 = vrot.slane %v8024_v1, 4  ;;  %v311_v3 = vmul.f32 %v8024_v1, %v8024_v1 }
  0xa0   :  { %v281_v4 = vadd.f32 %v280_v63, %v8019_v62  ;;  %v315_v5 = vrot.slane %v310_v0, 4 }
  0xa1   :  { %v287_v6 = vadd.f32 %v286_v2, %v8024_v1  ;;  %v321_v7 = vrot.slane %v311_v3, 4 }
  0xa2   :  { %v282_v8 = vrot.slane %v281_v4, 2  ;;  %v316_v9 = vadd.f32 %v315_v5, %v310_v0 }
  0xa3   :  { %v288_v10 = vrot.slane %v287_v6, 2  ;;  %v322_v11 = vadd.f32 %v321_v7, %v311_v3 }
  0xa4   :  { %v283_v12 = vadd.f32 %v282_v8, %v281_v4  ;;  %v317_v13 = vrot.slane %v316_v9, 2 }
  0xa5   :  { %v8031_v14 = vpop.f32.mrf.mxu2  ;;  %v289_v15 = vadd.f32 %v288_v10, %v287_v6  ;;  %v323_v16 = vrot.slane %v322_v11, 2  ;;  %v8036_v19 = vpop.f32.mrf.mxu3 }
  0xa6   :  { %v292_v17 = vrot.slane %v8031_v14, 4  ;;  %v312_v18 = vmul.f32 %v8031_v14, %v8031_v14  ;;  %v219_v20 = vpop.f32.mrf.mxu0  ;;  %v284_v21 = vrot.slane %v283_v12, 1  ;;  %v318_v22 = vadd.f32 %v317_v13, %v316_v9  ;;  %v232_v25 = vpop.f32.mrf.mxu1 }
  0xa7   :  { %v298_v23 = vrot.slane %v8036_v19, 4  ;;  %v313_v24 = vmul.f32 %v8036_v19, %v8036_v19  ;;  %v290_v26 = vrot.slane %v289_v15, 1  ;;  %v324_v27 = vadd.f32 %v323_v16, %v322_v11 }
  0xa8   :  { %v293_v28 = vadd.f32 %v292_v17, %v8031_v14  ;;  %v327_v29 = vrot.slane %v312_v18, 4  ;;  %v285_v30 = vadd.f32 %v284_v21, %v283_v12  ;;  %v319_v31 = vrot.slane %v318_v22, 1 }
  0xa9   :  { %v299_v32 = vadd.f32 %v298_v23, %v8036_v19  ;;  %v333_v33 = vrot.slane %v313_v24, 4  ;;  %v291_v34 = vadd.f32 %v290_v26, %v289_v15  ;;  %v325_v35 = vrot.slane %v324_v27, 1 }
  0xaa   :  { %v294_v36 = vrot.slane %v293_v28, 2  ;;  %v328_v37 = vadd.f32 %v327_v29, %v312_v18  ;;  %v320_v44 = vadd.f32 %v319_v31, %v318_v22  ;;  %v8045_v45 = vmul.f32 0.125, %v285_v30 }
  0xab   :  { %v300_v38 = vrot.slane %v299_v32, 2  ;;  %v334_v39 = vadd.f32 %v333_v33, %v313_v24  ;;  %v326_v40 = vadd.f32 %v325_v35, %v324_v27  ;;  %v8043_v41 = vmul.f32 0.125, %v291_v34 }
  0xac   :  { %v295_v42 = vadd.f32 %v294_v36, %v293_v28  ;;  %v329_v43 = vrot.slane %v328_v37, 2  ;;  %v350_v61 = vmul.f32 0.125, %v320_v44  ;;  %v355_v63 = vmul.f32 %v8045_v45, %v8045_v45 }
  0xad   :  { %v301_v46 = vadd.f32 %v300_v38, %v299_v32  ;;  %v335_v47 = vrot.slane %v334_v39, 2  ;;  %v245_v48 = vpop.f32.mrf.mxu2  ;;  %v351_v49 = vmul.f32 0.125, %v326_v40  ;;  %v356_v50 = vmul.f32 %v8043_v41, %v8043_v41  ;;  %v258_v53 = vpop.f32.mrf.mxu3 }
  0xae   :  { %v296_v51 = vrot.slane %v295_v42, 1  ;;  %v330_v52 = vadd.f32 %v329_v43, %v328_v37  ;;  %v8049_v54 = vpop.f32.mrf.mxu0  ;;  %v360_v13 = vsub.f32 %v350_v61, %v355_v63 }
  0xaf   :  { %v302_v55 = vrot.slane %v301_v46, 1  ;;  %v336_v56 = vadd.f32 %v335_v47, %v334_v39  ;;  %v304_v57 = vrot.slane %v8049_v54, 4  ;;  %v361_v58 = vsub.f32 %v351_v49, %v356_v50 }
  0xb0   :  { %v297_v59 = vadd.f32 %v296_v51, %v295_v42  ;;  %v331_v60 = vrot.slane %v330_v52, 1  ;;  %v314_v9 = vmul.f32 %v8049_v54, %v8049_v54  ;;  %v365_v26 = vmax.f32 %v360_v13, 0.0 }
  0xb1   :  { %v303_v0 = vadd.f32 %v302_v55, %v301_v46  ;;  %v337_v2 = vrot.slane %v336_v56, 1  ;;  %v305_v5 = vadd.f32 %v304_v57, %v8049_v54  ;;  %v366_v6 = vmax.f32 %v361_v58, 0.0 }
  0xb2   :  { %v332_v3 = vadd.f32 %v331_v60, %v330_v52  ;;  %v8054_v4 = vmul.f32 0.125, %v297_v59  ;;  %v339_v23 = vrot.slane %v314_v9, 4  ;;  %v8065_v33 = vadd.f32 1e-05, %v365_v26 }
  0xb3   :  { %v338_v7 = vadd.f32 %v337_v2, %v336_v56  ;;  %v8057_v8 = vmul.f32 0.125, %v303_v0  ;;  %v306_v12 = vrot.slane %v305_v5, 2  ;;  %v371_v21 = vadd.f32 1e-05, %v366_v6 }
  0xb4   :  { %v352_v10 = vmul.f32 0.125, %v332_v3  ;;  %v357_v11 = vmul.f32 %v8054_v4, %v8054_v4  ;;  %v340_v28 = vadd.f32 %v339_v23, %v314_v9  ;;  %vm381_vm13 = vweird.f32 %v8065_v33 }
  0xb5   :  { %v353_v15 = vmul.f32 0.125, %v338_v7  ;;  %v358_v16 = vmul.f32 %v8057_v8, %v8057_v8  ;;  %v307_v18 = vadd.f32 %v306_v12, %v305_v5  ;;  %7708 = vrsqrt.f32 %v371_v21 }
  0xb6   :  { %v362_v17 = vsub.f32 %v352_v10, %v357_v11  ;;  %v271_v20 = vpop.f32.mrf.mxu0  ;;  %v341_v32 = vrot.slane %v340_v28, 2  ;;  %vm391_vm1 = vweird.f32 %v371_v21 }
  0xb7   :  { %v363_v22 = vsub.f32 %v353_v15, %v358_v16  ;;  %v308_v25 = vrot.slane %v307_v18, 1 }
  0xb8   :  { %v367_v24 = vmax.f32 %v362_v17, 0.0  ;;  %v342_v34 = vadd.f32 %v341_v32, %v340_v28 }
  0xb9   :  { %v368_v27 = vmax.f32 %v363_v22, 0.0  ;;  %v309_v30 = vadd.f32 %v308_v25, %v307_v18  ;;  %v274_v22 = vld [vmem:[#allocation10] ss:$8 sm:$0x10] }
  0xba   :  { %v372_v29 = vadd.f32 1e-05, %v367_v24  ;;  %v343_v36 = vrot.slane %v342_v34, 1 }
  0xbb   :  { %v373_v31 = vadd.f32 1e-05, %v368_v27  ;;  %v8067_v35 = vmul.f32 0.125, %v309_v30  ;;  %v7709_v37 = vpop.eup %7708 }
  0xbc   :  { %7710 = vrsqrt.f32 %v372_v29  ;;  %v344_v39 = vadd.f32 %v343_v36, %v342_v34  ;;  %v386_v43 = vmul.f32 %v7709_v37, %v371_v21  ;;  %vm392_vm2 = vweird.f32 %v7709_v37  ;;  %v273_v21 = vld [vmem:[#allocation10] ss:$8 sm:$0xf] }
  0xbd   :  { %7712 = vrsqrt.f32 %v373_v31  ;;  %v359_v40 = vmul.f32 %v8067_v35, %v8067_v35  ;;  %vm8073_vm4 = vmor %vm391_vm1, %vm392_vm2  ;;  %vm401_vm5 = vweird.f32 %v372_v29  ;;  %vm411_vm8 = vweird.f32 %v373_v31 }
  0xbe   :  { %7714 = vrsqrt.f32 %v8065_v33  ;;  %v354_v44 = vmul.f32 0.125, %v344_v39  ;;  %v387_v50 = vmul.f32 %v7709_v37, %v386_v43  ;;  %v275_v27 = vor.u32 %v274_v22, %v273_v21 }
  0xbf   :  { %vm436_vm1 = vcmask 1041408   ;;  %vm438_vm2 = vcmask 1043459  }
  0xc0   :  { %v364_v47 = vsub.f32 %v354_v44, %v359_v40  ;;  %v388_v57 = vmul.f32 0.5, %v387_v50  ;;  %v277_v44 = vld [vmem:[#allocation10 + $0x1] ss:$8 sm:$0xf] }
  0xc2   :  { %v7711_v38 = vpop.eup %7710  ;;  %v369_v51 = vmax.f32 %v364_v47, 0.0  ;;  %v389_v61 = vsub.f32 1.5, %v388_v57 }
  0xc3   :  { %v7713_v42 = vpop.eup %7712  ;;  %v396_v46 = vmul.f32 %v7711_v38, %v372_v29  ;;  %vm402_vm3 = vweird.f32 %v7711_v38 }
  0xc4   :  { %v7715_v48 = vpop.eup %7714  ;;  %v406_v49 = vmul.f32 %v7713_v42, %v373_v31  ;;  %v374_v55 = vadd.f32 1e-05, %v369_v51  ;;  %v390_v6 = vmul.f32 %v7709_v37, %v389_v61  ;;  %vm412_vm6 = vweird.f32 %v7713_v42  ;;  %vm403_vm7 = vmor %vm401_vm5, %vm402_vm3 }
  0xc5   :  { %v397_v52 = vmul.f32 %v7711_v38, %v396_v46  ;;  %v376_v53 = vmul.f32 %v7715_v48, %v8065_v33  ;;  %vm382_vm10 = vweird.f32 %v7715_v48  ;;  %vm8079_vm11 = vmor %vm411_vm8, %vm412_vm6  ;;  %vm440_vm3 = vcmask 1042432   ;;  %v278_v46 = vld [vmem:[#allocation10 + $0x1] ss:$8 sm:$0x10] }
  0xc6   :  { %v407_v56 = vmul.f32 %v7713_v42, %v406_v49  ;;  %7716 = vrsqrt.f32 %v374_v55  ;;  %v394_v15 = vsel %vm8073_vm4, %v7709_v37, %v390_v6  ;;  %vm421_vm12 = vweird.f32 %v374_v55  ;;  %vm383_vm0 = vmor %vm381_vm13, %vm382_vm10 }
  0xc7   :  { %v398_v58 = vmul.f32 0.5, %v397_v52  ;;  %v377_v59 = vmul.f32 %v7715_v48, %v376_v53  ;;  %v430_v23 = vrot.slane %v394_v15, 7 }
  0xc8   :  { %v408_v60 = vmul.f32 0.5, %v407_v56  ;;  %v279_v56 = vor.u32 %v278_v46, %v277_v44 }
  0xc9   :  { %v399_v63 = vsub.f32 1.5, %v398_v58  ;;  %v378_v2 = vmul.f32 0.5, %v377_v59 }
  0xca   :  { %v409_v3 = vsub.f32 1.5, %v408_v60 }
  0xcb   :  { %v400_v7 = vmul.f32 %v7711_v38, %v399_v63  ;;  %v379_v10 = vsub.f32 1.5, %v378_v2 }
  0xcc   :  { %v7717_v0 = vpop.eup %7716  ;;  %v410_v12 = vmul.f32 %v7713_v42, %v409_v3 }
  0xcd   :  { %v416_v5 = vmul.f32 %v7717_v0, %v374_v55  ;;  %v404_v16 = vsel %vm403_vm7, %v7711_v38, %v400_v7  ;;  %vm422_vm9 = vweird.f32 %v7717_v0  ;;  %v380_v18 = vmul.f32 %v7715_v48, %v379_v10 }
  0xce   :  { %v414_v24 = vsel %vm8079_vm11, %v7713_v42, %v410_v12  ;;  %v431_v26 = vrot.slane %v404_v16, 6  ;;  %vm423_vm14 = vmor %vm421_vm12, %vm422_vm9 }
  0xcf   :  { %v417_v9 = vmul.f32 %v7717_v0, %v416_v5  ;;  %v384_v29 = vsel %vm383_vm0, %v7715_v48, %v380_v18  ;;  %v432_v30 = vrot.slane %v414_v24, 5 }
  0xd0   :  { %v435_v32 = vsel %vm434_vm15, %v384_v29, %v430_v23 }
  0xd1   :  { %v418_v13 = vmul.f32 0.5, %v417_v9  ;;  %v437_v34 = vsel %vm436_vm1, %v435_v32, %v431_v26 }
  0xd3   :  { %v419_v17 = vsub.f32 1.5, %v418_v13 }
  0xd5   :  { %v420_v25 = vmul.f32 %v7717_v0, %v419_v17 }
  0xd7   :  { %v424_v28 = vsel %vm423_vm14, %v7717_v0, %v420_v25 }
  0xd8   :  { %v433_v31 = vrot.slane %v424_v28, 4 }
  0xda   :  { %v439_v36 = vsel %vm438_vm2, %v432_v30, %v433_v31 }
  0xdb   :  { %v441_v33 = vsel %vm440_vm3, %v437_v34, %v439_v36 }
  0xdc   :  { %v443_v37 = vmul.f32 %v441_v33, %v275_v27 }
  0xde   :  { %v445_v38 = vperm.slane %v443_v37, 0  ;;  %v446_v39 = vperm.slane %v443_v37, 1  ;;  %v447_v40 = vperm.slane %v443_v37, 2  ;;  %v448_v42 = vperm.slane %v443_v37, 3 }
  0xdf   :  { %v449_v43 = vperm.slane %v443_v37, 4 }
  0xe0   :  { %v456_v47 = vmul.f32 %v446_v39, %v8043_v41  ;;  %v457_v48 = vmul.f32 %v447_v40, %v8054_v4  ;;  %v458_v49 = vmul.f32 %v448_v42, %v8057_v8  ;;  %v455_v51 = vmul.f32 %v445_v38, %v8045_v45 }
  0xe1   :  { %v459_v50 = vmul.f32 %v449_v43, %v8067_v35  ;;  %v475_v8 = vmul.f32 %v445_v38, %v8019_v62  ;;  %v476_v35 = vmul.f32 %v446_v39, %v8024_v1  ;;  %v477_v45 = vmul.f32 %v447_v40, %v8031_v14 }
  0xe2   :  { %v465_v52 = vrot.slane %v456_v47, 7  ;;  %v466_v53 = vrot.slane %v457_v48, 6  ;;  %v467_v55 = vrot.slane %v458_v49, 5  ;;  %v478_v61 = vmul.f32 %v448_v42, %v8036_v19 }
  0xe3   :  { %v468_v57 = vrot.slane %v459_v50, 4  ;;  %v479_v5 = vmul.f32 %v449_v43, %v8049_v54 }
  0xe4   :  { %v469_v58 = vsel %vm434_vm15, %v455_v51, %v465_v52 }
  0xe5   :  { %v470_v59 = vsel %vm436_vm1, %v469_v58, %v466_v53  ;;  %v471_v60 = vsel %vm438_vm2, %v467_v55, %v468_v57 }
  0xe6   :  { %v472_v41 = vsel %vm440_vm3, %v470_v59, %v471_v60 }
  0xe7   :  { %v474_v4 = vsub.f32 %v279_v56, %v472_v41 }
  0xe9   :  { %v481_v63 = vperm.slane %v474_v4, 0  ;;  %v482_v0 = vperm.slane %v474_v4, 1  ;;  %v483_v2 = vperm.slane %v474_v4, 2  ;;  %v484_v3 = vperm.slane %v474_v4, 3 }
  0xea   :  { %v485_v6 = vperm.slane %v474_v4, 4 }
  0xeb   :  { %v8104_v7 = vadd.f32 %v481_v63, %v475_v8  ;;  %v8106_v9 = vadd.f32 %v482_v0, %v476_v35  ;;  %v8108_v10 = vadd.f32 %v483_v2, %v477_v45  ;;  %v8110_v62 = vadd.f32 %v484_v3, %v478_v61 }
  0xec   :  { %v8112_v1 = vadd.f32 %v485_v6, %v479_v5 }
  0xed   :  { %v501_v14 = vmin.f32 %v8104_v7, 20.0  ;;  %v502_v19 = vmin.f32 %v8106_v9, 20.0  ;;  %v503_v11 = vmin.f32 %v8108_v10, 20.0  ;;  %v504_v12 = vmin.f32 %v8110_v62, 20.0 }
  0xee   :  { %v505_v54 = vmin.f32 %v8112_v1, 20.0  ;;  %vm496_vm4 = vcmp.gt.f32.partialorder %v8104_v7, 20.0  ;;  %vm497_vm5 = vcmp.gt.f32.partialorder %v8106_v9, 20.0  ;;  %vm498_vm6 = vcmp.gt.f32.partialorder %v8108_v10, 20.0 }
  0xef   :  { %v506_v13 = vmul.f32 1.442695, %v501_v14  ;;  %v508_v15 = vmul.f32 1.442695, %v502_v19  ;;  %v510_v16 = vmul.f32 1.442695, %v503_v11 }
  0xf0   :  { %v512_v17 = vmul.f32 1.442695, %v504_v12  ;;  %v514_v18 = vmul.f32 1.442695, %v505_v54  ;;  %vm499_vm11 = vcmp.gt.f32.partialorder %v8110_v62, 20.0  ;;  %vm500_vm13 = vcmp.gt.f32.partialorder %v8112_v1, 20.0 }
  0xf1   :  { %7718 = vpow2.f32 %v506_v13 }
  0xf2   :  { %7720 = vpow2.f32 %v508_v15 }
  0xf3   :  { %7722 = vpow2.f32 %v510_v16 }
  0xf4   :  { %7724 = vpow2.f32 %v512_v17 }
  0xf5   :  { %7726 = vpow2.f32 %v514_v18 }
  0xf7   :  { %v7719_v20 = vpop.eup %7718 }
  0xf8   :  { %v7721_v21 = vpop.eup %7720  ;;  %v516_v22 = vadd.f32 1.0, %v7719_v20  ;;  %v519_v24 = vmul.f32 -0.5, %v7719_v20  ;;  %v522_v34 = vand.u32 2147483647, %v7719_v20 }
  0xf9   :  { %v7723_v23 = vpop.eup %7722  ;;  %v525_v25 = vadd.f32 1.0, %v7721_v21  ;;  %v528_v27 = vmul.f32 -0.5, %v7721_v21  ;;  %v531_v37 = vand.u32 2147483647, %v7721_v21 }
  0xfa   :  { %v7725_v26 = vpop.eup %7724  ;;  %7728 = vlog2.f32 %v516_v22  ;;  %v534_v28 = vadd.f32 1.0, %v7723_v23  ;;  %v537_v30 = vmul.f32 -0.5, %v7723_v23  ;;  %v520_v32 = vadd.f32 1.0, %v519_v24 }
  0xfb   :  { %v7727_v29 = vpop.eup %7726  ;;  %7730 = vlog2.f32 %v525_v25  ;;  %v543_v31 = vadd.f32 1.0, %v7725_v26  ;;  %v546_v36 = vmul.f32 -0.5, %v7725_v26  ;;  %v529_v33 = vadd.f32 1.0, %v528_v27 }
  0xfc   :  { %7732 = vlog2.f32 %v534_v28  ;;  %v552_v38 = vadd.f32 1.0, %v7727_v29  ;;  %v538_v39 = vadd.f32 1.0, %v537_v30  ;;  %v555_v40 = vmul.f32 -0.5, %v7727_v29 }
  0xfd   :  { %7734 = vlog2.f32 %v543_v31  ;;  %v540_v43 = vand.u32 2147483647, %v7723_v23  ;;  %v521_v47 = vmul.f32 %v7719_v20, %v520_v32  ;;  %vm8122_vm7 = vcmp.lt.f32.partialorder %v522_v34, 0.0004427343 }
  0xfe   :  { %7736 = vlog2.f32 %v552_v38  ;;  %v547_v49 = vadd.f32 1.0, %v546_v36  ;;  %v530_v52 = vmul.f32 %v7721_v21, %v529_v33  ;;  %vm532_vm8 = vcmp.lt.f32.partialorder %v531_v37, 0.0004427343 }
  0xff   :  { %v549_v53 = vand.u32 2147483647, %v7725_v26  ;;  %v539_v57 = vmul.f32 %v7723_v23, %v538_v39  ;;  %v556_v58 = vadd.f32 1.0, %v555_v40  ;;  %vm541_vm9 = vcmp.lt.f32.partialorder %v540_v43, 0.0004427343 }
 0x100   :  { %v7729_v42 = vpop.eup %7728  ;;  %v558_v41 = vand.u32 2147483647, %v7727_v29  ;;  %v548_v45 = vmul.f32 %v7725_v26, %v547_v49 }
 0x101   :  { %v7731_v44 = vpop.eup %7730  ;;  %v518_v46 = vmul.f32 0.6931472, %v7729_v42  ;;  %vm550_vm10 = vcmp.lt.f32.partialorder %v549_v53, 0.0004427343  ;;  %v557_v5 = vmul.f32 %v7727_v29, %v556_v58 }
 0x102   :  { %v7733_v50 = vpop.eup %7732  ;;  %v527_v51 = vmul.f32 0.6931472, %v7731_v44  ;;  %vm559_vm12 = vcmp.lt.f32.partialorder %v558_v41, 0.0004427343 }
 0x103   :  { %v524_v55 = vsel %vm8122_vm7, %v521_v47, %v518_v46  ;;  %v536_v56 = vmul.f32 0.6931472, %v7733_v50  ;;  %v7735_v59 = vpop.eup %7734 }
 0x104   :  { %v533_v60 = vsel %vm532_vm8, %v530_v52, %v527_v51  ;;  %v8131_v4 = vsel %vm496_vm4, %v8104_v7, %v524_v55  ;;  %v545_v35 = vmul.f32 0.6931472, %v7735_v59  ;;  %v7737_v63 = vpop.eup %7736 }
 0x105   :  { %v542_v8 = vsel %vm541_vm9, %v539_v57, %v536_v56  ;;  %v8136_v61 = vsel %vm497_vm5, %v8106_v9, %v533_v60  ;;  %v554_v3 = vmul.f32 0.6931472, %v7737_v63 }
 0x106   :  { %v8141_v0 = vsel %vm498_vm6, %v8108_v10, %v542_v8  ;;  %v551_v2 = vsel %vm550_vm10, %v548_v45, %v545_v35 }
 0x107   :  { %v8145_v6 = vsel %vm499_vm11, %v8110_v62, %v551_v2  ;;  %v560_v7 = vsel %vm559_vm12, %v557_v5, %v554_v3 }
 0x108   :  { %v8149_v9 = vsel %vm500_vm13, %v8112_v1, %v560_v7 }
 0x109   :  { %7958 = dma.done.wait [#allocation4], 25600 }
 0x10a   :  { %7959 = vsyncadd [#allocation4], 4294941696  ;;  %v5413_v14 = vld [vmem:[#allocation2 + $0x118] sm:$0xf]  ;;  %v7257_v10 = vld [vmem:[#allocation2 + $0x128] sm:$0xf0] }
 0x10b   :  { %v5573_v19 = vld [vmem:[#allocation2 + $0x258] sm:$0xf]  ;;  %v5414_v11 = vor.u32 %v7257_v10, %v5413_v14  ;;  %v7297_v12 = vld [vmem:[#allocation2 + $0x268] sm:$0xf0]  ;;  %v5393_v17 = vld [vmem:[#allocation2 + $0xf0] sm:$0xf] }
 0x10c   :  { %v5733_v54 = vld [vmem:[#allocation2 + $0x398] sm:$0xf]  ;;  %v7337_v13 = vld [vmem:[#allocation2 + $0x3a8] sm:$0xf0]  ;;  %v5574_v15 = vor.u32 %v7297_v12, %v5573_v19  ;;  %v7252_v62 = vld [vmem:[#allocation2 + $0x100] sm:$0xf0] }
 0x10d   :  { %v5734_v16 = vor.u32 %v7337_v13, %v5733_v54  ;;  %v5553_v18 = vld [vmem:[#allocation2 + $0x230] sm:$0xf]  ;;  %1869 = vmatpush.bf16.msrb.mxu1 %v5414_v11  ;;  %v5394_v20 = vor.u32 %v7252_v62, %v5393_v17  ;;  %v7292_v21 = vld [vmem:[#allocation2 + $0x240] sm:$0xf0]  ;;  %v5373_v25 = vld [vmem:[#allocation2 + $0xc8] sm:$0xf] }
 0x10e   :  { %v5713_v22 = vld [vmem:[#allocation2 + $0x370] sm:$0xf]  ;;  %v7332_v1 = vld [vmem:[#allocation2 + $0x380] sm:$0xf0]  ;;  %1882 = vmatpush.bf16.msrb.mxu2 %v5574_v15  ;;  %v5554_v23 = vor.u32 %v7292_v21, %v5553_v18  ;;  %v7247_v26 = vld [vmem:[#allocation2 + $0xd8] sm:$0xf0] }
 0x10f   :  { %1895 = vmatpush.bf16.msrb.mxu3 %v5734_v16  ;;  %v5714_v24 = vor.u32 %v7332_v1, %v5713_v22  ;;  %v5533_v27 = vld [vmem:[#allocation2 + $0x208] sm:$0xf]  ;;  %v7287_v28 = vld [vmem:[#allocation2 + $0x218] sm:$0xf0]  ;;  %v5893_v31 = vld [vmem:[#allocation2 + $0x4d8] sm:$0xf]  ;;  %v5374_v34 = vor.u32 %v7247_v26, %v5373_v25 }
 0x110   :  { %v5693_v29 = vld [vmem:[#allocation2 + $0x348] sm:$0xf]  ;;  %v7327_v30 = vld [vmem:[#allocation2 + $0x358] sm:$0xf0]  ;;  %v7377_v32 = vld [vmem:[#allocation2 + $0x4e8] sm:$0xf0]  ;;  %v5534_v38 = vor.u32 %v7287_v28, %v5533_v27 }
 0x111   :  { %1870 = vmatpush.bf16.msrb.mxu1 %v5394_v20  ;;  %v5894_v36 = vor.u32 %v7377_v32, %v5893_v31  ;;  %v5353_v33 = vld [vmem:[#allocation2 + $0xa0] sm:$0xf]  ;;  %v7242_v37 = vld [vmem:[#allocation2 + $0xb0] sm:$0xf0]  ;;  %v5694_v39 = vor.u32 %v7327_v30, %v5693_v29  ;;  %v5873_v43 = vld [vmem:[#allocation2 + $0x4b0] sm:$0xf] }
 0x112   :  { %1883 = vmatpush.bf16.msrb.mxu2 %v5554_v23  ;;  %v5513_v40 = vld [vmem:[#allocation2 + $0x1e0] sm:$0xf]  ;;  %v7282_v42 = vld [vmem:[#allocation2 + $0x1f0] sm:$0xf0]  ;;  %v7372_v47 = vld [vmem:[#allocation2 + $0x4c0] sm:$0xf0]  ;;  %v5354_v49 = vor.u32 %v7242_v37, %v5353_v33 }
 0x113   :  { %1896 = vmatpush.bf16.msrb.mxu3 %v5714_v24  ;;  %1908 = vmatpush.bf16.msra.mxu0 %v5894_v36  ;;  %v5673_v44 = vld [vmem:[#allocation2 + $0x320] sm:$0xf]  ;;  %v7322_v46 = vld [vmem:[#allocation2 + $0x330] sm:$0xf0]  ;;  %v5874_v48 = vor.u32 %v7372_v47, %v5873_v43  ;;  %v5853_v50 = vld [vmem:[#allocation2 + $0x488] sm:$0xf]  ;;  %v5514_v52 = vor.u32 %v7282_v42, %v5513_v40 }
 0x114   :  { %v7367_v51 = vld [vmem:[#allocation2 + $0x498] sm:$0xf0]  ;;  %v5674_v53 = vor.u32 %v7322_v46, %v5673_v44  ;;  %v5333_v55 = vld [vmem:[#allocation2 + $0x78] sm:$0xf]  ;;  %v7237_v56 = vld [vmem:[#allocation2 + $0x88] sm:$0xf0] }
 0x115   :  { %1871 = vmatpush.bf16.msrb.mxu1 %v5374_v34  ;;  %v5493_v57 = vld [vmem:[#allocation2 + $0x1b8] sm:$0xf]  ;;  %v7277_v58 = vld [vmem:[#allocation2 + $0x1c8] sm:$0xf0]  ;;  %v5854_v41 = vor.u32 %v7367_v51, %v5853_v50  ;;  %v5833_v8 = vld [vmem:[#allocation2 + $0x460] sm:$0xf]  ;;  %v5334_v45 = vor.u32 %v7237_v56, %v5333_v55 }
 0x116   :  { %1884 = vmatpush.bf16.msrb.mxu2 %v5534_v38  ;;  %v5653_v59 = vld [vmem:[#allocation2 + $0x2f8] sm:$0xf]  ;;  %v7317_v60 = vld [vmem:[#allocation2 + $0x308] sm:$0xf0]  ;;  %v7362_v35 = vld [vmem:[#allocation2 + $0x470] sm:$0xf0]  ;;  %v5494_v63 = vor.u32 %v7277_v58, %v5493_v57 }
 0x117   :  { %1897 = vmatpush.bf16.msrb.mxu3 %v5694_v39  ;;  %1909 = vmatpush.bf16.msra.mxu0 %v5874_v48  ;;  %v5654_v2 = vor.u32 %v7317_v60, %v5653_v59  ;;  %v5313_v3 = vld [vmem:[#allocation2 + $0x50] sm:$0xf]  ;;  %v7232_v5 = vld [vmem:[#allocation2 + $0x60] sm:$0xf0]  ;;  %v5834_v11 = vor.u32 %v7362_v35, %v5833_v8  ;;  %v5813_v12 = vld [vmem:[#allocation2 + $0x438] sm:$0xf]  ;;  %v8153_v8 = vpack.c.bf16 %v8131_v4, %v8131_v4 }
 0x118   :  { %v5473_v7 = vld [vmem:[#allocation2 + $0x190] sm:$0xf]  ;;  %v7272_v14 = vld [vmem:[#allocation2 + $0x1a0] sm:$0xf0]  ;;  %v7357_v54 = vld [vmem:[#allocation2 + $0x448] sm:$0xf0]  ;;  %v5314_v13 = vor.u32 %v7232_v5, %v5313_v3  ;;  %v8157_v35 = vpack.c.bf16 %v8136_v61, %v8136_v61  ;;  %v8161_v3 = vpack.c.bf16 %v8141_v0, %v8141_v0 }
 0x119   :  { %1872 = vmatpush.bf16.msrb.mxu1 %v5354_v49  ;;  %v5633_v10 = vld [vmem:[#allocation2 + $0x2d0] sm:$0xf]  ;;  %v7312_v19 = vld [vmem:[#allocation2 + $0x2e0] sm:$0xf0]  ;;  %v5474_v15 = vor.u32 %v7272_v14, %v5473_v7  ;;  %v5293_v17 = vld [vmem:[#allocation2 + $0x28] sm:$0xf]  ;;  %v5814_v1 = vor.u32 %v7357_v54, %v5813_v12 }
 0x11a   :  { %1885 = vmatpush.bf16.msrb.mxu2 %v5514_v52  ;;  %v5634_v16 = vor.u32 %v7312_v19, %v5633_v10  ;;  %v7227_v62 = vld [vmem:[#allocation2 + $0x38] sm:$0xf0]  ;;  %v5453_v18 = vld [vmem:[#allocation2 + $0x168] sm:$0xf]  ;;  %v5793_v23 = vld [vmem:[#allocation2 + $0x410] sm:$0xf] }
 0x11b   :  { %1898 = vmatpush.bf16.msrb.mxu3 %v5674_v53  ;;  %1910 = vmatpush.bf16.msra.mxu0 %v5854_v41  ;;  %v7267_v20 = vld [vmem:[#allocation2 + $0x178] sm:$0xf0]  ;;  %v5613_v21 = vld [vmem:[#allocation2 + $0x2a8] sm:$0xf]  ;;  %v7352_v24 = vld [vmem:[#allocation2 + $0x420] sm:$0xf0]  ;;  %v5294_v25 = vor.u32 %v7227_v62, %v5293_v17 }
 0x11c   :  { %v7307_v22 = vld [vmem:[#allocation2 + $0x2b8] sm:$0xf0]  ;;  %v5273_v26 = vld [vmem:[#allocation2] sm:$0xf]  ;;  %v7222_v27 = vld [vmem:[#allocation2 + $0x10] sm:$0xf0]  ;;  %v5454_v28 = vor.u32 %v7267_v20, %v5453_v18  ;;  %v5794_v37 = vor.u32 %v7352_v24, %v5793_v23  ;;  %v8168_v18 = vpack.c.bf16 %v8145_v6, %v8145_v6 }
 0x11d   :  { %1873 = vmatpush.bf16.msrb.mxu1 %v5334_v45  ;;  %v5614_v29 = vor.u32 %v7307_v22, %v5613_v21  ;;  %v5433_v30 = vld [vmem:[#allocation2 + $0x140] sm:$0xf]  ;;  %v7262_v31 = vld [vmem:[#allocation2 + $0x150] sm:$0xf0]  ;;  %v6053_v32 = vld [vmem:[#allocation2 + $0x618] sm:$0xf]  ;;  %v5274_v42 = vor.u32 %v7222_v27, %v5273_v26 }
 0x11e   :  { %1886 = vmatpush.bf16.msrb.mxu2 %v5494_v63  ;;  %v7417_v34 = vld [vmem:[#allocation2 + $0x628] sm:$0xf0]  ;;  %v7255_v36 = vld [vmem:[#allocation2 + $0x11c] sm:$0xf]  ;;  %v5415_v33 = vld [vmem:[#allocation2 + $0x12c] sm:$0xf0]  ;;  %v5434_v47 = vor.u32 %v7262_v31, %v5433_v30 }
 0x11f   :  { %1899 = vmatpush.bf16.msrb.mxu3 %v5654_v2  ;;  %1911 = vmatpush.bf16.msra.mxu0 %v5834_v11  ;;  %v5593_v38 = vld [vmem:[#allocation2 + $0x280] sm:$0xf]  ;;  %v7302_v39 = vld [vmem:[#allocation2 + $0x290] sm:$0xf0]  ;;  %v7295_v40 = vld [vmem:[#allocation2 + $0x25c] sm:$0xf]  ;;  %v6054_v48 = vor.u32 %v7417_v34, %v6053_v32  ;;  %v5418_v49 = vor.u32 %v7255_v36, %v5415_v33 }
 0x120   :  { %v5575_v43 = vld [vmem:[#allocation2 + $0x26c] sm:$0xf0]  ;;  %v5773_v44 = vld [vmem:[#allocation2 + $0x3e8] sm:$0xf]  ;;  %v7347_v46 = vld [vmem:[#allocation2 + $0x3f8] sm:$0xf0]  ;;  %v5594_v50 = vor.u32 %v7302_v39, %v5593_v38 }
 0x121   :  { %1874 = vmatpush.bf16.msrb.mxu1 %v5314_v13  ;;  %v6033_v51 = vld [vmem:[#allocation2 + $0x5f0] sm:$0xf]  ;;  %v7412_v52 = vld [vmem:[#allocation2 + $0x600] sm:$0xf0]  ;;  %v5578_v53 = vor.u32 %v7295_v40, %v5575_v43  ;;  %v7250_v55 = vld [vmem:[#allocation2 + $0xf4] sm:$0xf]  ;;  %v5774_v57 = vor.u32 %v7347_v46, %v5773_v44 }
 0x122   :  { %1887 = vmatpush.bf16.msrb.mxu2 %v5474_v15  ;;  %v5395_v56 = vld [vmem:[#allocation2 + $0x104] sm:$0xf0]  ;;  %v7290_v58 = vld [vmem:[#allocation2 + $0x234] sm:$0xf]  ;;  %v5753_v60 = vld [vmem:[#allocation2 + $0x3c0] sm:$0xf]  ;;  %v6034_v45 = vor.u32 %v7412_v52, %v6033_v51 }
 0x123   :  { %1900 = vmatpush.bf16.msrb.mxu3 %v5634_v16  ;;  %1912 = vmatpush.bf16.msra.mxu0 %v5814_v1  ;;  %v5555_v59 = vld [vmem:[#allocation2 + $0x244] sm:$0xf0]  ;;  %v7342_v41 = vld [vmem:[#allocation2 + $0x3d0] sm:$0xf0]  ;;  %v7335_v63 = vld [vmem:[#allocation2 + $0x39c] sm:$0xf]  ;;  %v5398_v5 = vor.u32 %v7250_v55, %v5395_v56 }
 0x124   :  { %v5735_v2 = vld [vmem:[#allocation2 + $0x3ac] sm:$0xf0]  ;;  %v6013_v7 = vld [vmem:[#allocation2 + $0x5c8] sm:$0xf]  ;;  %v7407_v14 = vld [vmem:[#allocation2 + $0x5d8] sm:$0xf0]  ;;  %v5558_v4 = vor.u32 %v7290_v58, %v5555_v59  ;;  %v5754_v19 = vor.u32 %v7342_v41, %v5753_v60 }
 0x125   :  { %1875 = vmatpush.bf16.msrb.mxu1 %v5294_v25  ;;  %v7245_v10 = vld [vmem:[#allocation2 + $0xcc] sm:$0xf]  ;;  %v5375_v61 = vld [vmem:[#allocation2 + $0xdc] sm:$0xf0]  ;;  %v5738_v54 = vor.u32 %v7335_v63, %v5735_v2  ;;  %v6014_v0 = vor.u32 %v7407_v14, %v6013_v7  ;;  %v7330_v13 = vld [vmem:[#allocation2 + $0x374] sm:$0xf] }
 0x126   :  { %1888 = vmatpush.bf16.msrb.mxu2 %v5454_v28  ;;  %v7285_v11 = vld [vmem:[#allocation2 + $0x20c] sm:$0xf]  ;;  %v5535_v12 = vld [vmem:[#allocation2 + $0x21c] sm:$0xf0]  ;;  %v5715_v15 = vld [vmem:[#allocation2 + $0x384] sm:$0xf0]  ;;  %v5378_v16 = vor.u32 %v7245_v10, %v5375_v61 }
 0x127   :  { %1901 = vmatpush.bf16.msrb.mxu3 %v5614_v29  ;;  %1913 = vmatpush.bf16.msra.mxu0 %v5794_v37  ;;  %v5993_v17 = vld [vmem:[#allocation2 + $0x5a0] sm:$0xf]  ;;  %v7402_v62 = vld [vmem:[#allocation2 + $0x5b0] sm:$0xf0]  ;;  %v5538_v20 = vor.u32 %v7285_v11, %v5535_v12  ;;  %v7240_v21 = vld [vmem:[#allocation2 + $0xa4] sm:$0xf]  ;;  %v5718_v24 = vor.u32 %v7330_v13, %v5715_v15 }
 0x128   :  { %v5355_v22 = vld [vmem:[#allocation2 + $0xb4] sm:$0xf0]  ;;  %v7280_v1 = vld [vmem:[#allocation2 + $0x1e4] sm:$0xf]  ;;  %v5994_v25 = vor.u32 %v7402_v62, %v5993_v17  ;;  %v7325_v26 = vld [vmem:[#allocation2 + $0x34c] sm:$0xf] }
 0x129   :  { %1876 = vmatpush.bf16.msrb.mxu1 %v5274_v42  ;;  %v5515_v23 = vld [vmem:[#allocation2 + $0x1f4] sm:$0xf0]  ;;  %v5695_v27 = vld [vmem:[#allocation2 + $0x35c] sm:$0xf0]  ;;  %v5358_v28 = vor.u32 %v7240_v21, %v5355_v22  ;;  %v7397_v30 = vld [vmem:[#allocation2 + $0x588] sm:$0xf0] }
 0x12a   :  { %1889 = vmatpush.bf16.msrb.mxu2 %v5434_v47  ;;  %v5973_v29 = vld [vmem:[#allocation2 + $0x578] sm:$0xf]  ;;  %v5518_v6 = vor.u32 %v7280_v1, %v5515_v23  ;;  %v7235_v31 = vld [vmem:[#allocation2 + $0x7c] sm:$0xf]  ;;  %v5335_v32 = vld [vmem:[#allocation2 + $0x8c] sm:$0xf0]  ;;  %v5698_v33 = vor.u32 %v7325_v26, %v5695_v27 }
 0x12b   :  { %1902 = vmatpush.bf16.msrb.mxu3 %v5594_v50  ;;  %1914 = vmatpush.bf16.msra.mxu0 %v5774_v57  ;;  %v7275_v34 = vld [vmem:[#allocation2 + $0x1bc] sm:$0xf]  ;;  %v5495_v36 = vld [vmem:[#allocation2 + $0x1cc] sm:$0xf0]  ;;  %v5974_v37 = vor.u32 %v7397_v30, %v5973_v29  ;;  %v7320_v38 = vld [vmem:[#allocation2 + $0x324] sm:$0xf]  ;;  %v5338_v40 = vor.u32 %v7235_v31, %v5335_v32  ;;  %v8173_v29 = vpack.c.bf16 %v8149_v9, %v8149_v9 }
 0x12c   :  { %1877 = vmatmul.bf16.vlgmr.msrb.gmra.mxu1 %v8153_v8  ;;  %v5675_v39 = vld [vmem:[#allocation2 + $0x334] sm:$0xf0]  ;;  %v5953_v42 = vld [vmem:[#allocation2 + $0x550] sm:$0xf]  ;;  %v7392_v43 = vld [vmem:[#allocation2 + $0x560] sm:$0xf0]  ;;  %v5498_v44 = vor.u32 %v7275_v34, %v5495_v36 }
 0x12d   :  { %1921 = vmatpush.bf16.msra.mxu1 %v6054_v48  ;;  %1890 = vmatmul.bf16.vlgmr.msrb.gmra.mxu2 %v8157_v35  ;;  %v7230_v46 = vld [vmem:[#allocation2 + $0x54] sm:$0xf]  ;;  %v5315_v47 = vld [vmem:[#allocation2 + $0x64] sm:$0xf0]  ;;  %v5678_v50 = vor.u32 %v7320_v38, %v5675_v39  ;;  %v5954_v51 = vor.u32 %v7392_v43, %v5953_v42  ;;  %v7315_v52 = vld [vmem:[#allocation2 + $0x2fc] sm:$0xf] }
 0x12e   :  { %1934 = vmatpush.bf16.msra.mxu2 %v5418_v49  ;;  %1903 = vmatmul.bf16.vlgmr.msrb.gmra.mxu3 %v8161_v3  ;;  %v7270_v48 = vld [vmem:[#allocation2 + $0x194] sm:$0xf]  ;;  %v5475_v49 = vld [vmem:[#allocation2 + $0x1a4] sm:$0xf0]  ;;  %v5318_v55 = vor.u32 %v7230_v46, %v5315_v47  ;;  %v7387_v57 = vld [vmem:[#allocation2 + $0x538] sm:$0xf0] }
 0x12f   :  { %1947 = vmatpush.bf16.msra.mxu3 %v5578_v53  ;;  %1915 = vmatpush.bf16.msra.mxu0 %v5754_v19  ;;  %v5655_v53 = vld [vmem:[#allocation2 + $0x30c] sm:$0xf0]  ;;  %v5933_v56 = vld [vmem:[#allocation2 + $0x528] sm:$0xf]  ;;  %v5478_v58 = vor.u32 %v7270_v48, %v5475_v49  ;;  %v7225_v59 = vld [vmem:[#allocation2 + $0x2c] sm:$0xf] }
 0x130   :  { %v5295_v60 = vld [vmem:[#allocation2 + $0x3c] sm:$0xf0]  ;;  %v7265_v41 = vld [vmem:[#allocation2 + $0x16c] sm:$0xf]  ;;  %v5658_v63 = vor.u32 %v7315_v52, %v5655_v53  ;;  %v5934_v2 = vor.u32 %v7387_v57, %v5933_v56  ;;  %v7310_v7 = vld [vmem:[#allocation2 + $0x2d4] sm:$0xf] }
 0x131   :  { %1922 = vmatpush.bf16.msra.mxu1 %v6034_v45  ;;  %v5455_v45 = vld [vmem:[#allocation2 + $0x17c] sm:$0xf0]  ;;  %v5635_v14 = vld [vmem:[#allocation2 + $0x2e4] sm:$0xf0]  ;;  %v7382_v10 = vld [vmem:[#allocation2 + $0x510] sm:$0xf0] }
 0x132   :  { %1935 = vmatpush.bf16.msra.mxu2 %v5398_v5  ;;  %1916 = vmatmul.bf16.vlgmr.msra.gmra.mxu0 %v8168_v18  ;;  %v5913_v5 = vld [vmem:[#allocation2 + $0x500] sm:$0xf]  ;;  %v7220_v61 = vld [vmem:[#allocation2 + $0x4] sm:$0xf]  ;;  %v5275_v19 = vld [vmem:[#allocation2 + $0x14] sm:$0xf0]  ;;  %v5458_v11 = vor.u32 %v7265_v41, %v5455_v45  ;;  %v5638_v17 = vor.u32 %v7310_v7, %v5635_v14 }
 0x133   :  { %1948 = vmatpush.bf16.msra.mxu3 %v5558_v4  ;;  %1960 = vmatpush.bf16.msrb.mxu0 %v5738_v54  ;;  %v5298_v4 = vor.u32 %v7225_v59, %v5295_v60  ;;  %v7375_v12 = vld [vmem:[#allocation2 + $0x4dc] sm:$0xf]  ;;  %v5895_v54 = vld [vmem:[#allocation2 + $0x4ec] sm:$0xf0]  ;;  %v7260_v15 = vld [vmem:[#allocation2 + $0x144] sm:$0xf]  ;;  %v5914_v62 = vor.u32 %v7382_v10, %v5913_v5  ;;  %v5278_v22 = vor.u32 %v7220_v61, %v5275_v19 }
 0x134   :  { %v6055_v13 = vld [vmem:[#allocation2 + $0x62c] sm:$0xf0]  ;;  %v7258_v21 = vld [vmem:[#allocation2 + $0x130] sm:$0xf0]  ;;  %v5898_v1 = vor.u32 %v7375_v12, %v5895_v54  ;;  %v7305_v23 = vld [vmem:[#allocation2 + $0x2ac] sm:$0xf] }
 0x135   :  { %1923 = vmatpush.bf16.msra.mxu1 %v6014_v0  ;;  %v7415_v0 = vld [vmem:[#allocation2 + $0x61c] sm:$0xf]  ;;  %v7370_v27 = vld [vmem:[#allocation2 + $0x4b4] sm:$0xf]  ;;  %v6035_v31 = vld [vmem:[#allocation2 + $0x604] sm:$0xf0] }
 0x136   :  { %1936 = vmatpush.bf16.msra.mxu2 %v5378_v16  ;;  %v5435_v16 = vld [vmem:[#allocation2 + $0x154] sm:$0xf0]  ;;  %v7253_v36 = vld [vmem:[#allocation2 + $0x108] sm:$0xf0]  ;;  %v7300_v38 = vld [vmem:[#allocation2 + $0x284] sm:$0xf] }
 0x137   :  { %1949 = vmatpush.bf16.msra.mxu3 %v5538_v20  ;;  %1961 = vmatpush.bf16.msrb.mxu0 %v5718_v24  ;;  %v5421_v20 = vld [vmem:[#allocation2 + $0x120] sm:$0xf]  ;;  %v5438_v26 = vor.u32 %v7260_v15, %v5435_v16  ;;  %v5401_v34 = vld [vmem:[#allocation2 + $0xf8] sm:$0xf]  ;;  %v7298_v9 = vld [vmem:[#allocation2 + $0x270] sm:$0xf0] }
 0x138   :  { %v5615_v24 = vld [vmem:[#allocation2 + $0x2bc] sm:$0xf0]  ;;  %v5422_v30 = vor.u32 %v7258_v21, %v5421_v20  ;;  %v5595_v39 = vld [vmem:[#allocation2 + $0x294] sm:$0xf0]  ;;  %v7405_v46 = vld [vmem:[#allocation2 + $0x5cc] sm:$0xf] }
 0x139   :  { %1924 = vmatpush.bf16.msra.mxu1 %v5994_v25  ;;  %v6058_v25 = vor.u32 %v7415_v0, %v6055_v13  ;;  %v5618_v32 = vor.u32 %v7305_v23, %v5615_v24  ;;  %v5855_v42 = vld [vmem:[#allocation2 + $0x49c] sm:$0xf0]  ;;  %v5598_v48 = vor.u32 %v7300_v38, %v5595_v39  ;;  %v5381_v49 = vld [vmem:[#allocation2 + $0xd0] sm:$0xf]  ;;  %v7360_v53 = vld [vmem:[#allocation2 + $0x464] sm:$0xf] }
 0x13a   :  { %1937 = vmatpush.bf16.msra.mxu2 %v5358_v28  ;;  %v5875_v28 = vld [vmem:[#allocation2 + $0x4c4] sm:$0xf0]  ;;  %v5581_v43 = vld [vmem:[#allocation2 + $0x260] sm:$0xf]  ;;  %v5835_v56 = vld [vmem:[#allocation2 + $0x474] sm:$0xf0] }
 0x13b   :  { %1950 = vmatpush.bf16.msra.mxu3 %v5518_v6  ;;  %1962 = vmatpush.bf16.msrb.mxu0 %v5698_v33  ;;  %v7410_v6 = vld [vmem:[#allocation2 + $0x5f4] sm:$0xf]  ;;  %v5878_v33 = vor.u32 %v7370_v27, %v5875_v28  ;;  %v6015_v47 = vld [vmem:[#allocation2 + $0x5dc] sm:$0xf0]  ;;  %v5582_v52 = vor.u32 %v7298_v9, %v5581_v43  ;;  %v5561_v57 = vld [vmem:[#allocation2 + $0x238] sm:$0xf] }
 0x13c   :  { %v7400_v60 = vld [vmem:[#allocation2 + $0x5a4] sm:$0xf]  ;;  %v5995_v41 = vld [vmem:[#allocation2 + $0x5b4] sm:$0xf0]  ;;  %v5361_v45 = vld [vmem:[#allocation2 + $0xa8] sm:$0xf] }
 0x13d   :  { %1925 = vmatpush.bf16.msra.mxu1 %v5974_v37  ;;  %v7365_v37 = vld [vmem:[#allocation2 + $0x48c] sm:$0xf]  ;;  %v7355_v7 = vld [vmem:[#allocation2 + $0x43c] sm:$0xf]  ;;  %v5998_v14 = vor.u32 %v7400_v60, %v5995_v41  ;;  %v5541_v10 = vld [vmem:[#allocation2 + $0x210] sm:$0xf] }
 0x13e   :  { %1938 = vmatpush.bf16.msra.mxu2 %v5338_v40  ;;  %v6038_v40 = vor.u32 %v7410_v6, %v6035_v31  ;;  %v7288_v61 = vld [vmem:[#allocation2 + $0x220] sm:$0xf0]  ;;  %v5975_v12 = vld [vmem:[#allocation2 + $0x58c] sm:$0xf0]  ;;  %v5341_v54 = vld [vmem:[#allocation2 + $0x80] sm:$0xf] }
 0x13f   :  { %1951 = vmatpush.bf16.msra.mxu3 %v5498_v44  ;;  %1963 = vmatpush.bf16.msrb.mxu0 %v5678_v50  ;;  %v5402_v44 = vor.u32 %v7253_v36, %v5401_v34  ;;  %v7248_v50 = vld [vmem:[#allocation2 + $0xe0] sm:$0xf0]  ;;  %v7238_v0 = vld [vmem:[#allocation2 + $0x90] sm:$0xf0]  ;;  %v5542_v15 = vor.u32 %v7288_v61, %v5541_v10  ;;  %v5521_v20 = vld [vmem:[#allocation2 + $0x1e8] sm:$0xf] }
 0x140   :  { %v5382_v59 = vor.u32 %v7248_v50, %v5381_v49  ;;  %v7350_v16 = vld [vmem:[#allocation2 + $0x414] sm:$0xf]  ;;  %v7283_v21 = vld [vmem:[#allocation2 + $0x1f8] sm:$0xf0]  ;;  %v5955_v23 = vld [vmem:[#allocation2 + $0x564] sm:$0xf0] }
 0x141   :  { %1926 = vmatpush.bf16.msra.mxu1 %v5954_v51  ;;  %v5858_v51 = vor.u32 %v7365_v37, %v5855_v42  ;;  %v5321_v24 = vld [vmem:[#allocation2 + $0x58] sm:$0xf]  ;;  %v5522_v27 = vor.u32 %v7283_v21, %v5521_v20  ;;  %v7345_v28 = vld [vmem:[#allocation2 + $0x3ec] sm:$0xf]  ;;  %v5775_v6 = vld [vmem:[#allocation2 + $0x3fc] sm:$0xf0] }
 0x142   :  { %1939 = vmatpush.bf16.msra.mxu2 %v5318_v55  ;;  %v6018_v55 = vor.u32 %v7405_v46, %v6015_v47  ;;  %v5501_v31 = vld [vmem:[#allocation2 + $0x1c0] sm:$0xf]  ;;  %v7385_v36 = vld [vmem:[#allocation2 + $0x52c] sm:$0xf]  ;;  %v5301_v37 = vld [vmem:[#allocation2 + $0x30] sm:$0xf]  ;;  %v5778_v39 = vor.u32 %v7345_v28, %v5775_v6 }
 0x143   :  { %1952 = vmatpush.bf16.msra.mxu3 %v5478_v58  ;;  %1964 = vmatpush.bf16.msrb.mxu0 %v5658_v63  ;;  %v7293_v58 = vld [vmem:[#allocation2 + $0x248] sm:$0xf0]  ;;  %v7243_v63 = vld [vmem:[#allocation2 + $0xb8] sm:$0xf0]  ;;  %v7228_v38 = vld [vmem:[#allocation2 + $0x40] sm:$0xf0] }
 0x144   :  { %v5562_v5 = vor.u32 %v7293_v58, %v5561_v57  ;;  %v5362_v19 = vor.u32 %v7243_v63, %v5361_v45  ;;  %v7340_v42 = vld [vmem:[#allocation2 + $0x3c4] sm:$0xf]  ;;  %v5755_v43 = vld [vmem:[#allocation2 + $0x3d4] sm:$0xf0]  ;;  %v5302_v49 = vor.u32 %v7228_v38, %v5301_v37  ;;  %v5741_v50 = vld [vmem:[#allocation2 + $0x3a0] sm:$0xf] }
 0x145   :  { %1927 = vmatpush.bf16.msra.mxu1 %v5934_v2  ;;  %v5838_v2 = vor.u32 %v7360_v53, %v5835_v56  ;;  %v7380_v9 = vld [vmem:[#allocation2 + $0x504] sm:$0xf]  ;;  %v5915_v46 = vld [vmem:[#allocation2 + $0x514] sm:$0xf0]  ;;  %v7378_v53 = vld [vmem:[#allocation2 + $0x4f0] sm:$0xf0]  ;;  %v5758_v57 = vor.u32 %v7340_v42, %v5755_v43 }
 0x146   :  { %1940 = vmatpush.bf16.msra.mxu2 %v5298_v4  ;;  %v5815_v4 = vld [vmem:[#allocation2 + $0x44c] sm:$0xf0]  ;;  %v5481_v47 = vld [vmem:[#allocation2 + $0x198] sm:$0xf]  ;;  %v7223_v56 = vld [vmem:[#allocation2 + $0x18] sm:$0xf0]  ;;  %v5918_v41 = vor.u32 %v7380_v9, %v5915_v46 }
 0x147   :  { %1953 = vmatpush.bf16.msra.mxu3 %v5458_v11  ;;  %1965 = vmatpush.bf16.msrb.mxu0 %v5638_v17  ;;  %v7395_v11 = vld [vmem:[#allocation2 + $0x57c] sm:$0xf]  ;;  %v5818_v13 = vor.u32 %v7355_v7, %v5815_v4  ;;  %v7418_v60 = vld [vmem:[#allocation2 + $0x630] sm:$0xf0]  ;;  %v5461_v63 = vld [vmem:[#allocation2 + $0x170] sm:$0xf] }
 0x148   :  { %v5978_v17 = vor.u32 %v7395_v11, %v5975_v12  ;;  %v7333_v4 = vld [vmem:[#allocation2 + $0x388] sm:$0xf0]  ;;  %v5881_v61 = vld [vmem:[#allocation2 + $0x4b8] sm:$0xf]  ;;  %v7256_v20 = vld [vmem:[#allocation2 + $0x124] sm:$0xf] }
 0x149   :  { %1928 = vmatpush.bf16.msra.mxu1 %v5914_v62  ;;  %v5795_v62 = vld [vmem:[#allocation2 + $0x424] sm:$0xf0]  ;;  %v6041_v12 = vld [vmem:[#allocation2 + $0x5f8] sm:$0xf]  ;;  %v7363_v37 = vld [vmem:[#allocation2 + $0x478] sm:$0xf0] }
 0x14a   :  { %1941 = vmatpush.bf16.msra.mxu2 %v5278_v22  ;;  %v5342_v22 = vor.u32 %v7238_v0, %v5341_v54  ;;  %v7413_v54 = vld [vmem:[#allocation2 + $0x608] sm:$0xf0]  ;;  %v5423_v21 = vld [vmem:[#allocation2 + $0x134] sm:$0xf0]  ;;  %v6001_v38 = vld [vmem:[#allocation2 + $0x5a8] sm:$0xf] }
 0x14b   :  { %1954 = vmatpush.bf16.msra.mxu3 %v5438_v26  ;;  %1966 = vmatpush.bf16.msrb.mxu0 %v5618_v32  ;;  %v5798_v26 = vor.u32 %v7350_v16, %v5795_v62  ;;  %v7278_v32 = vld [vmem:[#allocation2 + $0x1d0] sm:$0xf0]  ;;  %v7263_v16 = vld [vmem:[#allocation2 + $0x158] sm:$0xf0]  ;;  %v7328_v62 = vld [vmem:[#allocation2 + $0x360] sm:$0xf0]  ;;  %v5426_v28 = vor.u32 %v7256_v20, %v5423_v21 }
 0x14c   :  { %1929 = vmatmul.bf16.vlgmr.msra.gmra.mxu1 %v8173_v29  ;;  %v5661_v43 = vld [vmem:[#allocation2 + $0x300] sm:$0xf]  ;;  %v7246_v46 = vld [vmem:[#allocation2 + $0xd4] sm:$0xf]  ;;  %v7303_v20 = vld [vmem:[#allocation2 + $0x298] sm:$0xf0] }
 0x14d   :  { %1973 = vmatpush.bf16.msrb.mxu1 %v5898_v1  ;;  %1942 = vmatmul.bf16.vlgmr.msra.gmra.mxu2 %v8153_v8  ;;  %v7390_v1 = vld [vmem:[#allocation2 + $0x554] sm:$0xf]  ;;  %v5761_v21 = vld [vmem:[#allocation2 + $0x3c8] sm:$0xf]  ;;  %s578_s13 = sshll.u32 %s8602_s4, 4  ;;  %s7970_s14 = smov [#allocation3]   ;;  %s579_s13 = int_to_ptr.hbm [resolvable:$true] %s578_s13 }
 0x14e   :  { %1986 = vmatpush.bf16.msrb.mxu2 %v6058_v25  ;;  %1955 = vmatmul.bf16.vlgmr.msra.gmra.mxu3 %v8157_v35  ;;  %v7233_v25 = vld [vmem:[#allocation2 + $0x68] sm:$0xf0]  ;;  %s580_s15 = sshll.u32 %s7970_s14, 4  ;;  %s581_s15 = int_to_ptr.vmem [resolvable:$true] %s580_s15 }
 0x14f   :  { %1999 = vmatpush.bf16.msrb.mxu3 %v5422_v30  ;;  %1967 = vmatpush.bf16.msrb.mxu0 %v5598_v48  ;;  %v5958_v30 = vor.u32 %v7390_v1, %v5955_v23  ;;  %v5322_v34 = vor.u32 %v7233_v25, %v5321_v24  ;;  %v7273_v48 = vld [vmem:[#allocation2 + $0x1a8] sm:$0xf0]  ;;  %v5861_v1 = vld [vmem:[#allocation2 + $0x490] sm:$0xf]  ;;  %v7368_v23 = vld [vmem:[#allocation2 + $0x4a0] sm:$0xf0] }
 0x150   :  { %v5482_v58 = vor.u32 %v7273_v48, %v5481_v47  ;;  %v6021_v25 = vld [vmem:[#allocation2 + $0x5d0] sm:$0xf]  ;;  %v5862_v6 = vor.u32 %v7368_v23, %v5861_v1  ;;  %v5383_v47 = vld [vmem:[#allocation2 + $0xe4] sm:$0xf0]  ;;  %v7343_v1 = vld [vmem:[#allocation2 + $0x3d8] sm:$0xf0] }
 0x151   :  { %1974 = vmatpush.bf16.msrb.mxu1 %v5878_v33  ;;  %v5935_v33 = vld [vmem:[#allocation2 + $0x53c] sm:$0xf0]  ;;  %v7231_v23 = vld [vmem:[#allocation2 + $0x5c] sm:$0xf]  ;;  %583 = dma.hbm_to_vmem [thread:$0]  %s579_s13, 35840, %s581_s15, [#allocation4 + $0x1] }
 0x152   :  { %1987 = vmatpush.bf16.msrb.mxu2 %v6038_v40  ;;  %1968 = vmatmul.bf16.vlgmr.msrb.gmra.mxu0 %v8161_v3  ;;  %v5502_v40 = vor.u32 %v7278_v32, %v5501_v31  ;;  %v7323_v31 = vld [vmem:[#allocation2 + $0x338] sm:$0xf0] }
 0x153   :  { %2000 = vmatpush.bf16.msrb.mxu3 %v5402_v44  ;;  %2012 = vmatpush.bf16.msra.mxu0 %v5582_v52  ;;  %v5938_v44 = vor.u32 %v7385_v36, %v5935_v33  ;;  %v5901_v52 = vld [vmem:[#allocation2 + $0x4e0] sm:$0xf]  ;;  %v7251_v32 = vld [vmem:[#allocation2 + $0xfc] sm:$0xf]  ;;  %v5841_v33 = vld [vmem:[#allocation2 + $0x468] sm:$0xf] }
 0x154   :  { %v5842_v9 = vor.u32 %v7363_v37, %v5841_v33  ;;  %v5903_v33 = vld [vmem:[#allocation2 + $0x4f4] sm:$0xf0]  ;;  %v5762_v37 = vor.u32 %v7343_v1, %v5761_v21  ;;  %v7406_v1 = vld [vmem:[#allocation2 + $0x5d4] sm:$0xf] }
 0x155   :  { %1975 = vmatpush.bf16.msrb.mxu1 %v5858_v51  ;;  %v7338_v51 = vld [vmem:[#allocation2 + $0x3b0] sm:$0xf0] }
 0x156   :  { %1988 = vmatpush.bf16.msrb.mxu2 %v6018_v55  ;;  %v5281_v55 = vld [vmem:[#allocation2 + $0x8] sm:$0xf]  ;;  %v5742_v45 = vor.u32 %v7338_v51, %v5741_v50  ;;  %v7358_v50 = vld [vmem:[#allocation2 + $0x450] sm:$0xf0]  ;;  %v5981_v51 = vld [vmem:[#allocation2 + $0x580] sm:$0xf] }
 0x157   :  { %2001 = vmatpush.bf16.msrb.mxu3 %v5382_v59  ;;  %2013 = vmatpush.bf16.msra.mxu0 %v5562_v5  ;;  %v6061_v59 = vld [vmem:[#allocation2 + $0x620] sm:$0xf]  ;;  %v5902_v5 = vor.u32 %v7378_v53, %v5901_v52  ;;  %v5282_v7 = vor.u32 %v7223_v56, %v5281_v55  ;;  %v7398_v52 = vld [vmem:[#allocation2 + $0x590] sm:$0xf0]  ;;  %v5386_v55 = vor.u32 %v7246_v46, %v5383_v47  ;;  %v5641_v56 = vld [vmem:[#allocation2 + $0x2d8] sm:$0xf] }
 0x158   :  { %v6062_v10 = vor.u32 %v7418_v60, %v6061_v59  ;;  %v7241_v59 = vld [vmem:[#allocation2 + $0xac] sm:$0xf]  ;;  %v5363_v60 = vld [vmem:[#allocation2 + $0xbc] sm:$0xf0]  ;;  %v7331_v47 = vld [vmem:[#allocation2 + $0x37c] sm:$0xf] }
 0x159   :  { %1976 = vmatpush.bf16.msrb.mxu1 %v5838_v2  ;;  %v7268_v2 = vld [vmem:[#allocation2 + $0x180] sm:$0xf0] }
 0x15a   :  { %1989 = vmatpush.bf16.msrb.mxu2 %v5998_v14  ;;  %v5721_v14 = vld [vmem:[#allocation2 + $0x378] sm:$0xf]  ;;  %v5462_v11 = vor.u32 %v7268_v2, %v5461_v63  ;;  %v7353_v63 = vld [vmem:[#allocation2 + $0x428] sm:$0xf0] }
 0x15b   :  { %2002 = vmatpush.bf16.msrb.mxu3 %v5362_v19  ;;  %2014 = vmatpush.bf16.msra.mxu0 %v5542_v15  ;;  %v7373_v19 = vld [vmem:[#allocation2 + $0x4c8] sm:$0xf0]  ;;  %v5722_v0 = vor.u32 %v7333_v4, %v5721_v14  ;;  %v5441_v15 = vld [vmem:[#allocation2 + $0x148] sm:$0xf]  ;;  %v5961_v2 = vld [vmem:[#allocation2 + $0x558] sm:$0xf]  ;;  %v5366_v14 = vor.u32 %v7241_v59, %v5363_v60 }
 0x15c   :  { %v5442_v24 = vor.u32 %v7263_v16, %v5441_v15  ;;  %v5621_v4 = vld [vmem:[#allocation2 + $0x2b0] sm:$0xf]  ;;  %v7388_v15 = vld [vmem:[#allocation2 + $0x540] sm:$0xf0]  ;;  %v6063_v60 = vld [vmem:[#allocation2 + $0x634] sm:$0xf0] }
 0x15d   :  { %1977 = vmatpush.bf16.msrb.mxu1 %v5818_v13  ;;  %v5701_v13 = vld [vmem:[#allocation2 + $0x350] sm:$0xf]  ;;  %v7416_v59 = vld [vmem:[#allocation2 + $0x624] sm:$0xf] }
 0x15e   :  { %1990 = vmatpush.bf16.msrb.mxu2 %v5978_v17  ;;  %v5882_v17 = vor.u32 %v7373_v19, %v5881_v61  ;;  %v7308_v61 = vld [vmem:[#allocation2 + $0x2c0] sm:$0xf0] }
 0x15f   :  { %2003 = vmatpush.bf16.msrb.mxu3 %v5342_v22  ;;  %2015 = vmatpush.bf16.msra.mxu0 %v5522_v27  ;;  %v6042_v22 = vor.u32 %v7413_v54, %v6041_v12  ;;  %v5702_v27 = vor.u32 %v7328_v62, %v5701_v13  ;;  %v7236_v19 = vld [vmem:[#allocation2 + $0x84] sm:$0xf]  ;;  %v5781_v54 = vld [vmem:[#allocation2 + $0x3f0] sm:$0xf]  ;;  %v5622_v16 = vor.u32 %v7308_v61, %v5621_v4  ;;  %v5601_v62 = vld [vmem:[#allocation2 + $0x288] sm:$0xf] }
 0x160   :  { %v5941_v13 = vld [vmem:[#allocation2 + $0x530] sm:$0xf]  ;;  %v6066_v4 = vor.u32 %v7416_v59, %v6063_v60  ;;  %v5443_v59 = vld [vmem:[#allocation2 + $0x15c] sm:$0xf0]  ;;  %v7301_v60 = vld [vmem:[#allocation2 + $0x28c] sm:$0xf] }
 0x161   :  { %1978 = vmatpush.bf16.msrb.mxu1 %v5798_v26  ;;  %v7408_v26 = vld [vmem:[#allocation2 + $0x5e0] sm:$0xf0] }
 0x162   :  { %1991 = vmatpush.bf16.msrb.mxu2 %v5958_v30  ;;  %v5681_v30 = vld [vmem:[#allocation2 + $0x328] sm:$0xf]  ;;  %v6022_v36 = vor.u32 %v7408_v26, %v6021_v25  ;;  %v5942_v25 = vor.u32 %v7388_v15, %v5941_v13  ;;  %v7296_v26 = vld [vmem:[#allocation2 + $0x264] sm:$0xf]  ;;  %v5683_v13 = vld [vmem:[#allocation2 + $0x33c] sm:$0xf0] }
 0x163   :  { %2004 = vmatpush.bf16.msrb.mxu3 %v5322_v34  ;;  %2016 = vmatpush.bf16.msra.mxu0 %v5502_v40  ;;  %v5403_v34 = vld [vmem:[#allocation2 + $0x10c] sm:$0xf0]  ;;  %v5682_v40 = vor.u32 %v7323_v31, %v5681_v30  ;;  %v5743_v30 = vld [vmem:[#allocation2 + $0x3b4] sm:$0xf0]  ;;  %v7383_v31 = vld [vmem:[#allocation2 + $0x518] sm:$0xf0] }
 0x164   :  { %v5406_v42 = vor.u32 %v7251_v32, %v5403_v34  ;;  %v5602_v32 = vor.u32 %v7303_v20, %v5601_v62  ;;  %v7361_v15 = vld [vmem:[#allocation2 + $0x46c] sm:$0xf]  ;;  %v7276_v20 = vld [vmem:[#allocation2 + $0x1c4] sm:$0xf] }
 0x165   :  { %1979 = vmatpush.bf16.msrb.mxu1 %v5778_v39  ;;  %v7403_v39 = vld [vmem:[#allocation2 + $0x5b8] sm:$0xf0] }
 0x166   :  { %1992 = vmatpush.bf16.msrb.mxu2 %v5938_v44  ;;  %v7318_v44 = vld [vmem:[#allocation2 + $0x310] sm:$0xf0]  ;;  %v6002_v48 = vor.u32 %v7403_v39, %v6001_v38 }
 0x167   :  { %2005 = vmatpush.bf16.msrb.mxu3 %v5302_v49  ;;  %2017 = vmatpush.bf16.msra.mxu0 %v5482_v58  ;;  %v5821_v49 = vld [vmem:[#allocation2 + $0x440] sm:$0xf]  ;;  %v5662_v53 = vor.u32 %v7318_v44, %v5661_v43  ;;  %v7313_v58 = vld [vmem:[#allocation2 + $0x2e8] sm:$0xf0]  ;;  %v7226_v39 = vld [vmem:[#allocation2 + $0x34] sm:$0xf] }
 0x168   :  { %v5563_v44 = vld [vmem:[#allocation2 + $0x24c] sm:$0xf0] }
 0x169   :  { %1980 = vmatpush.bf16.msrb.mxu1 %v5758_v57  ;;  %v5822_v57 = vor.u32 %v7358_v50, %v5821_v49  ;;  %v7371_v50 = vld [vmem:[#allocation2 + $0x4bc] sm:$0xf] }
 0x16a   :  { %1993 = vmatpush.bf16.msrb.mxu2 %v5918_v41  ;;  %v5982_v41 = vor.u32 %v7398_v52, %v5981_v51  ;;  %v5883_v51 = vld [vmem:[#allocation2 + $0x4cc] sm:$0xf0] }
 0x16b   :  { %2006 = vmatpush.bf16.msrb.mxu3 %v5282_v7  ;;  %2018 = vmatpush.bf16.msra.mxu0 %v5462_v11  ;;  %v5642_v7 = vor.u32 %v7313_v58, %v5641_v56  ;;  %v5343_v11 = vld [vmem:[#allocation2 + $0x94] sm:$0xf0]  ;;  %v5283_v56 = vld [vmem:[#allocation2 + $0x1c] sm:$0xf0]  ;;  %v5543_v58 = vld [vmem:[#allocation2 + $0x224] sm:$0xf0] }
 0x16c   :  { %1981 = vmatmul.bf16.vlgmr.msrb.gmra.mxu1 %v8168_v18 }
 0x16d   :  { %2025 = vmatpush.bf16.msra.mxu1 %v5742_v45  ;;  %1994 = vmatmul.bf16.vlgmr.msrb.gmra.mxu2 %v8173_v29  ;;  %v5801_v45 = vld [vmem:[#allocation2 + $0x418] sm:$0xf] }
 0x16e   :  { %2038 = vmatpush.bf16.msra.mxu2 %v5902_v5  ;;  %2007 = vmatmul.bf16.vlgmr.msrb.gmra.mxu3 %v8153_v8  ;;  %v7393_v5 = vld [vmem:[#allocation2 + $0x568] sm:$0xf0] }
 0x16f   :  { %2051 = vmatpush.bf16.msra.mxu3 %v6062_v10  ;;  %2019 = vmatpush.bf16.msra.mxu0 %v5442_v24  ;;  %v5802_v10 = vor.u32 %v7353_v63, %v5801_v45  ;;  %v5962_v12 = vor.u32 %v7393_v5, %v5961_v2  ;;  %v5323_v24 = vld [vmem:[#allocation2 + $0x6c] sm:$0xf0]  ;;  %v7326_v45 = vld [vmem:[#allocation2 + $0x354] sm:$0xf]  ;;  %v5703_v63 = vld [vmem:[#allocation2 + $0x364] sm:$0xf0] }
 0x170   :  { %v5326_v34 = vor.u32 %v7231_v23, %v5323_v24  ;;  %v7366_v5 = vld [vmem:[#allocation2 + $0x494] sm:$0xf]  ;;  %v5706_v61 = vor.u32 %v7326_v45, %v5703_v63  ;;  %v6023_v23 = vld [vmem:[#allocation2 + $0x5e4] sm:$0xf0]  ;;  %v5603_v45 = vld [vmem:[#allocation2 + $0x29c] sm:$0xf0] }
 0x171   :  { %2026 = vmatpush.bf16.msra.mxu1 %v5722_v0  ;;  %v7348_v0 = vld [vmem:[#allocation2 + $0x400] sm:$0xf0]  ;;  %v7391_v63 = vld [vmem:[#allocation2 + $0x55c] sm:$0xf] }
 0x172   :  { %2039 = vmatpush.bf16.msra.mxu2 %v5882_v17  ;;  %2020 = vmatmul.bf16.vlgmr.msra.gmra.mxu0 %v8157_v35  ;;  %v5346_v17 = vor.u32 %v7236_v19, %v5343_v11  ;;  %v5523_v19 = vld [vmem:[#allocation2 + $0x1fc] sm:$0xf0]  ;;  %v7411_v11 = vld [vmem:[#allocation2 + $0x5fc] sm:$0xf] }
 0x173   :  { %2052 = vmatpush.bf16.msra.mxu3 %v6042_v22  ;;  %2064 = vmatpush.bf16.msrb.mxu0 %v5426_v28  ;;  %v5782_v22 = vor.u32 %v7348_v0, %v5781_v54  ;;  %v7336_v28 = vld [vmem:[#allocation2 + $0x3a4] sm:$0xf]  ;;  %v7321_v0 = vld [vmem:[#allocation2 + $0x32c] sm:$0xf] }
 0x174   :  { %v5686_v21 = vor.u32 %v7321_v0, %v5683_v13  ;;  %v7339_v0 = vld [vmem:[#allocation2 + $0x3b8] sm:$0xf0]  ;;  %v5606_v13 = vor.u32 %v7301_v60, %v5603_v45  ;;  %v5869_v45 = vld [vmem:[#allocation2 + $0x498] sm:$0xf] }
 0x175   :  { %2027 = vmatpush.bf16.msra.mxu1 %v5702_v27  ;;  %v5583_v27 = vld [vmem:[#allocation2 + $0x274] sm:$0xf0]  ;;  %v7239_v60 = vld [vmem:[#allocation2 + $0x98] sm:$0xf0] }
 0x176   :  { %2040 = vmatpush.bf16.msra.mxu2 %v5862_v6  ;;  %v5921_v6 = vld [vmem:[#allocation2 + $0x508] sm:$0xf]  ;;  %v5586_v38 = vor.u32 %v7296_v26, %v5583_v27  ;;  %v5663_v26 = vld [vmem:[#allocation2 + $0x314] sm:$0xf0]  ;;  %v7356_v27 = vld [vmem:[#allocation2 + $0x444] sm:$0xf] }
 0x177   :  { %2053 = vmatpush.bf16.msra.mxu3 %v6022_v36  ;;  %2065 = vmatpush.bf16.msrb.mxu0 %v5406_v42  ;;  %v7376_v36 = vld [vmem:[#allocation2 + $0x4e4] sm:$0xf]  ;;  %v5746_v42 = vor.u32 %v7336_v28, %v5743_v30  ;;  %v5922_v43 = vor.u32 %v7383_v31, %v5921_v6  ;;  %v5823_v28 = vld [vmem:[#allocation2 + $0x454] sm:$0xf0]  ;;  %v6026_v6 = vor.u32 %v7406_v1, %v6023_v23  ;;  %v7271_v31 = vld [vmem:[#allocation2 + $0x19c] sm:$0xf] }
 0x178   :  { %v5906_v46 = vor.u32 %v7376_v36, %v5903_v33  ;;  %v7401_v36 = vld [vmem:[#allocation2 + $0x5ac] sm:$0xf]  ;;  %v6003_v33 = vld [vmem:[#allocation2 + $0x5bc] sm:$0xf0] }
 0x179   :  { %2028 = vmatpush.bf16.msra.mxu1 %v5682_v40  ;;  %v5303_v40 = vld [vmem:[#allocation2 + $0x44] sm:$0xf0]  ;;  %v5569_v23 = vld [vmem:[#allocation2 + $0x240] sm:$0xf] }
 0x17a   :  { %2041 = vmatpush.bf16.msra.mxu2 %v5842_v9  ;;  %v7291_v9 = vld [vmem:[#allocation2 + $0x23c] sm:$0xf]  ;;  %v5306_v49 = vor.u32 %v7226_v39, %v5303_v40  ;;  %v5643_v39 = vld [vmem:[#allocation2 + $0x2ec] sm:$0xf0] }
 0x17b   :  { %2054 = vmatpush.bf16.msra.mxu3 %v6002_v48  ;;  %2066 = vmatpush.bf16.msrb.mxu0 %v5386_v55  ;;  %v5723_v48 = vld [vmem:[#allocation2 + $0x38c] sm:$0xf0]  ;;  %v5566_v52 = vor.u32 %v7291_v9, %v5563_v44  ;;  %v7221_v55 = vld [vmem:[#allocation2 + $0xc] sm:$0xf]  ;;  %v7351_v40 = vld [vmem:[#allocation2 + $0x41c] sm:$0xf]  ;;  %v6006_v9 = vor.u32 %v7401_v36, %v6003_v33 }
 0x17c   :  { %v5286_v2 = vor.u32 %v7221_v55, %v5283_v56  ;;  %v7266_v44 = vld [vmem:[#allocation2 + $0x174] sm:$0xf]  ;;  %v5783_v55 = vld [vmem:[#allocation2 + $0x404] sm:$0xf0]  ;;  %v7379_v33 = vld [vmem:[#allocation2 + $0x4f8] sm:$0xf0] }
 0x17d   :  { %2029 = vmatpush.bf16.msra.mxu1 %v5662_v53  ;;  %v7286_v53 = vld [vmem:[#allocation2 + $0x214] sm:$0xf]  ;;  %v5909_v36 = vld [vmem:[#allocation2 + $0x4e8] sm:$0xf] }
 0x17e   :  { %2042 = vmatpush.bf16.msra.mxu2 %v5822_v57  ;;  %v5726_v57 = vor.u32 %v7331_v47, %v5723_v48  ;;  %v5463_v47 = vld [vmem:[#allocation2 + $0x184] sm:$0xf0]  ;;  %v7396_v48 = vld [vmem:[#allocation2 + $0x584] sm:$0xf] }
 0x17f   :  { %2055 = vmatpush.bf16.msra.mxu3 %v5982_v41  ;;  %2067 = vmatpush.bf16.msrb.mxu0 %v5366_v14  ;;  %v5886_v41 = vor.u32 %v7371_v50, %v5883_v51  ;;  %v5546_v14 = vor.u32 %v7286_v53, %v5543_v58  ;;  %v7306_v51 = vld [vmem:[#allocation2 + $0x2b4] sm:$0xf]  ;;  %v5466_v56 = vor.u32 %v7266_v44, %v5463_v47  ;;  %v7261_v58 = vld [vmem:[#allocation2 + $0x14c] sm:$0xf]  ;;  %v5369_v44 = vld [vmem:[#allocation2 + $0xb0] sm:$0xf] }
 0x180   :  { %v7346_v53 = vld [vmem:[#allocation2 + $0x3f4] sm:$0xf]  ;;  %v7244_v47 = vld [vmem:[#allocation2 + $0xc0] sm:$0xf0] }
 0x181   :  { %2030 = vmatpush.bf16.msra.mxu1 %v5642_v7  ;;  %v5863_v7 = vld [vmem:[#allocation2 + $0x4a4] sm:$0xf0] }
 0x182   :  { %2043 = vmatpush.bf16.msra.mxu2 %v5802_v10  ;;  %v7281_v10 = vld [vmem:[#allocation2 + $0x1ec] sm:$0xf]  ;;  %v5866_v54 = vor.u32 %v7366_v5, %v5863_v7  ;;  %v5786_v5 = vor.u32 %v7346_v53, %v5783_v55  ;;  %v5429_v7 = vld [vmem:[#allocation2 + $0x128] sm:$0xf]  ;;  %v7284_v53 = vld [vmem:[#allocation2 + $0x200] sm:$0xf0] }
 0x183   :  { %2056 = vmatpush.bf16.msra.mxu3 %v5962_v12  ;;  %2068 = vmatpush.bf16.msrb.mxu0 %v5346_v17  ;;  %v6043_v12 = vld [vmem:[#allocation2 + $0x60c] sm:$0xf0]  ;;  %v5526_v17 = vor.u32 %v7281_v10, %v5523_v19  ;;  %v5763_v10 = vld [vmem:[#allocation2 + $0x3dc] sm:$0xf0]  ;;  %v7299_v19 = vld [vmem:[#allocation2 + $0x278] sm:$0xf0] }
 0x184   :  { %v6046_v62 = vor.u32 %v7411_v11, %v6043_v12  ;;  %v5446_v11 = vor.u32 %v7261_v58, %v5443_v59  ;;  %v5689_v55 = vld [vmem:[#allocation2 + $0x330] sm:$0xf]  ;;  %v5349_v58 = vld [vmem:[#allocation2 + $0x88] sm:$0xf] }
 0x185   :  { %2031 = vmatpush.bf16.msra.mxu1 %v5622_v16  ;;  %v5843_v16 = vld [vmem:[#allocation2 + $0x47c] sm:$0xf0] }
 0x186   :  { %2044 = vmatpush.bf16.msra.mxu2 %v5782_v22  ;;  %v5503_v22 = vld [vmem:[#allocation2 + $0x1d4] sm:$0xf0]  ;;  %v5846_v24 = vor.u32 %v7361_v15, %v5843_v16  ;;  %v7386_v16 = vld [vmem:[#allocation2 + $0x534] sm:$0xf] }
 0x187   :  { %2057 = vmatpush.bf16.msra.mxu3 %v5942_v25  ;;  %2069 = vmatpush.bf16.msrb.mxu0 %v5326_v34  ;;  %v7316_v25 = vld [vmem:[#allocation2 + $0x304] sm:$0xf]  ;;  %v5506_v30 = vor.u32 %v7276_v20, %v5503_v22  ;;  %v5483_v34 = vld [vmem:[#allocation2 + $0x1ac] sm:$0xf0]  ;;  %v5409_v20 = vld [vmem:[#allocation2 + $0x100] sm:$0xf] }
 0x189   :  { %2032 = vmatpush.bf16.msra.mxu1 %v5602_v32  ;;  %v5666_v32 = vor.u32 %v7316_v25, %v5663_v26  ;;  %v5729_v26 = vld [vmem:[#allocation2 + $0x380] sm:$0xf] }
 0x18a   :  { %2045 = vmatpush.bf16.msra.mxu2 %v5762_v37  ;;  %v5826_v37 = vor.u32 %v7356_v27, %v5823_v28  ;;  %v7334_v27 = vld [vmem:[#allocation2 + $0x390] sm:$0xf0] }
 0x18b   :  { %2058 = vmatpush.bf16.msra.mxu3 %v5922_v43  ;;  %2070 = vmatpush.bf16.msrb.mxu0 %v5306_v49  ;;  %v5486_v43 = vor.u32 %v7271_v31, %v5483_v34  ;;  %v5983_v49 = vld [vmem:[#allocation2 + $0x594] sm:$0xf0]  ;;  %v5923_v31 = vld [vmem:[#allocation2 + $0x51c] sm:$0xf0] }
 0x18c   :  { %2033 = vmatmul.bf16.vlgmr.msra.gmra.mxu1 %v8161_v3 }
 0x18d   :  { %2077 = vmatpush.bf16.msrb.mxu1 %v5586_v38  ;;  %2046 = vmatmul.bf16.vlgmr.msra.gmra.mxu2 %v8168_v18  ;;  %v7311_v38 = vld [vmem:[#allocation2 + $0x2dc] sm:$0xf] }
 0x18e   :  { %2090 = vmatpush.bf16.msrb.mxu2 %v5746_v42  ;;  %2059 = vmatmul.bf16.vlgmr.msra.gmra.mxu3 %v8173_v29  ;;  %v5803_v42 = vld [vmem:[#allocation2 + $0x42c] sm:$0xf0] }
 0x18f   :  { %2103 = vmatpush.bf16.msrb.mxu3 %v5906_v46  ;;  %2071 = vmatpush.bf16.msrb.mxu0 %v5286_v2  ;;  %v5646_v46 = vor.u32 %v7311_v38, %v5643_v39  ;;  %v5806_v50 = vor.u32 %v7351_v40, %v5803_v42  ;;  %v5963_v2 = vld [vmem:[#allocation2 + $0x56c] sm:$0xf0]  ;;  %v5549_v38 = vld [vmem:[#allocation2 + $0x218] sm:$0xf]  ;;  %v7289_v39 = vld [vmem:[#allocation2 + $0x228] sm:$0xf0] }
 0x190   :  { %v5966_v12 = vor.u32 %v7391_v63, %v5963_v2  ;;  %v5709_v42 = vld [vmem:[#allocation2 + $0x358] sm:$0xf]  ;;  %v7369_v63 = vld [vmem:[#allocation2 + $0x4a8] sm:$0xf0] }
 0x191   :  { %2078 = vmatpush.bf16.msrb.mxu1 %v5566_v52  ;;  %v5623_v52 = vld [vmem:[#allocation2 + $0x2c4] sm:$0xf0] }
 0x192   :  { %2091 = vmatpush.bf16.msrb.mxu2 %v5726_v57  ;;  %2072 = vmatmul.bf16.vlgmr.msrb.gmra.mxu0 %v8153_v8  ;;  %v5986_v57 = vor.u32 %v7396_v48, %v5983_v49  ;;  %v5550_v48 = vor.u32 %v7289_v39, %v5549_v38  ;;  %v5889_v49 = vld [vmem:[#allocation2 + $0x4c0] sm:$0xf]  ;;  %v5289_v38 = vld [vmem:[#allocation2 + $0x10] sm:$0xf]  ;;  %v7224_v39 = vld [vmem:[#allocation2 + $0x20] sm:$0xf0] }
 0x193   :  { %2104 = vmatpush.bf16.msrb.mxu3 %v5886_v41  ;;  %2116 = vmatpush.bf16.msra.mxu0 %v6066_v4  ;;  %v5626_v41 = vor.u32 %v7306_v51, %v5623_v52  ;;  %v7341_v4 = vld [vmem:[#allocation2 + $0x3cc] sm:$0xf]  ;;  %v5529_v52 = vld [vmem:[#allocation2 + $0x1f0] sm:$0xf] }
 0x195   :  { %2079 = vmatpush.bf16.msrb.mxu1 %v5546_v14  ;;  %v7259_v14 = vld [vmem:[#allocation2 + $0x138] sm:$0xf0] }
 0x196   :  { %2092 = vmatpush.bf16.msrb.mxu2 %v5706_v61  ;;  %v5589_v61 = vld [vmem:[#allocation2 + $0x268] sm:$0xf]  ;;  %v5430_v15 = vor.u32 %v7259_v14, %v5429_v7  ;;  %v7279_v7 = vld [vmem:[#allocation2 + $0x1d8] sm:$0xf0] }
 0x197   :  { %2105 = vmatpush.bf16.msrb.mxu3 %v5866_v54  ;;  %2117 = vmatpush.bf16.msra.mxu0 %v6046_v62  ;;  %v5749_v54 = vld [vmem:[#allocation2 + $0x3a8] sm:$0xf]  ;;  %v5766_v62 = vor.u32 %v7341_v4, %v5763_v10  ;;  %v5590_v22 = vor.u32 %v7299_v19, %v5589_v61  ;;  %v7319_v4 = vld [vmem:[#allocation2 + $0x318] sm:$0xf0]  ;;  %v5350_v10 = vor.u32 %v7239_v60, %v5349_v58  ;;  %v5329_v61 = vld [vmem:[#allocation2 + $0x60] sm:$0xf] }
 0x198   :  { %v5750_v1 = vor.u32 %v7339_v0, %v5749_v54  ;;  %v5669_v14 = vld [vmem:[#allocation2 + $0x308] sm:$0xf]  ;;  %v5849_v0 = vld [vmem:[#allocation2 + $0x470] sm:$0xf]  ;;  %v5789_v60 = vld [vmem:[#allocation2 + $0x3f8] sm:$0xf] }
 0x199   :  { %2080 = vmatpush.bf16.msrb.mxu1 %v5526_v17  ;;  %v5943_v17 = vld [vmem:[#allocation2 + $0x544] sm:$0xf0] }
 0x19a   :  { %2093 = vmatpush.bf16.msrb.mxu2 %v5686_v21  ;;  %v7254_v21 = vld [vmem:[#allocation2 + $0x110] sm:$0xf0]  ;;  %v5946_v25 = vor.u32 %v7386_v16, %v5943_v17  ;;  %v5489_v16 = vld [vmem:[#allocation2 + $0x1a0] sm:$0xf] }
 0x19b   :  { %2106 = vmatpush.bf16.msrb.mxu3 %v5846_v24  ;;  %2118 = vmatpush.bf16.msra.mxu0 %v6026_v6  ;;  %v7294_v24 = vld [vmem:[#allocation2 + $0x250] sm:$0xf0]  ;;  %v5410_v28 = vor.u32 %v7254_v21, %v5409_v20  ;;  %v7381_v6 = vld [vmem:[#allocation2 + $0x50c] sm:$0xf] }
 0x19c   :  { %v5570_v34 = vor.u32 %v7294_v24, %v5569_v23  ;;  %v5926_v40 = vor.u32 %v7381_v6, %v5923_v31  ;;  %v7274_v17 = vld [vmem:[#allocation2 + $0x1b0] sm:$0xf0]  ;;  %v7229_v23 = vld [vmem:[#allocation2 + $0x48] sm:$0xf0] }
 0x19d   :  { %2081 = vmatpush.bf16.msrb.mxu1 %v5506_v30  ;;  %v5389_v30 = vld [vmem:[#allocation2 + $0xd8] sm:$0xf]  ;;  %v7314_v20 = vld [vmem:[#allocation2 + $0x2f0] sm:$0xf0]  ;;  %v5490_v24 = vor.u32 %v7274_v17, %v5489_v16  ;;  %v5989_v17 = vld [vmem:[#allocation2 + $0x588] sm:$0xf] }
 0x19e   :  { %2094 = vmatpush.bf16.msrb.mxu2 %v5666_v32  ;;  %v7249_v32 = vld [vmem:[#allocation2 + $0xe8] sm:$0xf0] }
 0x19f   :  { %2107 = vmatpush.bf16.msrb.mxu3 %v5826_v37  ;;  %2119 = vmatpush.bf16.msra.mxu0 %v6006_v9  ;;  %v5730_v37 = vor.u32 %v7334_v27, %v5729_v26  ;;  %v5390_v9 = vor.u32 %v7249_v32, %v5389_v30  ;;  %v7359_v26 = vld [vmem:[#allocation2 + $0x458] sm:$0xf0]  ;;  %v7269_v30 = vld [vmem:[#allocation2 + $0x188] sm:$0xf0]  ;;  %v5629_v32 = vld [vmem:[#allocation2 + $0x2b8] sm:$0xf] }
 0x1a1   :  { %2082 = vmatpush.bf16.msrb.mxu1 %v5486_v43  ;;  %v7329_v43 = vld [vmem:[#allocation2 + $0x368] sm:$0xf0] }
 0x1a2   :  { %2095 = vmatpush.bf16.msrb.mxu2 %v5646_v46  ;;  %v5910_v46 = vor.u32 %v7379_v33, %v5909_v36  ;;  %v5710_v51 = vor.u32 %v7329_v43, %v5709_v42  ;;  %v6069_v43 = vld [vmem:[#allocation2 + $0x628] sm:$0xf] }
 0x1a3   :  { %2108 = vmatpush.bf16.msrb.mxu3 %v5806_v50  ;;  %2120 = vmatpush.bf16.msra.mxu0 %v5986_v57  ;;  %v7374_v50 = vld [vmem:[#allocation2 + $0x4d0] sm:$0xf0]  ;;  %v5370_v57 = vor.u32 %v7244_v47, %v5369_v44 }
 0x1a4   :  { %v5890_v59 = vor.u32 %v7374_v50, %v5889_v49  ;;  %v7354_v47 = vld [vmem:[#allocation2 + $0x430] sm:$0xf0]  ;;  %v5449_v50 = vld [vmem:[#allocation2 + $0x150] sm:$0xf] }
 0x1a5   :  { %2083 = vmatpush.bf16.msrb.mxu1 %v5466_v56  ;;  %v7324_v56 = vld [vmem:[#allocation2 + $0x340] sm:$0xf0] }
 0x1a6   :  { %2096 = vmatpush.bf16.msrb.mxu2 %v5626_v41  ;;  %v5530_v41 = vor.u32 %v7284_v53, %v5529_v52  ;;  %v5690_v2 = vor.u32 %v7324_v56, %v5689_v55  ;;  %v5609_v52 = vld [vmem:[#allocation2 + $0x290] sm:$0xf]  ;;  %v7304_v53 = vld [vmem:[#allocation2 + $0x2a0] sm:$0xf0]  ;;  %v5290_v56 = vor.u32 %v7224_v39, %v5289_v38 }
 0x1a7   :  { %2109 = vmatpush.bf16.msrb.mxu3 %v5786_v5  ;;  %2121 = vmatpush.bf16.msra.mxu0 %v5966_v12  ;;  %v5509_v5 = vld [vmem:[#allocation2 + $0x1c8] sm:$0xf]  ;;  %v7234_v12 = vld [vmem:[#allocation2 + $0x70] sm:$0xf0] }
 0x1a8   :  { %v5510_v54 = vor.u32 %v7279_v7, %v5509_v5  ;;  %v5330_v21 = vor.u32 %v7234_v12, %v5329_v61  ;;  %v5769_v61 = vld [vmem:[#allocation2 + $0x3d0] sm:$0xf]  ;;  %v7409_v12 = vld [vmem:[#allocation2 + $0x5e8] sm:$0xf0] }
 0x1a9   :  { %2084 = vmatpush.bf16.msrb.mxu1 %v5446_v11  ;;  %v1878_v19 = vpop.f32.mrf.mxu1  ;;  %v5870_v11 = vor.u32 %v7369_v63, %v5869_v45  ;;  %v6049_v45 = vld [vmem:[#allocation2 + $0x600] sm:$0xf]  ;;  %v7414_v63 = vld [vmem:[#allocation2 + $0x610] sm:$0xf0] }
 0x1aa   :  { %2097 = vmatpush.bf16.msrb.mxu2 %v5606_v13  ;;  %v7364_v13 = vld [vmem:[#allocation2 + $0x480] sm:$0xf0] }
 0x1ab   :  { %2110 = vmatpush.bf16.msrb.mxu3 %v5766_v62  ;;  %2122 = vmatpush.bf16.msra.mxu0 %v5946_v25  ;;  %v5649_v62 = vld [vmem:[#allocation2 + $0x2e0] sm:$0xf]  ;;  %v5829_v25 = vld [vmem:[#allocation2 + $0x448] sm:$0xf] }
 0x1ac   :  { %2085 = vmatmul.bf16.vlgmr.msrb.gmra.mxu1 %v8157_v35  ;;  %v5650_v27 = vor.u32 %v7314_v20, %v5649_v62  ;;  %v5830_v42 = vor.u32 %v7359_v26, %v5829_v25  ;;  %v7399_v62 = vld [vmem:[#allocation2 + $0x598] sm:$0xf0]  ;;  %v7389_v25 = vld [vmem:[#allocation2 + $0x548] sm:$0xf0] }
 0x1ad   :  { %2129 = vmatpush.bf16.msra.mxu1 %v5430_v15  ;;  %2098 = vmatmul.bf16.vlgmr.msrb.gmra.mxu2 %v8161_v3  ;;  %v5670_v15 = vor.u32 %v7319_v4, %v5669_v14 }
 0x1ae   :  { %2142 = vmatpush.bf16.msra.mxu2 %v5590_v22  ;;  %2111 = vmatmul.bf16.vlgmr.msrb.gmra.mxu3 %v8168_v18  ;;  %v5309_v22 = vld [vmem:[#allocation2 + $0x38] sm:$0xf] }
 0x1af   :  { %2155 = vmatpush.bf16.msra.mxu3 %v5750_v1  ;;  %2123 = vmatpush.bf16.msra.mxu0 %v5926_v40  ;;  %v5850_v1 = vor.u32 %v7364_v13, %v5849_v0  ;;  %v1917_v31 = vpop.f32.mrf.mxu0  ;;  %v6009_v13 = vld [vmem:[#allocation2 + $0x5b0] sm:$0xf] }
 0x1b0   :  { %v1891_v6 = vpop.f32.mrf.mxu2 }
 0x1b1   :  { %2130 = vmatpush.bf16.msra.mxu1 %v5410_v28  ;;  %v5469_v28 = vld [vmem:[#allocation2 + $0x178] sm:$0xf]  ;;  %v1892_v36 = vadd.f32 %v1891_v6, %v1878_v19  ;;  %v1904_v33 = vpop.f32.mrf.mxu3  ;;  %v1880_v40 = vpop.f32.mrf.mxu1  ;;  %v7344_v19 = vld [vmem:[#allocation2 + $0x3e0] sm:$0xf0] }
 0x1b2   :  { %2143 = vmatpush.bf16.msra.mxu2 %v5570_v34  ;;  %2124 = vmatmul.bf16.vlgmr.msra.gmra.mxu0 %v8173_v29  ;;  %v7309_v34 = vld [vmem:[#allocation2 + $0x2c8] sm:$0xf0] }
 0x1b3   :  { %2156 = vmatpush.bf16.msra.mxu3 %v5730_v37  ;;  %2168 = vmatpush.bf16.msrb.mxu0 %v5910_v46  ;;  %v5310_v37 = vor.u32 %v7229_v23, %v5309_v22  ;;  %v1905_v44 = vadd.f32 %v1904_v33, %v1892_v36  ;;  %v5809_v46 = vld [vmem:[#allocation2 + $0x420] sm:$0xf]  ;;  %v5630_v49 = vor.u32 %v7309_v34, %v5629_v32  ;;  %v7394_v22 = vld [vmem:[#allocation2 + $0x570] sm:$0xf0]  ;;  %v5929_v34 = vld [vmem:[#allocation2 + $0x510] sm:$0xf] }
 0x1b4   :  { %v7384_v36 = vld [vmem:[#allocation2 + $0x520] sm:$0xf0] }
 0x1b5   :  { %2131 = vmatpush.bf16.msra.mxu1 %v5390_v9  ;;  %v5470_v9 = vor.u32 %v7269_v30, %v5469_v28  ;;  %v1918_v55 = vadd.f32 %v1917_v31, %v1905_v44 }
 0x1b6   :  { %2144 = vmatpush.bf16.msra.mxu2 %v5550_v48  ;;  %v7419_v48 = vld [vmem:[#allocation2 + $0x638] sm:$0xf0] }
 0x1b7   :  { %2157 = vmatpush.bf16.msra.mxu3 %v5710_v51  ;;  %2169 = vmatpush.bf16.msrb.mxu0 %v5890_v59  ;;  %v7264_v51 = vld [vmem:[#allocation2 + $0x160] sm:$0xf0]  ;;  %v6070_v58 = vor.u32 %v7419_v48, %v6069_v43  ;;  %v1919_v7 = vpop.f32.mrf.mxu0 }
 0x1b8   :  { %v5450_v59 = vor.u32 %v7264_v51, %v5449_v50  ;;  %v1893_v5 = vpop.f32.mrf.mxu2 }
 0x1b9   :  { %2132 = vmatpush.bf16.msra.mxu1 %v5370_v57  ;;  %v5810_v57 = vor.u32 %v7354_v47, %v5809_v46  ;;  %v1906_v14 = vpop.f32.mrf.mxu3 }
 0x1ba   :  { %2145 = vmatpush.bf16.msra.mxu2 %v5530_v41  ;;  %v7349_v41 = vld [vmem:[#allocation2 + $0x408] sm:$0xf0] }
 0x1bb   :  { %2158 = vmatpush.bf16.msra.mxu3 %v5690_v2  ;;  %2170 = vmatpush.bf16.msrb.mxu0 %v5870_v11  ;;  %v5610_v2 = vor.u32 %v7304_v53, %v5609_v52  ;;  %v5790_v4 = vor.u32 %v7349_v41, %v5789_v60  ;;  %v6029_v11 = vld [vmem:[#allocation2 + $0x5d8] sm:$0xf] }
 0x1bc   :  { %v6030_v0 = vor.u32 %v7409_v12, %v6029_v11 }
 0x1bd   :  { %2133 = vmatpush.bf16.msra.mxu1 %v5350_v10  ;;  %v6050_v10 = vor.u32 %v7414_v63, %v6049_v45 }
 0x1be   :  { %2146 = vmatpush.bf16.msra.mxu2 %v5510_v54  ;;  %v5770_v54 = vor.u32 %v7344_v19, %v5769_v61 }
 0x1bf   :  { %2159 = vmatpush.bf16.msra.mxu3 %v5670_v15  ;;  %2171 = vmatpush.bf16.msrb.mxu0 %v5850_v1  ;;  %v7404_v15 = vld [vmem:[#allocation2 + $0x5c0] sm:$0xf0] }
 0x1c0   :  { %v6010_v16 = vor.u32 %v7404_v15, %v6009_v13 }
 0x1c1   :  { %2134 = vmatpush.bf16.msra.mxu1 %v5330_v21 }
 0x1c2   :  { %2147 = vmatpush.bf16.msra.mxu2 %v5490_v24  ;;  %v5949_v24 = vld [vmem:[#allocation2 + $0x538] sm:$0xf] }
 0x1c3   :  { %2160 = vmatpush.bf16.msra.mxu3 %v5650_v27  ;;  %2172 = vmatpush.bf16.msrb.mxu0 %v5830_v42 }
 0x1c5   :  { %2135 = vmatpush.bf16.msra.mxu1 %v5310_v37  ;;  %v5930_v37 = vor.u32 %v7384_v36, %v5929_v34 }
 0x1c6   :  { %2148 = vmatpush.bf16.msra.mxu2 %v5470_v9 }
 0x1c7   :  { %2161 = vmatpush.bf16.msra.mxu3 %v5630_v49  ;;  %2173 = vmatpush.bf16.msrb.mxu0 %v5810_v57 }
 0x1c9   :  { %2136 = vmatpush.bf16.msra.mxu1 %v5290_v56  ;;  %v1930_v20 = vpop.f32.mrf.mxu1 }
 0x1ca   :  { %2149 = vmatpush.bf16.msra.mxu2 %v5450_v59  ;;  %v8195_v21 = vadd.f32 %v1930_v20, %v1918_v55 }
 0x1cb   :  { %2162 = vmatpush.bf16.msra.mxu3 %v5610_v2  ;;  %2174 = vmatpush.bf16.msrb.mxu0 %v5790_v4 }
 0x1cc   :  { %2137 = vmatmul.bf16.vlgmr.msra.gmra.mxu1 %v8153_v8  ;;  %v5990_v8 = vor.u32 %v7399_v62, %v5989_v17  ;;  %v2232_v23 = vmul.f32 %v8195_v21, %v8195_v21 }
 0x1cd   :  { %2181 = vmatpush.bf16.msrb.mxu1 %v6070_v58  ;;  %2150 = vmatmul.bf16.vlgmr.msra.gmra.mxu2 %v8157_v35  ;;  %v5969_v35 = vld [vmem:[#allocation2 + $0x560] sm:$0xf] }
 0x1ce   :  { %2163 = vmatmul.bf16.vlgmr.msra.gmra.mxu3 %v8161_v3  ;;  %v5970_v1 = vor.u32 %v7394_v22, %v5969_v35  ;;  %v2202_v3 = vrot.slane %v8195_v21, 4  ;;  %v2237_v32 = vrot.slane %v2232_v23, 4 }
 0x1cf   :  { %2175 = vmatpush.bf16.msrb.mxu0 %v5770_v54  ;;  %v1969_v6 = vpop.f32.mrf.mxu0 }
 0x1d0   :  { %v1943_v26 = vpop.f32.mrf.mxu2  ;;  %v2203_v31 = vadd.f32 %v2202_v3, %v8195_v21  ;;  %v2238_v39 = vadd.f32 %v2237_v32, %v2232_v23 }
 0x1d1   :  { %2182 = vmatpush.bf16.msrb.mxu1 %v6050_v10  ;;  %v1932_v27 = vpop.f32.mrf.mxu1  ;;  %v1956_v28 = vpop.f32.mrf.mxu3 }
 0x1d2   :  { %2176 = vmatmul.bf16.vlgmr.msrb.gmra.mxu0 %v8168_v18  ;;  %v5950_v18 = vor.u32 %v7389_v25, %v5949_v24  ;;  %v1957_v30 = vadd.f32 %v1956_v28, %v1943_v26  ;;  %v2204_v38 = vrot.slane %v2203_v31, 2  ;;  %v2239_v44 = vrot.slane %v2238_v39, 2 }
 0x1d4   :  { %v1970_v33 = vadd.f32 %v1969_v6, %v1957_v30  ;;  %v2205_v9 = vadd.f32 %v2204_v38, %v2203_v31  ;;  %v2240_v47 = vadd.f32 %v2239_v44, %v2238_v39 }
 0x1d5   :  { %2183 = vmatpush.bf16.msrb.mxu1 %v6030_v0 }
 0x1d6   :  { %v2206_v46 = vrot.slane %v2205_v9, 1  ;;  %v2241_v49 = vrot.slane %v2240_v47, 1 }
 0x1d7   :  { %v1971_v43 = vpop.f32.mrf.mxu0 }
 0x1d8   :  { %v1945_v40 = vpop.f32.mrf.mxu2  ;;  %v2207_v48 = vadd.f32 %v2206_v46, %v2205_v9  ;;  %v2242_v51 = vadd.f32 %v2241_v49, %v2240_v47 }
 0x1d9   :  { %2184 = vmatpush.bf16.msrb.mxu1 %v6010_v16  ;;  %v1958_v42 = vpop.f32.mrf.mxu3 }
 0x1da   :  { %v8202_v52 = vmul.f32 0.125, %v2207_v48  ;;  %v2272_v55 = vmul.f32 0.125, %v2242_v51 }
 0x1dc   :  { %v2277_v56 = vmul.f32 %v8202_v52, %v8202_v52 }
 0x1dd   :  { %2185 = vmatpush.bf16.msrb.mxu1 %v5990_v8 }
 0x1de   :  { %v2282_v41 = vsub.f32 %v2272_v55, %v2277_v56 }
 0x1e0   :  { %v2287_v14 = vmax.f32 %v2282_v41, 0.0 }
 0x1e1   :  { %2186 = vmatpush.bf16.msrb.mxu1 %v5970_v1 }
 0x1e2   :  { %v2292_v54 = vadd.f32 1e-05, %v2287_v14 }
 0x1e4   :  { %7738 = vrsqrt.f32 %v2292_v54  ;;  %vm2303_vm6 = vweird.f32 %v2292_v54 }
 0x1e5   :  { %2187 = vmatpush.bf16.msrb.mxu1 %v5950_v18 }
 0x1e9   :  { %2188 = vmatpush.bf16.msrb.mxu1 %v5930_v37  ;;  %v1982_v50 = vpop.f32.mrf.mxu1 }
 0x1ea   :  { %v1983_v53 = vadd.f32 %v1982_v50, %v1970_v33  ;;  %v7739_v1 = vpop.eup %7738 }
 0x1eb   :  { %v2298_v24 = vmul.f32 %v7739_v1, %v2292_v54  ;;  %vm2304_vm4 = vweird.f32 %v7739_v1 }
 0x1ec   :  { %2189 = vmatmul.bf16.vlgmr.msrb.gmra.mxu1 %v8173_v29  ;;  %vm2305_vm7 = vmor %vm2303_vm6, %vm2304_vm4 }
 0x1ed   :  { %v2299_v27 = vmul.f32 %v7739_v1, %v2298_v24 }
 0x1ef   :  { %v2021_v29 = vpop.f32.mrf.mxu0  ;;  %v2300_v32 = vmul.f32 0.5, %v2299_v27 }
 0x1f0   :  { %v1995_v57 = vpop.f32.mrf.mxu2 }
 0x1f1   :  { %v8206_v58 = vadd.f32 %v1995_v57, %v1983_v53  ;;  %v2008_v59 = vpop.f32.mrf.mxu3  ;;  %v1984_v60 = vpop.f32.mrf.mxu1  ;;  %v2301_v40 = vsub.f32 1.5, %v2300_v32 }
 0x1f2   :  { %v2022_v2 = vadd.f32 %v2021_v29, %v2008_v59 }
 0x1f3   :  { %v2208_v45 = vrot.slane %v8206_v58, 4  ;;  %v2233_v63 = vmul.f32 %v8206_v58, %v8206_v58  ;;  %v2302_v51 = vmul.f32 %v7739_v1, %v2301_v40 }
 0x1f5   :  { %v2209_v5 = vadd.f32 %v2208_v45, %v8206_v58  ;;  %v2243_v7 = vrot.slane %v2233_v63, 4  ;;  %v2306_v29 = vsel %vm2305_vm7, %v7739_v1, %v2302_v51 }
 0x1f7   :  { %v2210_v4 = vrot.slane %v2209_v5, 2  ;;  %v2244_v10 = vadd.f32 %v2243_v7, %v2233_v63  ;;  %v2023_v0 = vpop.f32.mrf.mxu0 }
 0x1f8   :  { %v1997_v61 = vpop.f32.mrf.mxu2 }
 0x1f9   :  { %v2211_v19 = vadd.f32 %v2210_v4, %v2209_v5  ;;  %v2245_v11 = vrot.slane %v2244_v10, 2  ;;  %v2010_v12 = vpop.f32.mrf.mxu3 }
 0x1fb   :  { %v2212_v13 = vrot.slane %v2211_v19, 1  ;;  %v2246_v15 = vadd.f32 %v2245_v11, %v2244_v10 }
 0x1fd   :  { %v2213_v16 = vadd.f32 %v2212_v13, %v2211_v19  ;;  %v2247_v17 = vrot.slane %v2246_v15, 1 }
 0x1ff   :  { %v2248_v62 = vadd.f32 %v2247_v17, %v2246_v15  ;;  %v8212_v20 = vmul.f32 0.125, %v2213_v16 }
 0x201   :  { %v2273_v8 = vmul.f32 0.125, %v2248_v62  ;;  %v2278_v35 = vmul.f32 %v8212_v20, %v8212_v20 }
 0x203   :  { %v2283_v22 = vsub.f32 %v2273_v8, %v2278_v35 }
 0x205   :  { %v2288_v3 = vmax.f32 %v2283_v22, 0.0 }
 0x207   :  { %v2293_v25 = vadd.f32 1e-05, %v2288_v3 }
 0x209   :  { %v2034_v23 = vpop.f32.mrf.mxu1  ;;  %7740 = vrsqrt.f32 %v2293_v25  ;;  %vm2313_vm14 = vweird.f32 %v2293_v25 }
 0x20a   :  { %v2035_v26 = vadd.f32 %v2034_v23, %v2022_v2 }
 0x20f   :  { %v2073_v6 = vpop.f32.mrf.mxu0  ;;  %v7741_v31 = vpop.eup %7740 }
 0x210   :  { %v2047_v28 = vpop.f32.mrf.mxu2  ;;  %v2308_v36 = vmul.f32 %v7741_v31, %v2293_v25  ;;  %vm2314_vm0 = vweird.f32 %v7741_v31 }
 0x211   :  { %v2048_v18 = vadd.f32 %v2047_v28, %v2035_v26  ;;  %v2060_v30 = vpop.f32.mrf.mxu3  ;;  %v2036_v34 = vpop.f32.mrf.mxu1  ;;  %vm2315_vm5 = vmor %vm2313_vm14, %vm2314_vm0 }
 0x212   :  { %v2309_v37 = vmul.f32 %v7741_v31, %v2308_v36 }
 0x213   :  { %v8216_v33 = vadd.f32 %v2060_v30, %v2048_v18 }
 0x214   :  { %v2310_v42 = vmul.f32 0.5, %v2309_v37 }
 0x215   :  { %v2214_v38 = vrot.slane %v8216_v33, 4  ;;  %v2234_v39 = vmul.f32 %v8216_v33, %v8216_v33 }
 0x216   :  { %v2311_v46 = vsub.f32 1.5, %v2310_v42 }
 0x217   :  { %v2215_v43 = vadd.f32 %v2214_v38, %v8216_v33  ;;  %v2249_v9 = vrot.slane %v2234_v39, 4  ;;  %v2075_v50 = vpop.f32.mrf.mxu0 }
 0x218   :  { %v2049_v44 = vpop.f32.mrf.mxu2  ;;  %v2312_v53 = vmul.f32 %v7741_v31, %v2311_v46 }
 0x219   :  { %v2216_v47 = vrot.slane %v2215_v43, 2  ;;  %v2250_v48 = vadd.f32 %v2249_v9, %v2234_v39  ;;  %v2062_v49 = vpop.f32.mrf.mxu3 }
 0x21a   :  { %v2316_v57 = vsel %vm2315_vm5, %v7741_v31, %v2312_v53 }
 0x21b   :  { %v2217_v55 = vadd.f32 %v2216_v47, %v2215_v43  ;;  %v2251_v56 = vrot.slane %v2250_v48, 2  ;;  %v2352_v41 = vrot.slane %v2316_v57, 7 }
 0x21d   :  { %v2218_v59 = vrot.slane %v2217_v55, 1  ;;  %v2252_v60 = vadd.f32 %v2251_v56, %v2250_v48  ;;  %v2356_v2 = vsel %vm434_vm15, %v2306_v29, %v2352_v41 }
 0x21f   :  { %v2219_v45 = vadd.f32 %v2218_v59, %v2217_v55  ;;  %v2253_v63 = vrot.slane %v2252_v60, 1 }
 0x221   :  { %v2254_v5 = vadd.f32 %v2253_v63, %v2252_v60  ;;  %v8223_v7 = vmul.f32 0.125, %v2219_v45 }
 0x223   :  { %v2274_v14 = vmul.f32 0.125, %v2254_v5  ;;  %v2279_v4 = vmul.f32 %v8223_v7, %v8223_v7 }
 0x225   :  { %v2284_v10 = vsub.f32 %v2274_v14, %v2279_v4 }
 0x227   :  { %v2289_v61 = vmax.f32 %v2284_v10, 0.0 }
 0x229   :  { %v2086_v19 = vpop.f32.mrf.mxu1  ;;  %v2294_v11 = vadd.f32 1e-05, %v2289_v61 }
 0x22a   :  { %v2087_v13 = vadd.f32 %v2086_v19, %v2073_v6 }
 0x22b   :  { %7742 = vrsqrt.f32 %v2294_v11  ;;  %vm2323_vm8 = vweird.f32 %v2294_v11 }
 0x22f   :  { %v2125_v0 = vpop.f32.mrf.mxu0 }
 0x230   :  { %v2099_v12 = vpop.f32.mrf.mxu2 }
 0x231   :  { %v2112_v54 = vpop.f32.mrf.mxu3  ;;  %v2088_v15 = vpop.f32.mrf.mxu1  ;;  %v2100_v62 = vadd.f32 %v2099_v12, %v2087_v13 }
 0x232   :  { %v7743_v16 = vpop.eup %7742 }
 0x233   :  { %v2318_v17 = vmul.f32 %v7743_v16, %v2294_v11  ;;  %vm2324_vm9 = vweird.f32 %v7743_v16  ;;  %v2113_v23 = vadd.f32 %v2112_v54, %v2100_v62 }
 0x234   :  { %vm2325_vm10 = vmor %vm2323_vm8, %vm2324_vm9 }
 0x235   :  { %v2319_v8 = vmul.f32 %v7743_v16, %v2318_v17  ;;  %v8227_v26 = vadd.f32 %v2125_v0, %v2113_v23 }
 0x237   :  { %v2320_v22 = vmul.f32 0.5, %v2319_v8  ;;  %v2127_v3 = vpop.f32.mrf.mxu0  ;;  %v2220_v18 = vrot.slane %v8227_v26, 4  ;;  %v2235_v30 = vmul.f32 %v8227_v26, %v8227_v26 }
 0x238   :  { %v2101_v35 = vpop.f32.mrf.mxu2 }
 0x239   :  { %v2114_v1 = vpop.f32.mrf.mxu3  ;;  %v2321_v24 = vsub.f32 1.5, %v2320_v22  ;;  %v2221_v31 = vadd.f32 %v2220_v18, %v8227_v26  ;;  %v2255_v32 = vrot.slane %v2235_v30, 4 }
 0x23b   :  { %v2322_v25 = vmul.f32 %v7743_v16, %v2321_v24  ;;  %v2222_v36 = vrot.slane %v2221_v31, 2  ;;  %v2256_v37 = vadd.f32 %v2255_v32, %v2235_v30 }
 0x23d   :  { %v2326_v27 = vsel %vm2325_vm10, %v7743_v16, %v2322_v25  ;;  %v2223_v39 = vadd.f32 %v2222_v36, %v2221_v31  ;;  %v2257_v40 = vrot.slane %v2256_v37, 2 }
 0x23e   :  { %v2353_v28 = vrot.slane %v2326_v27, 6 }
 0x23f   :  { %v2224_v44 = vrot.slane %v2223_v39, 1  ;;  %v2258_v46 = vadd.f32 %v2257_v40, %v2256_v37  ;;  %v2196_v40 = vld [vmem:[#allocation10 + $0x2] ss:$8 sm:$0x10] }
 0x240   :  { %v8236_v6 = vsel %vm436_vm1, %v2356_v2, %v2353_v28 }
 0x241   :  { %v2225_v48 = vadd.f32 %v2224_v44, %v2223_v39  ;;  %v2259_v49 = vrot.slane %v2258_v46, 1  ;;  %v2195_v39 = vld [vmem:[#allocation10 + $0x2] ss:$8 sm:$0xf] }
 0x242   :  { %v2197_v44 = vor.u32 %v2196_v40, %v2195_v39 }
 0x243   :  { %v2260_v53 = vadd.f32 %v2259_v49, %v2258_v46  ;;  %v8239_v55 = vmul.f32 0.125, %v2225_v48 }
 0x245   :  { %v2275_v57 = vmul.f32 0.125, %v2260_v53  ;;  %v2280_v59 = vmul.f32 %v8239_v55, %v8239_v55 }
 0x247   :  { %v2285_v41 = vsub.f32 %v2275_v57, %v2280_v59  ;;  %v2199_v59 = vld [vmem:[#allocation10 + $0x3] ss:$8 sm:$0xf] }
 0x249   :  { %v2138_v34 = vpop.f32.mrf.mxu1  ;;  %v2290_v2 = vmax.f32 %v2285_v41, 0.0 }
 0x24b   :  { %v2295_v61 = vadd.f32 1e-05, %v2290_v2 }
 0x24d   :  { %7744 = vrsqrt.f32 %v2295_v61  ;;  %vm2333_vm11 = vweird.f32 %v2295_v61 }
 0x24f   :  { %v2177_v9 = vpop.f32.mrf.mxu0 }
 0x250   :  { %v2151_v38 = vpop.f32.mrf.mxu2 }
 0x251   :  { %v2140_v42 = vpop.f32.mrf.mxu1  ;;  %v2164_v43 = vpop.f32.mrf.mxu3  ;;  %v2152_v56 = vadd.f32 %v2151_v38, %v2138_v34 }
 0x253   :  { %v2165_v60 = vadd.f32 %v2164_v43, %v2152_v56  ;;  %v7745_v35 = vpop.eup %7744 }
 0x254   :  { %v2328_v23 = vmul.f32 %v7745_v35, %v2295_v61  ;;  %vm2334_vm12 = vweird.f32 %v7745_v35 }
 0x255   :  { %v2178_v29 = vadd.f32 %v2177_v9, %v2165_v60  ;;  %vm2335_vm13 = vmor %vm2333_vm11, %vm2334_vm12  ;;  %v2200_v60 = vld [vmem:[#allocation10 + $0x3] ss:$8 sm:$0x10] }
 0x256   :  { %v2329_v27 = vmul.f32 %v7745_v35, %v2328_v23 }
 0x257   :  { %v2179_v51 = vpop.f32.mrf.mxu0 }
 0x258   :  { %v2153_v47 = vpop.f32.mrf.mxu2  ;;  %v2330_v28 = vmul.f32 0.5, %v2329_v27 }
 0x259   :  { %v2166_v50 = vpop.f32.mrf.mxu3 }
 0x25a   :  { %v2331_v30 = vsub.f32 1.5, %v2330_v28 }
 0x25c   :  { %v2332_v34 = vmul.f32 %v7745_v35, %v2331_v30 }
 0x25e   :  { %v2336_v38 = vsel %vm2335_vm13, %v7745_v35, %v2332_v34 }
 0x25f   :  { %v2354_v9 = vrot.slane %v2336_v38, 5 }
 0x269   :  { %v2190_v45 = vpop.f32.mrf.mxu1 }
 0x26a   :  { %v8243_v63 = vadd.f32 %v2190_v45, %v2178_v29 }
 0x26c   :  { %v2226_v5 = vrot.slane %v8243_v63, 4  ;;  %v2236_v14 = vmul.f32 %v8243_v63, %v8243_v63 }
 0x26e   :  { %v2227_v4 = vadd.f32 %v2226_v5, %v8243_v63  ;;  %v2261_v10 = vrot.slane %v2236_v14, 4 }
 0x270   :  { %v2228_v19 = vrot.slane %v2227_v4, 2  ;;  %v2262_v11 = vadd.f32 %v2261_v10, %v2236_v14 }
 0x271   :  { %v2192_v12 = vpop.f32.mrf.mxu1 }
 0x272   :  { %v2229_v54 = vadd.f32 %v2228_v19, %v2227_v4  ;;  %v2263_v0 = vrot.slane %v2262_v11, 2  ;;  %v2201_v12 = vor.u32 %v2200_v60, %v2199_v59 }
 0x274   :  { %v2230_v13 = vrot.slane %v2229_v54, 1  ;;  %v2264_v15 = vadd.f32 %v2263_v0, %v2262_v11 }
 0x276   :  { %v2231_v16 = vadd.f32 %v2230_v13, %v2229_v54  ;;  %v2265_v17 = vrot.slane %v2264_v15, 1 }
 0x278   :  { %v2266_v62 = vadd.f32 %v2265_v17, %v2264_v15  ;;  %v2271_v8 = vmul.f32 0.125, %v2231_v16 }
 0x27a   :  { %v2276_v22 = vmul.f32 0.125, %v2266_v62  ;;  %v2281_v1 = vmul.f32 %v2271_v8, %v2271_v8 }
 0x27c   :  { %v2286_v3 = vsub.f32 %v2276_v22, %v2281_v1 }
 0x27e   :  { %v2291_v24 = vmax.f32 %v2286_v3, 0.0 }
 0x280   :  { %v2296_v25 = vadd.f32 1e-05, %v2291_v24 }
 0x282   :  { %7746 = vrsqrt.f32 %v2296_v25  ;;  %vm2343_vm0 = vweird.f32 %v2296_v25 }
 0x288   :  { %v7747_v18 = vpop.eup %7746 }
 0x289   :  { %v2338_v31 = vmul.f32 %v7747_v18, %v2296_v25  ;;  %vm2344_vm14 = vweird.f32 %v7747_v18 }
 0x28a   :  { %vm2345_vm4 = vmor %vm2343_vm0, %vm2344_vm14 }
 0x28b   :  { %v2339_v32 = vmul.f32 %v7747_v18, %v2338_v31 }
 0x28d   :  { %v2340_v36 = vmul.f32 0.5, %v2339_v32 }
 0x28f   :  { %v2341_v37 = vsub.f32 1.5, %v2340_v36 }
 0x291   :  { %v2342_v42 = vmul.f32 %v7747_v18, %v2341_v37 }
 0x293   :  { %v2346_v43 = vsel %vm2345_vm4, %v7747_v18, %v2342_v42 }
 0x294   :  { %v2355_v46 = vrot.slane %v2346_v43, 4 }
 0x296   :  { %v2358_v47 = vsel %vm438_vm2, %v2354_v9, %v2355_v46 }
 0x297   :  { %v2359_v48 = vsel %vm440_vm3, %v8236_v6, %v2358_v47 }
 0x298   :  { %v2361_v49 = vmul.f32 %v2359_v48, %v2197_v44 }
 0x29a   :  { %v2363_v50 = vperm.slane %v2361_v49, 0  ;;  %v2364_v51 = vperm.slane %v2361_v49, 1  ;;  %v2365_v53 = vperm.slane %v2361_v49, 2  ;;  %v2366_v56 = vperm.slane %v2361_v49, 3 }
 0x29b   :  { %v2367_v57 = vperm.slane %v2361_v49, 4 }
 0x29c   :  { %v2373_v41 = vmul.f32 %v2363_v50, %v8202_v52  ;;  %v2374_v29 = vmul.f32 %v2364_v51, %v8212_v20  ;;  %v2375_v45 = vmul.f32 %v2365_v53, %v8223_v7  ;;  %v2376_v2 = vmul.f32 %v2366_v56, %v8239_v55 }
 0x29d   :  { %v2377_v5 = vmul.f32 %v2367_v57, %v2271_v8  ;;  %v2393_v14 = vmul.f32 %v2363_v50, %v8195_v21  ;;  %v2394_v6 = vmul.f32 %v2364_v51, %v8206_v58  ;;  %v2395_v4 = vmul.f32 %v2365_v53, %v8216_v33 }
 0x29e   :  { %v2383_v10 = vrot.slane %v2374_v29, 7  ;;  %v2384_v61 = vrot.slane %v2375_v45, 6  ;;  %v2385_v19 = vrot.slane %v2376_v2, 5  ;;  %v2396_v11 = vmul.f32 %v2366_v56, %v8227_v26 }
 0x29f   :  { %v2386_v52 = vrot.slane %v2377_v5, 4  ;;  %v2397_v15 = vmul.f32 %v2367_v57, %v8243_v63 }
 0x2a0   :  { %v2387_v20 = vsel %vm434_vm15, %v2373_v41, %v2383_v10 }
 0x2a1   :  { %v2388_v7 = vsel %vm436_vm1, %v2387_v20, %v2384_v61  ;;  %v2389_v55 = vsel %vm438_vm2, %v2385_v19, %v2386_v52 }
 0x2a2   :  { %v2390_v54 = vsel %vm440_vm3, %v2388_v7, %v2389_v55 }
 0x2a3   :  { %v2392_v21 = vsub.f32 %v2201_v12, %v2390_v54 }
 0x2a5   :  { %v2399_v0 = vperm.slane %v2392_v21, 0  ;;  %v2400_v58 = vperm.slane %v2392_v21, 1  ;;  %v2401_v13 = vperm.slane %v2392_v21, 2  ;;  %v2402_v33 = vperm.slane %v2392_v21, 3 }
 0x2a6   :  { %v2403_v16 = vperm.slane %v2392_v21, 4 }
 0x2a7   :  { %v8265_v17 = vadd.f32 %v2399_v0, %v2393_v14  ;;  %v8267_v26 = vadd.f32 %v2400_v58, %v2394_v6  ;;  %v8269_v62 = vadd.f32 %v2401_v13, %v2395_v4  ;;  %v8271_v8 = vadd.f32 %v2402_v33, %v2396_v11 }
 0x2a8   :  { %v8273_v35 = vadd.f32 %v2403_v16, %v2397_v15 }
 0x2a9   :  { %v2419_v22 = vmin.f32 %v8265_v17, 20.0  ;;  %v2420_v1 = vmin.f32 %v8267_v26, 20.0  ;;  %v2421_v3 = vmin.f32 %v8269_v62, 20.0  ;;  %v2422_v23 = vmin.f32 %v8271_v8, 20.0 }
 0x2aa   :  { %v2423_v63 = vmin.f32 %v8273_v35, 20.0  ;;  %vm2414_vm2 = vcmp.gt.f32.partialorder %v8265_v17, 20.0  ;;  %vm2415_vm3 = vcmp.gt.f32.partialorder %v8267_v26, 20.0  ;;  %vm2416_vm5 = vcmp.gt.f32.partialorder %v8269_v62, 20.0 }
 0x2ab   :  { %v2424_v24 = vmul.f32 1.442695, %v2419_v22  ;;  %v2426_v25 = vmul.f32 1.442695, %v2420_v1  ;;  %v2428_v27 = vmul.f32 1.442695, %v2421_v3 }
 0x2ac   :  { %v2430_v28 = vmul.f32 1.442695, %v2422_v23  ;;  %v2432_v18 = vmul.f32 1.442695, %v2423_v63  ;;  %vm2417_vm10 = vcmp.gt.f32.partialorder %v8271_v8, 20.0  ;;  %vm2418_vm12 = vcmp.gt.f32.partialorder %v8273_v35, 20.0 }
 0x2ad   :  { %7748 = vpow2.f32 %v2424_v24 }
 0x2ae   :  { %7750 = vpow2.f32 %v2426_v25 }
 0x2af   :  { %7752 = vpow2.f32 %v2428_v27 }
 0x2b0   :  { %7754 = vpow2.f32 %v2430_v28 }
 0x2b1   :  { %7756 = vpow2.f32 %v2432_v18 }
 0x2b3   :  { %v7749_v30 = vpop.eup %7748 }
 0x2b4   :  { %v7751_v31 = vpop.eup %7750  ;;  %v2434_v32 = vadd.f32 1.0, %v7749_v30  ;;  %v2437_v36 = vmul.f32 -0.5, %v7749_v30  ;;  %v2440_v46 = vand.u32 2147483647, %v7749_v30 }
 0x2b5   :  { %v7753_v34 = vpop.eup %7752  ;;  %v2443_v37 = vadd.f32 1.0, %v7751_v31  ;;  %v2446_v39 = vmul.f32 -0.5, %v7751_v31  ;;  %v2449_v49 = vand.u32 2147483647, %v7751_v31 }
 0x2b6   :  { %v7755_v38 = vpop.eup %7754  ;;  %7758 = vlog2.f32 %v2434_v32  ;;  %v2452_v40 = vadd.f32 1.0, %v7753_v34  ;;  %v2455_v43 = vmul.f32 -0.5, %v7753_v34  ;;  %v2438_v44 = vadd.f32 1.0, %v2437_v36 }
 0x2b7   :  { %v7757_v42 = vpop.eup %7756  ;;  %7760 = vlog2.f32 %v2443_v37  ;;  %v2461_v9 = vadd.f32 1.0, %v7755_v38  ;;  %v2464_v47 = vmul.f32 -0.5, %v7755_v38  ;;  %v2447_v48 = vadd.f32 1.0, %v2446_v39 }
 0x2b8   :  { %7762 = vlog2.f32 %v2452_v40  ;;  %v2470_v50 = vadd.f32 1.0, %v7757_v42  ;;  %v2456_v51 = vadd.f32 1.0, %v2455_v43  ;;  %v2473_v53 = vmul.f32 -0.5, %v7757_v42 }
 0x2b9   :  { %7764 = vlog2.f32 %v2461_v9  ;;  %v2458_v57 = vand.u32 2147483647, %v7753_v34  ;;  %v2439_v41 = vmul.f32 %v7749_v30, %v2438_v44  ;;  %vm8283_vm6 = vcmp.lt.f32.partialorder %v2440_v46, 0.0004427343 }
 0x2ba   :  { %7766 = vlog2.f32 %v2470_v50  ;;  %v2465_v45 = vadd.f32 1.0, %v2464_v47  ;;  %v2448_v14 = vmul.f32 %v7751_v31, %v2447_v48  ;;  %vm2450_vm7 = vcmp.lt.f32.partialorder %v2449_v49, 0.0004427343 }
 0x2bb   :  { %v2467_v6 = vand.u32 2147483647, %v7755_v38  ;;  %v2457_v61 = vmul.f32 %v7753_v34, %v2456_v51  ;;  %v2474_v19 = vadd.f32 1.0, %v2473_v53  ;;  %vm2459_vm8 = vcmp.lt.f32.partialorder %v2458_v57, 0.0004427343 }
 0x2bc   :  { %v7759_v56 = vpop.eup %7758  ;;  %v2476_v52 = vand.u32 2147483647, %v7757_v42  ;;  %v2466_v54 = vmul.f32 %v7755_v38, %v2465_v45 }
 0x2bd   :  { %v7761_v59 = vpop.eup %7760  ;;  %v2436_v60 = vmul.f32 0.6931472, %v7759_v56  ;;  %vm2468_vm9 = vcmp.lt.f32.partialorder %v2467_v6, 0.0004427343  ;;  %v2475_v15 = vmul.f32 %v7757_v42, %v2474_v19 }
 0x2be   :  { %v7763_v2 = vpop.eup %7762  ;;  %v2445_v5 = vmul.f32 0.6931472, %v7761_v59  ;;  %vm2477_vm11 = vcmp.lt.f32.partialorder %v2476_v52, 0.0004427343 }
 0x2bf   :  { %v2442_v4 = vsel %vm8283_vm6, %v2439_v41, %v2436_v60  ;;  %v2454_v10 = vmul.f32 0.6931472, %v7763_v2  ;;  %v7765_v11 = vpop.eup %7764 }
 0x2c0   :  { %v2451_v12 = vsel %vm2450_vm7, %v2448_v14, %v2445_v5  ;;  %v8292_v20 = vsel %vm2414_vm2, %v8265_v17, %v2442_v4  ;;  %v2463_v55 = vmul.f32 0.6931472, %v7765_v11  ;;  %v7767_v0 = vpop.eup %7766 }
 0x2c1   :  { %v2460_v7 = vsel %vm2459_vm8, %v2457_v61, %v2454_v10  ;;  %v8297_v21 = vsel %vm2415_vm3, %v8267_v26, %v2451_v12  ;;  %v2472_v33 = vmul.f32 0.6931472, %v7767_v0 }
 0x2c2   :  { %v8302_v58 = vsel %vm2416_vm5, %v8269_v62, %v2460_v7  ;;  %v2469_v13 = vsel %vm2468_vm9, %v2466_v54, %v2463_v55 }
 0x2c3   :  { %v8306_v16 = vsel %vm2417_vm10, %v8271_v8, %v2469_v13  ;;  %v2478_v17 = vsel %vm2477_vm11, %v2475_v15, %v2472_v33 }
 0x2c4   :  { %v8310_v26 = vsel %vm2418_vm12, %v8273_v35, %v2478_v17 }
 0x2c5   :  { %7960 = dma.done.wait [#allocation4 + $0x1], 35840 }
 0x2c6   :  { %7961 = vsyncadd [#allocation4 + $0x1], 4294931456  ;;  %v6269_v22 = vld [vmem:[#allocation3 + $0x188] sm:$0xf]  ;;  %v7472_v62 = vld [vmem:[#allocation3 + $0x1a0] sm:$0xf0] }
 0x2c7   :  { %v6493_v1 = vld [vmem:[#allocation3 + $0x348] sm:$0xf]  ;;  %v6270_v3 = vor.u32 %v7472_v62, %v6269_v22  ;;  %v7528_v23 = vld [vmem:[#allocation3 + $0x360] sm:$0xf0]  ;;  %v6241_v28 = vld [vmem:[#allocation3 + $0x150] sm:$0xf] }
 0x2c8   :  { %v6717_v63 = vld [vmem:[#allocation3 + $0x508] sm:$0xf]  ;;  %v7584_v24 = vld [vmem:[#allocation3 + $0x520] sm:$0xf0]  ;;  %v6494_v25 = vor.u32 %v7528_v23, %v6493_v1  ;;  %v7465_v8 = vld [vmem:[#allocation3 + $0x168] sm:$0xf0] }
 0x2c9   :  { %v6718_v27 = vor.u32 %v7584_v24, %v6717_v63  ;;  %v6465_v18 = vld [vmem:[#allocation3 + $0x310] sm:$0xf]  ;;  %4252 = vmatpush.bf16.msrb.mxu2 %v6270_v3  ;;  %v6242_v30 = vor.u32 %v7465_v8, %v6241_v28  ;;  %v7521_v31 = vld [vmem:[#allocation3 + $0x328] sm:$0xf0]  ;;  %v6213_v37 = vld [vmem:[#allocation3 + $0x118] sm:$0xf] }
 0x2ca   :  { %v6689_v32 = vld [vmem:[#allocation3 + $0x4d0] sm:$0xf]  ;;  %v7577_v35 = vld [vmem:[#allocation3 + $0x4e8] sm:$0xf0]  ;;  %4265 = vmatpush.bf16.msrb.mxu3 %v6494_v25  ;;  %v6466_v34 = vor.u32 %v7521_v31, %v6465_v18  ;;  %v7458_v38 = vld [vmem:[#allocation3 + $0x130] sm:$0xf0] }
 0x2cb   :  { %4278 = vmatpush.bf16.msra.mxu0 %v6718_v27  ;;  %v6690_v36 = vor.u32 %v7577_v35, %v6689_v32  ;;  %v6437_v39 = vld [vmem:[#allocation3 + $0x2d8] sm:$0xf]  ;;  %v7514_v40 = vld [vmem:[#allocation3 + $0x2f0] sm:$0xf0]  ;;  %v6214_v9 = vor.u32 %v7458_v38, %v6213_v37  ;;  %v6941_v44 = vld [vmem:[#allocation3 + $0x6c8] sm:$0xf] }
 0x2cc   :  { %v6661_v42 = vld [vmem:[#allocation3 + $0x498] sm:$0xf]  ;;  %v7570_v43 = vld [vmem:[#allocation3 + $0x4b0] sm:$0xf0]  ;;  %v7640_v46 = vld [vmem:[#allocation3 + $0x6e0] sm:$0xf0]  ;;  %v6438_v47 = vor.u32 %v7514_v40, %v6437_v39 }
 0x2cd   :  { %4253 = vmatpush.bf16.msrb.mxu2 %v6242_v30  ;;  %v6662_v48 = vor.u32 %v7570_v43, %v6661_v42  ;;  %v6185_v49 = vld [vmem:[#allocation3 + $0xe0] sm:$0xf]  ;;  %v7451_v50 = vld [vmem:[#allocation3 + $0xf8] sm:$0xf0]  ;;  %v6942_v53 = vor.u32 %v7640_v46, %v6941_v44  ;;  %v6913_v60 = vld [vmem:[#allocation3 + $0x690] sm:$0xf] }
 0x2ce   :  { %4266 = vmatpush.bf16.msrb.mxu3 %v6466_v34  ;;  %v6409_v51 = vld [vmem:[#allocation3 + $0x2a0] sm:$0xf]  ;;  %v7507_v56 = vld [vmem:[#allocation3 + $0x2b8] sm:$0xf0]  ;;  %v7633_v41 = vld [vmem:[#allocation3 + $0x6a8] sm:$0xf0]  ;;  %v6186_v29 = vor.u32 %v7451_v50, %v6185_v49 }
 0x2cf   :  { %4279 = vmatpush.bf16.msra.mxu0 %v6690_v36  ;;  %v6633_v57 = vld [vmem:[#allocation3 + $0x460] sm:$0xf]  ;;  %v7563_v59 = vld [vmem:[#allocation3 + $0x478] sm:$0xf0]  ;;  %4291 = vmatpush.bf16.msra.mxu1 %v6942_v53  ;;  %v6157_v45 = vld [vmem:[#allocation3 + $0xa8] sm:$0xf]  ;;  %v6914_v5 = vor.u32 %v7633_v41, %v6913_v60  ;;  %v6410_v14 = vor.u32 %v7507_v56, %v6409_v51 }
 0x2d0   :  { %v7444_v2 = vld [vmem:[#allocation3 + $0xc0] sm:$0xf0]  ;;  %v6634_v6 = vor.u32 %v7563_v59, %v6633_v57  ;;  %v6381_v4 = vld [vmem:[#allocation3 + $0x268] sm:$0xf]  ;;  %v6885_v61 = vld [vmem:[#allocation3 + $0x658] sm:$0xf] }
 0x2d1   :  { %4254 = vmatpush.bf16.msrb.mxu2 %v6214_v9  ;;  %v7500_v10 = vld [vmem:[#allocation3 + $0x280] sm:$0xf0]  ;;  %v6605_v19 = vld [vmem:[#allocation3 + $0x428] sm:$0xf]  ;;  %v7626_v12 = vld [vmem:[#allocation3 + $0x670] sm:$0xf0]  ;;  %v6158_v7 = vor.u32 %v7444_v2, %v6157_v45 }
 0x2d2   :  { %4267 = vmatpush.bf16.msrb.mxu3 %v6438_v47  ;;  %v7556_v11 = vld [vmem:[#allocation3 + $0x440] sm:$0xf0]  ;;  %v6886_v52 = vor.u32 %v7626_v12, %v6885_v61  ;;  %v6857_v55 = vld [vmem:[#allocation3 + $0x620] sm:$0xf]  ;;  %v7619_v54 = vld [vmem:[#allocation3 + $0x638] sm:$0xf0]  ;;  %v6382_v0 = vor.u32 %v7500_v10, %v6381_v4 }
 0x2d3   :  { %4280 = vmatpush.bf16.msra.mxu0 %v6662_v48  ;;  %4292 = vmatpush.bf16.msra.mxu1 %v6914_v5  ;;  %v6606_v13 = vor.u32 %v7556_v11, %v6605_v19  ;;  %v6129_v33 = vld [vmem:[#allocation3 + $0x70] sm:$0xf]  ;;  %v7437_v15 = vld [vmem:[#allocation3 + $0x88] sm:$0xf0]  ;;  %v6858_v3 = vor.u32 %v7619_v54, %v6857_v55  ;;  %v6829_v63 = vld [vmem:[#allocation3 + $0x5e8] sm:$0xf]  ;;  %v8318_v55 = vpack.c.bf16 %v8297_v21, %v8297_v21 }
 0x2d4   :  { %v6353_v17 = vld [vmem:[#allocation3 + $0x230] sm:$0xf]  ;;  %v7493_v22 = vld [vmem:[#allocation3 + $0x248] sm:$0xf0]  ;;  %v6130_v23 = vor.u32 %v7437_v15, %v6129_v33  ;;  %v7612_v24 = vld [vmem:[#allocation3 + $0x600] sm:$0xf0]  ;;  %v8322_v33 = vpack.c.bf16 %v8302_v58, %v8302_v58 }
 0x2d5   :  { %4255 = vmatpush.bf16.msrb.mxu2 %v6186_v29  ;;  %v6577_v62 = vld [vmem:[#allocation3 + $0x3f0] sm:$0xf]  ;;  %v7549_v1 = vld [vmem:[#allocation3 + $0x408] sm:$0xf0]  ;;  %v6354_v25 = vor.u32 %v7493_v22, %v6353_v17  ;;  %v6101_v28 = vld [vmem:[#allocation3 + $0x38] sm:$0xf]  ;;  %v6830_v34 = vor.u32 %v7612_v24, %v6829_v63 }
 0x2d6   :  { %4268 = vmatpush.bf16.msrb.mxu3 %v6410_v14  ;;  %v6578_v27 = vor.u32 %v7549_v1, %v6577_v62  ;;  %v7430_v8 = vld [vmem:[#allocation3 + $0x50] sm:$0xf0]  ;;  %v6325_v18 = vld [vmem:[#allocation3 + $0x1f8] sm:$0xf]  ;;  %v6073_v35 = vld [vmem:[#allocation3] sm:$0xf] }
 0x2d7   :  { %4281 = vmatpush.bf16.msra.mxu0 %v6634_v6  ;;  %4293 = vmatpush.bf16.msra.mxu1 %v6886_v52  ;;  %v7486_v30 = vld [vmem:[#allocation3 + $0x210] sm:$0xf0]  ;;  %v6549_v31 = vld [vmem:[#allocation3 + $0x3b8] sm:$0xf]  ;;  %v6102_v36 = vor.u32 %v7430_v8, %v6101_v28  ;;  %v7423_v37 = vld [vmem:[#allocation3 + $0x18] sm:$0xf0] }
 0x2d8   :  { %v7542_v32 = vld [vmem:[#allocation3 + $0x3d0] sm:$0xf0]  ;;  %v6801_v38 = vld [vmem:[#allocation3 + $0x5b0] sm:$0xf]  ;;  %v7605_v39 = vld [vmem:[#allocation3 + $0x5c8] sm:$0xf0]  ;;  %v6326_v40 = vor.u32 %v7486_v30, %v6325_v18  ;;  %v6074_v56 = vor.u32 %v7423_v37, %v6073_v35  ;;  %v8329_v18 = vpack.c.bf16 %v8306_v16, %v8306_v16 }
 0x2d9   :  { %4256 = vmatpush.bf16.msrb.mxu2 %v6158_v7  ;;  %v6550_v42 = vor.u32 %v7542_v32, %v6549_v31  ;;  %v6297_v43 = vld [vmem:[#allocation3 + $0x1c0] sm:$0xf]  ;;  %v7479_v9 = vld [vmem:[#allocation3 + $0x1d8] sm:$0xf0]  ;;  %v7165_v44 = vld [vmem:[#allocation3 + $0x888] sm:$0xf]  ;;  %v6802_v53 = vor.u32 %v7605_v39, %v6801_v38  ;;  %v8314_v7 = vpack.c.bf16 %v8292_v20, %v8292_v20 }
 0x2da   :  { %4269 = vmatpush.bf16.msrb.mxu3 %v6382_v0  ;;  %v7696_v46 = vld [vmem:[#allocation3 + $0x8a0] sm:$0xf0]  ;;  %v7469_v47 = vld [vmem:[#allocation3 + $0x18c] sm:$0xf]  ;;  %v6271_v48 = vld [vmem:[#allocation3 + $0x1a4] sm:$0xf0]  ;;  %v6298_v41 = vor.u32 %v7479_v9, %v6297_v43 }
 0x2db   :  { %4282 = vmatpush.bf16.msra.mxu0 %v6606_v13  ;;  %4294 = vmatpush.bf16.msra.mxu1 %v6858_v3  ;;  %v6521_v49 = vld [vmem:[#allocation3 + $0x380] sm:$0xf]  ;;  %v7535_v50 = vld [vmem:[#allocation3 + $0x398] sm:$0xf0]  ;;  %v7525_v51 = vld [vmem:[#allocation3 + $0x34c] sm:$0xf]  ;;  %v7166_v29 = vor.u32 %v7696_v46, %v7165_v44  ;;  %v6274_v45 = vor.u32 %v7469_v47, %v6271_v48 }
 0x2dc   :  { %v6495_v57 = vld [vmem:[#allocation3 + $0x364] sm:$0xf0]  ;;  %v6773_v59 = vld [vmem:[#allocation3 + $0x578] sm:$0xf]  ;;  %v7598_v60 = vld [vmem:[#allocation3 + $0x590] sm:$0xf0]  ;;  %v6522_v2 = vor.u32 %v7535_v50, %v6521_v49 }
 0x2dd   :  { %4257 = vmatpush.bf16.msrb.mxu2 %v6130_v23  ;;  %v7137_v5 = vld [vmem:[#allocation3 + $0x850] sm:$0xf]  ;;  %v7689_v14 = vld [vmem:[#allocation3 + $0x868] sm:$0xf0]  ;;  %v6498_v6 = vor.u32 %v7525_v51, %v6495_v57  ;;  %v7462_v4 = vld [vmem:[#allocation3 + $0x154] sm:$0xf]  ;;  %v6774_v19 = vor.u32 %v7598_v60, %v6773_v59 }
 0x2de   :  { %4270 = vmatpush.bf16.msrb.mxu3 %v6354_v25  ;;  %v6243_v10 = vld [vmem:[#allocation3 + $0x16c] sm:$0xf0]  ;;  %v7518_v61 = vld [vmem:[#allocation3 + $0x314] sm:$0xf]  ;;  %v6745_v12 = vld [vmem:[#allocation3 + $0x540] sm:$0xf]  ;;  %v7138_v54 = vor.u32 %v7689_v14, %v7137_v5 }
 0x2df   :  { %4283 = vmatpush.bf16.msra.mxu0 %v6578_v27  ;;  %4295 = vmatpush.bf16.msra.mxu1 %v6830_v34  ;;  %v6467_v11 = vld [vmem:[#allocation3 + $0x32c] sm:$0xf0]  ;;  %v7591_v52 = vld [vmem:[#allocation3 + $0x558] sm:$0xf0]  ;;  %v7581_v0 = vld [vmem:[#allocation3 + $0x50c] sm:$0xf]  ;;  %v6246_v15 = vor.u32 %v7462_v4, %v6243_v10 }
 0x2e0   :  { %v6719_v13 = vld [vmem:[#allocation3 + $0x524] sm:$0xf0]  ;;  %v7109_v17 = vld [vmem:[#allocation3 + $0x818] sm:$0xf]  ;;  %v7682_v22 = vld [vmem:[#allocation3 + $0x830] sm:$0xf0]  ;;  %v6470_v20 = vor.u32 %v7518_v61, %v6467_v11  ;;  %v6746_v1 = vor.u32 %v7591_v52, %v6745_v12 }
 0x2e1   :  { %4258 = vmatpush.bf16.msrb.mxu2 %v6102_v36  ;;  %v7455_v62 = vld [vmem:[#allocation3 + $0x11c] sm:$0xf]  ;;  %v6215_v21 = vld [vmem:[#allocation3 + $0x134] sm:$0xf0]  ;;  %v6722_v63 = vor.u32 %v7581_v0, %v6719_v13  ;;  %v7110_v58 = vor.u32 %v7682_v22, %v7109_v17  ;;  %v7574_v24 = vld [vmem:[#allocation3 + $0x4d4] sm:$0xf] }
 0x2e2   :  { %4271 = vmatpush.bf16.msrb.mxu3 %v6326_v40  ;;  %v7511_v3 = vld [vmem:[#allocation3 + $0x2dc] sm:$0xf]  ;;  %v6439_v23 = vld [vmem:[#allocation3 + $0x2f4] sm:$0xf0]  ;;  %v6691_v25 = vld [vmem:[#allocation3 + $0x4ec] sm:$0xf0]  ;;  %v6218_v27 = vor.u32 %v7455_v62, %v6215_v21 }
 0x2e3   :  { %4284 = vmatpush.bf16.msra.mxu0 %v6550_v42  ;;  %4296 = vmatpush.bf16.msra.mxu1 %v6802_v53  ;;  %v7081_v28 = vld [vmem:[#allocation3 + $0x7e0] sm:$0xf]  ;;  %v7675_v8 = vld [vmem:[#allocation3 + $0x7f8] sm:$0xf0]  ;;  %v6442_v30 = vor.u32 %v7511_v3, %v6439_v23  ;;  %v7448_v31 = vld [vmem:[#allocation3 + $0xe4] sm:$0xf]  ;;  %v6694_v36 = vor.u32 %v7574_v24, %v6691_v25 }
 0x2e4   :  { %v6187_v32 = vld [vmem:[#allocation3 + $0xfc] sm:$0xf0]  ;;  %v7504_v35 = vld [vmem:[#allocation3 + $0x2a4] sm:$0xf]  ;;  %v7082_v37 = vor.u32 %v7675_v8, %v7081_v28  ;;  %v7567_v38 = vld [vmem:[#allocation3 + $0x49c] sm:$0xf] }
 0x2e5   :  { %4259 = vmatpush.bf16.msrb.mxu2 %v6074_v56  ;;  %v6411_v34 = vld [vmem:[#allocation3 + $0x2bc] sm:$0xf0]  ;;  %v6663_v39 = vld [vmem:[#allocation3 + $0x4b4] sm:$0xf0]  ;;  %v6190_v40 = vor.u32 %v7448_v31, %v6187_v32  ;;  %v7053_v42 = vld [vmem:[#allocation3 + $0x7a8] sm:$0xf] }
 0x2e6   :  { %4272 = vmatpush.bf16.msrb.mxu3 %v6298_v41  ;;  %v7668_v43 = vld [vmem:[#allocation3 + $0x7c0] sm:$0xf0]  ;;  %v6414_v16 = vor.u32 %v7504_v35, %v6411_v34  ;;  %v7441_v9 = vld [vmem:[#allocation3 + $0xac] sm:$0xf]  ;;  %v6159_v44 = vld [vmem:[#allocation3 + $0xc4] sm:$0xf0]  ;;  %v6666_v48 = vor.u32 %v7567_v38, %v6663_v39 }
 0x2e7   :  { %4285 = vmatpush.bf16.msra.mxu0 %v6522_v2  ;;  %4297 = vmatpush.bf16.msra.mxu1 %v6774_v19  ;;  %v7497_v46 = vld [vmem:[#allocation3 + $0x26c] sm:$0xf]  ;;  %v6383_v47 = vld [vmem:[#allocation3 + $0x284] sm:$0xf0]  ;;  %v7054_v49 = vor.u32 %v7668_v43, %v7053_v42  ;;  %v7560_v50 = vld [vmem:[#allocation3 + $0x464] sm:$0xf]  ;;  %v6162_v53 = vor.u32 %v7441_v9, %v6159_v44  ;;  %v8334_v42 = vpack.c.bf16 %v8310_v26, %v8310_v26 }
 0x2e8   :  { %4260 = vmatmul.bf16.vlgmr.msrb.gmra.mxu2 %v8314_v7  ;;  %v6635_v51 = vld [vmem:[#allocation3 + $0x47c] sm:$0xf0]  ;;  %v7025_v56 = vld [vmem:[#allocation3 + $0x770] sm:$0xf]  ;;  %v7661_v57 = vld [vmem:[#allocation3 + $0x788] sm:$0xf0]  ;;  %v6386_v59 = vor.u32 %v7497_v46, %v6383_v47 }
 0x2e9   :  { %4304 = vmatpush.bf16.msra.mxu2 %v7166_v29  ;;  %4273 = vmatmul.bf16.vlgmr.msrb.gmra.mxu3 %v8318_v55  ;;  %v7434_v60 = vld [vmem:[#allocation3 + $0x74] sm:$0xf]  ;;  %v6131_v41 = vld [vmem:[#allocation3 + $0x8c] sm:$0xf0]  ;;  %v6638_v2 = vor.u32 %v7560_v50, %v6635_v51  ;;  %v7026_v5 = vor.u32 %v7661_v57, %v7025_v56  ;;  %v7553_v14 = vld [vmem:[#allocation3 + $0x42c] sm:$0xf] }
 0x2ea   :  { %4317 = vmatpush.bf16.msra.mxu3 %v6274_v45  ;;  %4286 = vmatmul.bf16.vlgmr.msra.gmra.mxu0 %v8322_v33  ;;  %v7490_v29 = vld [vmem:[#allocation3 + $0x234] sm:$0xf]  ;;  %v6355_v45 = vld [vmem:[#allocation3 + $0x24c] sm:$0xf0]  ;;  %v6134_v4 = vor.u32 %v7434_v60, %v6131_v41  ;;  %v6997_v10 = vld [vmem:[#allocation3 + $0x738] sm:$0xf] }
 0x2eb   :  { %4330 = vmatpush.bf16.msrb.mxu0 %v6498_v6  ;;  %4298 = vmatpush.bf16.msra.mxu1 %v6746_v1  ;;  %v6607_v6 = vld [vmem:[#allocation3 + $0x444] sm:$0xf0]  ;;  %v7654_v61 = vld [vmem:[#allocation3 + $0x750] sm:$0xf0]  ;;  %v6358_v19 = vor.u32 %v7490_v29, %v6355_v45  ;;  %v7427_v11 = vld [vmem:[#allocation3 + $0x3c] sm:$0xf] }
 0x2ec   :  { %v6103_v12 = vld [vmem:[#allocation3 + $0x54] sm:$0xf0]  ;;  %v7483_v52 = vld [vmem:[#allocation3 + $0x1fc] sm:$0xf]  ;;  %v6610_v0 = vor.u32 %v7553_v14, %v6607_v6  ;;  %v6998_v13 = vor.u32 %v7654_v61, %v6997_v10  ;;  %v7546_v17 = vld [vmem:[#allocation3 + $0x3f4] sm:$0xf] }
 0x2ed   :  { %4305 = vmatpush.bf16.msra.mxu2 %v7138_v54  ;;  %v6327_v54 = vld [vmem:[#allocation3 + $0x214] sm:$0xf0]  ;;  %v6579_v22 = vld [vmem:[#allocation3 + $0x40c] sm:$0xf0]  ;;  %v7647_v62 = vld [vmem:[#allocation3 + $0x718] sm:$0xf0] }
 0x2ee   :  { %4318 = vmatpush.bf16.msra.mxu3 %v6246_v15  ;;  %4299 = vmatmul.bf16.vlgmr.msra.gmra.mxu1 %v8329_v18  ;;  %v6969_v15 = vld [vmem:[#allocation3 + $0x700] sm:$0xf]  ;;  %v7420_v21 = vld [vmem:[#allocation3 + $0x4] sm:$0xf]  ;;  %v6330_v3 = vor.u32 %v7483_v52, %v6327_v54  ;;  %v7637_v23 = vld [vmem:[#allocation3 + $0x6cc] sm:$0xf]  ;;  %v6582_v28 = vor.u32 %v7546_v17, %v6579_v22 }
 0x2ef   :  { %4331 = vmatpush.bf16.msrb.mxu0 %v6470_v20  ;;  %4343 = vmatpush.bf16.msrb.mxu1 %v6722_v63  ;;  %v6106_v20 = vor.u32 %v7427_v11, %v6103_v12  ;;  %v6075_v1 = vld [vmem:[#allocation3 + $0x1c] sm:$0xf0]  ;;  %v6943_v63 = vld [vmem:[#allocation3 + $0x6e4] sm:$0xf0]  ;;  %v7476_v25 = vld [vmem:[#allocation3 + $0x1c4] sm:$0xf]  ;;  %v6970_v8 = vor.u32 %v7647_v62, %v6969_v15 }
 0x2f0   :  { %v7167_v24 = vld [vmem:[#allocation3 + $0x8a4] sm:$0xf0]  ;;  %v7473_v31 = vld [vmem:[#allocation3 + $0x1a8] sm:$0xf0]  ;;  %v6078_v32 = vor.u32 %v7420_v21, %v6075_v1  ;;  %v6946_v35 = vor.u32 %v7637_v23, %v6943_v63  ;;  %v7539_v34 = vld [vmem:[#allocation3 + $0x3bc] sm:$0xf] }
 0x2f1   :  { %4306 = vmatpush.bf16.msra.mxu2 %v7110_v58  ;;  %v7693_v58 = vld [vmem:[#allocation3 + $0x88c] sm:$0xf]  ;;  %v7630_v39 = vld [vmem:[#allocation3 + $0x694] sm:$0xf]  ;;  %v7139_v9 = vld [vmem:[#allocation3 + $0x86c] sm:$0xf0] }
 0x2f2   :  { %4319 = vmatpush.bf16.msra.mxu3 %v6218_v27  ;;  %v6299_v27 = vld [vmem:[#allocation3 + $0x1dc] sm:$0xf0]  ;;  %v6249_v44 = vld [vmem:[#allocation3 + $0x158] sm:$0xf]  ;;  %v7466_v46 = vld [vmem:[#allocation3 + $0x170] sm:$0xf0] }
 0x2f3   :  { %4332 = vmatpush.bf16.msrb.mxu0 %v6442_v30  ;;  %4344 = vmatpush.bf16.msrb.mxu1 %v6694_v36  ;;  %v6277_v30 = vld [vmem:[#allocation3 + $0x190] sm:$0xf]  ;;  %v6551_v36 = vld [vmem:[#allocation3 + $0x3d4] sm:$0xf0]  ;;  %v6302_v38 = vor.u32 %v7476_v25, %v6299_v27  ;;  %v7532_v50 = vld [vmem:[#allocation3 + $0x384] sm:$0xf] }
 0x2f4   :  { %v6278_v43 = vor.u32 %v7473_v31, %v6277_v30  ;;  %v6554_v47 = vor.u32 %v7539_v34, %v6551_v36  ;;  %v6523_v51 = vld [vmem:[#allocation3 + $0x39c] sm:$0xf0]  ;;  %v6887_v56 = vld [vmem:[#allocation3 + $0x674] sm:$0xf0]  ;;  %v6501_v26 = vld [vmem:[#allocation3 + $0x350] sm:$0xf] }
 0x2f5   :  { %4307 = vmatpush.bf16.msra.mxu2 %v7082_v37  ;;  %v7170_v37 = vor.u32 %v7693_v58, %v7167_v24  ;;  %v7529_v57 = vld [vmem:[#allocation3 + $0x368] sm:$0xf0]  ;;  %v7679_v60 = vld [vmem:[#allocation3 + $0x81c] sm:$0xf]  ;;  %v7111_v41 = vld [vmem:[#allocation3 + $0x834] sm:$0xf0] }
 0x2f6   :  { %4320 = vmatpush.bf16.msra.mxu3 %v6190_v40  ;;  %v6915_v40 = vld [vmem:[#allocation3 + $0x6ac] sm:$0xf0]  ;;  %v6221_v29 = vld [vmem:[#allocation3 + $0x120] sm:$0xf]  ;;  %v7459_v45 = vld [vmem:[#allocation3 + $0x138] sm:$0xf0]  ;;  %v6502_v6 = vor.u32 %v7529_v57, %v6501_v26 }
 0x2f7   :  { %4333 = vmatpush.bf16.msrb.mxu0 %v6414_v16  ;;  %4345 = vmatpush.bf16.msrb.mxu1 %v6666_v48  ;;  %v7686_v16 = vld [vmem:[#allocation3 + $0x854] sm:$0xf]  ;;  %v6918_v48 = vor.u32 %v7630_v39, %v6915_v40  ;;  %v7616_v14 = vld [vmem:[#allocation3 + $0x624] sm:$0xf]  ;;  %v6859_v10 = vld [vmem:[#allocation3 + $0x63c] sm:$0xf0]  ;;  %v6222_v11 = vor.u32 %v7459_v45, %v6221_v29 }
 0x2f8   :  { %v6473_v61 = vld [vmem:[#allocation3 + $0x318] sm:$0xf]  ;;  %v7672_v12 = vld [vmem:[#allocation3 + $0x7e4] sm:$0xf]  ;;  %v7083_v52 = vld [vmem:[#allocation3 + $0x7fc] sm:$0xf0] }
 0x2f9   :  { %4308 = vmatpush.bf16.msra.mxu2 %v7054_v49  ;;  %v7623_v49 = vld [vmem:[#allocation3 + $0x65c] sm:$0xf]  ;;  %v6193_v54 = vld [vmem:[#allocation3 + $0xe8] sm:$0xf]  ;;  %v7609_v15 = vld [vmem:[#allocation3 + $0x5ec] sm:$0xf]  ;;  %v7086_v22 = vor.u32 %v7672_v12, %v7083_v52 }
 0x2fa   :  { %4321 = vmatpush.bf16.msra.mxu3 %v6162_v53  ;;  %v7142_v53 = vor.u32 %v7686_v16, %v7139_v9  ;;  %v6445_v62 = vld [vmem:[#allocation3 + $0x2e0] sm:$0xf]  ;;  %v7515_v21 = vld [vmem:[#allocation3 + $0x2f8] sm:$0xf0]  ;;  %v7055_v23 = vld [vmem:[#allocation3 + $0x7c4] sm:$0xf0] }
 0x2fb   :  { %4334 = vmatpush.bf16.msrb.mxu0 %v6386_v59  ;;  %4346 = vmatpush.bf16.msrb.mxu1 %v6638_v2  ;;  %v6250_v59 = vor.u32 %v7466_v46, %v6249_v44  ;;  %v6526_v2 = vor.u32 %v7532_v50, %v6523_v51  ;;  %v6165_v63 = vld [vmem:[#allocation3 + $0xb0] sm:$0xf]  ;;  %v7445_v58 = vld [vmem:[#allocation3 + $0xc8] sm:$0xf0]  ;;  %v7602_v25 = vld [vmem:[#allocation3 + $0x5b4] sm:$0xf]  ;;  %v6446_v27 = vor.u32 %v7515_v21, %v6445_v62 }
 0x2fc   :  { %v6417_v30 = vld [vmem:[#allocation3 + $0x2a8] sm:$0xf]  ;;  %v7508_v31 = vld [vmem:[#allocation3 + $0x2c0] sm:$0xf0]  ;;  %v7027_v34 = vld [vmem:[#allocation3 + $0x78c] sm:$0xf0] }
 0x2fd   :  { %4309 = vmatpush.bf16.msra.mxu2 %v7026_v5  ;;  %v6890_v5 = vor.u32 %v7623_v49, %v6887_v56  ;;  %v6137_v36 = vld [vmem:[#allocation3 + $0x78] sm:$0xf]  ;;  %v7595_v39 = vld [vmem:[#allocation3 + $0x57c] sm:$0xf]  ;;  %v6418_v40 = vor.u32 %v7508_v31, %v6417_v30  ;;  %v6389_v9 = vld [vmem:[#allocation3 + $0x270] sm:$0xf] }
 0x2fe   :  { %4322 = vmatpush.bf16.msra.mxu3 %v6134_v4  ;;  %v7114_v4 = vor.u32 %v7679_v60, %v7111_v41  ;;  %v6775_v16 = vld [vmem:[#allocation3 + $0x594] sm:$0xf0]  ;;  %v7501_v44 = vld [vmem:[#allocation3 + $0x288] sm:$0xf0]  ;;  %v6109_v49 = vld [vmem:[#allocation3 + $0x40] sm:$0xf] }
 0x2ff   :  { %4335 = vmatpush.bf16.msrb.mxu0 %v6358_v19  ;;  %4347 = vmatpush.bf16.msrb.mxu1 %v6610_v0  ;;  %v7522_v19 = vld [vmem:[#allocation3 + $0x330] sm:$0xf0]  ;;  %v7452_v0 = vld [vmem:[#allocation3 + $0x100] sm:$0xf0]  ;;  %v7431_v50 = vld [vmem:[#allocation3 + $0x58] sm:$0xf0]  ;;  %v6778_v51 = vor.u32 %v7595_v39, %v6775_v16  ;;  %v6390_v57 = vor.u32 %v7501_v44, %v6389_v9 }
 0x300   :  { %v6474_v17 = vor.u32 %v7522_v19, %v6473_v61  ;;  %v6194_v1 = vor.u32 %v7452_v0, %v6193_v54  ;;  %v6747_v56 = vld [vmem:[#allocation3 + $0x55c] sm:$0xf0]  ;;  %v7644_v26 = vld [vmem:[#allocation3 + $0x704] sm:$0xf]  ;;  %v6361_v41 = vld [vmem:[#allocation3 + $0x238] sm:$0xf]  ;;  %v6110_v45 = vor.u32 %v7431_v50, %v6109_v49 }
 0x301   :  { %4310 = vmatpush.bf16.msra.mxu2 %v6998_v13  ;;  %v6862_v13 = vor.u32 %v7616_v14, %v6859_v10  ;;  %v6971_v60 = vld [vmem:[#allocation3 + $0x71c] sm:$0xf0]  ;;  %v7494_v29 = vld [vmem:[#allocation3 + $0x250] sm:$0xf0]  ;;  %v6949_v14 = vld [vmem:[#allocation3 + $0x6d0] sm:$0xf] }
 0x302   :  { %4323 = vmatpush.bf16.msra.mxu3 %v6106_v20  ;;  %v6831_v20 = vld [vmem:[#allocation3 + $0x604] sm:$0xf0]  ;;  %v7424_v10 = vld [vmem:[#allocation3 + $0x20] sm:$0xf0]  ;;  %v7173_v19 = vld [vmem:[#allocation3 + $0x890] sm:$0xf]  ;;  %v6362_v12 = vor.u32 %v7494_v29, %v6361_v41  ;;  %v6974_v52 = vor.u32 %v7644_v26, %v6971_v60 }
 0x303   :  { %4336 = vmatpush.bf16.msrb.mxu0 %v6330_v3  ;;  %4348 = vmatpush.bf16.msrb.mxu1 %v6582_v28  ;;  %v7665_v3 = vld [vmem:[#allocation3 + $0x7ac] sm:$0xf]  ;;  %v6834_v24 = vor.u32 %v7609_v15, %v6831_v20  ;;  %v6333_v0 = vld [vmem:[#allocation3 + $0x200] sm:$0xf]  ;;  %v7578_v20 = vld [vmem:[#allocation3 + $0x4f0] sm:$0xf0] }
 0x304   :  { %v7058_v28 = vor.u32 %v7665_v3, %v7055_v23  ;;  %v6921_v21 = vld [vmem:[#allocation3 + $0x698] sm:$0xf]  ;;  %v7690_v23 = vld [vmem:[#allocation3 + $0x870] sm:$0xf0]  ;;  %v6279_v31 = vld [vmem:[#allocation3 + $0x1ac] sm:$0xf0] }
 0x305   :  { %4311 = vmatpush.bf16.msra.mxu2 %v6970_v8  ;;  %v6803_v8 = vld [vmem:[#allocation3 + $0x5cc] sm:$0xf0]  ;;  %v7145_v3 = vld [vmem:[#allocation3 + $0x858] sm:$0xf]  ;;  %v7470_v30 = vld [vmem:[#allocation3 + $0x194] sm:$0xf] }
 0x306   :  { %4324 = vmatpush.bf16.msra.mxu3 %v6078_v32  ;;  %v6166_v32 = vor.u32 %v7445_v58, %v6165_v63  ;;  %v7564_v9 = vld [vmem:[#allocation3 + $0x480] sm:$0xf0]  ;;  %v7463_v44 = vld [vmem:[#allocation3 + $0x15c] sm:$0xf]  ;;  %v7089_v50 = vld [vmem:[#allocation3 + $0x7e8] sm:$0xf] }
 0x307   :  { %4337 = vmatpush.bf16.msrb.mxu0 %v6302_v38  ;;  %4349 = vmatpush.bf16.msrb.mxu1 %v6554_v47  ;;  %v6806_v38 = vor.u32 %v7602_v25, %v6803_v8  ;;  %v7651_v47 = vld [vmem:[#allocation3 + $0x73c] sm:$0xf]  ;;  %v6305_v25 = vld [vmem:[#allocation3 + $0x1c8] sm:$0xf]  ;;  %v7620_v49 = vld [vmem:[#allocation3 + $0x640] sm:$0xf0] }
 0x308   :  { %4312 = vmatmul.bf16.vlgmr.msra.gmra.mxu2 %v8334_v42  ;;  %v7571_v8 = vld [vmem:[#allocation3 + $0x4b8] sm:$0xf0]  ;;  %v7456_v60 = vld [vmem:[#allocation3 + $0x124] sm:$0xf]  ;;  %v6223_v41 = vld [vmem:[#allocation3 + $0x13c] sm:$0xf0] }
 0x309   :  { %4356 = vmatpush.bf16.msrb.mxu2 %v6946_v35  ;;  %4325 = vmatmul.bf16.vlgmr.msra.gmra.mxu3 %v8314_v7  ;;  %v7658_v35 = vld [vmem:[#allocation3 + $0x774] sm:$0xf]  ;;  %vm4932_vm11 = vcmask 1042434   ;;  %s7971_s4 = smov [#allocation11]   ;;  %s5162_s19 = sshll.u32 %s8603_s5, 4  ;;  %s5163_s19 = int_to_ptr.hbm [resolvable:$true] %s5162_s19 }
 0x30a   :  { %4369 = vmatpush.bf16.msrb.mxu3 %v7170_v37  ;;  %4338 = vmatmul.bf16.vlgmr.msrb.gmra.mxu0 %v8318_v55  ;;  %v7438_v37 = vld [vmem:[#allocation3 + $0x90] sm:$0xf0]  ;;  %s5160_s16 = sshll.u32 %s7971_s4, 4  ;;  %s5161_s16 = int_to_ptr.vmem [resolvable:$true] %s5160_s16 }
 0x30b   :  { %4382 = vmatpush.bf16.msra.mxu0 %v6278_v43  ;;  %4350 = vmatpush.bf16.msrb.mxu1 %v6526_v2  ;;  %v7030_v43 = vor.u32 %v7658_v35, %v7027_v34  ;;  %v6138_v46 = vor.u32 %v7438_v37, %v6137_v36  ;;  %v6725_v2 = vld [vmem:[#allocation3 + $0x510] sm:$0xf]  ;;  %v6893_v35 = vld [vmem:[#allocation3 + $0x660] sm:$0xf]  ;;  %v7627_v34 = vld [vmem:[#allocation3 + $0x678] sm:$0xf0] }
 0x30c   :  { %v7117_v36 = vld [vmem:[#allocation3 + $0x820] sm:$0xf]  ;;  %v7683_v37 = vld [vmem:[#allocation3 + $0x838] sm:$0xf0]  ;;  %v6894_v16 = vor.u32 %v7627_v34, %v6893_v35  ;;  %v7592_v35 = vld [vmem:[#allocation3 + $0x560] sm:$0xf0] }
 0x30d   :  { %4357 = vmatpush.bf16.msrb.mxu2 %v6918_v48  ;;  %v6999_v48 = vld [vmem:[#allocation3 + $0x754] sm:$0xf0]  ;;  %v7435_v34 = vld [vmem:[#allocation3 + $0x7c] sm:$0xf] }
 0x30e   :  { %4370 = vmatpush.bf16.msrb.mxu3 %v7142_v53  ;;  %4351 = vmatmul.bf16.vlgmr.msrb.gmra.mxu1 %v8322_v33  ;;  %v7588_v53 = vld [vmem:[#allocation3 + $0x544] sm:$0xf] }
 0x30f   :  { %4383 = vmatpush.bf16.msra.mxu0 %v6250_v59  ;;  %4395 = vmatpush.bf16.msra.mxu1 %v6502_v6  ;;  %v7002_v59 = vor.u32 %v7651_v47, %v6999_v48  ;;  %v7641_v6 = vld [vmem:[#allocation3 + $0x6e8] sm:$0xf0]  ;;  %v6750_v61 = vor.u32 %v7588_v53, %v6747_v56  ;;  %v7118_v47 = vor.u32 %v7683_v37, %v7117_v36  ;;  %v6865_v48 = vld [vmem:[#allocation3 + $0x628] sm:$0xf]  ;;  %v6613_v56 = vld [vmem:[#allocation3 + $0x430] sm:$0xf] }
 0x310   :  { %v6950_v15 = vor.u32 %v7641_v6, %v6949_v14  ;;  %v7669_v14 = vld [vmem:[#allocation3 + $0x7c8] sm:$0xf0]  ;;  %v6139_v36 = vld [vmem:[#allocation3 + $0x94] sm:$0xf0] }
 0x311   :  { %4358 = vmatpush.bf16.msrb.mxu2 %v6890_v5  ;;  %v7585_v5 = vld [vmem:[#allocation3 + $0x528] sm:$0xf0] }
 0x312   :  { %4371 = vmatpush.bf16.msrb.mxu3 %v7114_v4  ;;  %v6081_v4 = vld [vmem:[#allocation3 + $0x8] sm:$0xf]  ;;  %v6726_v54 = vor.u32 %v7585_v5, %v6725_v2  ;;  %v7613_v2 = vld [vmem:[#allocation3 + $0x608] sm:$0xf0]  ;;  %v7061_v5 = vld [vmem:[#allocation3 + $0x7b0] sm:$0xf] }
 0x313   :  { %4384 = vmatpush.bf16.msra.mxu0 %v6222_v11  ;;  %4396 = vmatpush.bf16.msra.mxu1 %v6474_v17  ;;  %v7697_v11 = vld [vmem:[#allocation3 + $0x8a8] sm:$0xf0]  ;;  %v6082_v17 = vor.u32 %v7424_v10, %v6081_v4  ;;  %v6585_v4 = vld [vmem:[#allocation3 + $0x3f8] sm:$0xf]  ;;  %v6226_v10 = vor.u32 %v7456_v60, %v6223_v41  ;;  %v7575_v41 = vld [vmem:[#allocation3 + $0x4dc] sm:$0xf] }
 0x314   :  { %v7174_v62 = vor.u32 %v7697_v11, %v7173_v19  ;;  %v7550_v19 = vld [vmem:[#allocation3 + $0x410] sm:$0xf0]  ;;  %v7449_v11 = vld [vmem:[#allocation3 + $0xec] sm:$0xf] }
 0x315   :  { %4359 = vmatpush.bf16.msrb.mxu2 %v6862_v13  ;;  %v7487_v13 = vld [vmem:[#allocation3 + $0x218] sm:$0xf0] }
 0x316   :  { %4372 = vmatpush.bf16.msrb.mxu3 %v7086_v22  ;;  %v6697_v22 = vld [vmem:[#allocation3 + $0x4d8] sm:$0xf]  ;;  %v6334_v63 = vor.u32 %v7487_v13, %v6333_v0  ;;  %v7606_v0 = vld [vmem:[#allocation3 + $0x5d0] sm:$0xf0] }
 0x317   :  { %4385 = vmatpush.bf16.msra.mxu0 %v6194_v1  ;;  %4397 = vmatpush.bf16.msra.mxu1 %v6446_v27  ;;  %v7634_v1 = vld [vmem:[#allocation3 + $0x6b0] sm:$0xf0]  ;;  %v6698_v58 = vor.u32 %v7578_v20, %v6697_v22  ;;  %v7480_v27 = vld [vmem:[#allocation3 + $0x1e0] sm:$0xf0]  ;;  %v7033_v13 = vld [vmem:[#allocation3 + $0x778] sm:$0xf] }
 0x318   :  { %v6557_v22 = vld [vmem:[#allocation3 + $0x3c0] sm:$0xf] }
 0x319   :  { %4360 = vmatpush.bf16.msrb.mxu2 %v6834_v24  ;;  %v6669_v24 = vld [vmem:[#allocation3 + $0x4a0] sm:$0xf] }
 0x31a   :  { %4373 = vmatpush.bf16.msrb.mxu3 %v7058_v28  ;;  %v6922_v28 = vor.u32 %v7634_v1, %v6921_v21  ;;  %v6670_v39 = vor.u32 %v7571_v8, %v6669_v24  ;;  %v7543_v21 = vld [vmem:[#allocation3 + $0x3d8] sm:$0xf0]  ;;  %v7442_v1 = vld [vmem:[#allocation3 + $0xb4] sm:$0xf]  ;;  %v7005_v24 = vld [vmem:[#allocation3 + $0x740] sm:$0xf] }
 0x31b   :  { %4386 = vmatpush.bf16.msra.mxu0 %v6166_v32  ;;  %4398 = vmatpush.bf16.msra.mxu1 %v6418_v40  ;;  %v7146_v32 = vor.u32 %v7690_v23, %v7145_v3  ;;  %v6641_v40 = vld [vmem:[#allocation3 + $0x468] sm:$0xf]  ;;  %v6167_v3 = vld [vmem:[#allocation3 + $0xcc] sm:$0xf0]  ;;  %v7536_v8 = vld [vmem:[#allocation3 + $0x3a0] sm:$0xf0] }
 0x31c   :  { %v6642_v53 = vor.u32 %v7564_v9, %v6641_v40  ;;  %v7582_v40 = vld [vmem:[#allocation3 + $0x514] sm:$0xf]  ;;  %v7648_v9 = vld [vmem:[#allocation3 + $0x720] sm:$0xf0] }
 0x31d   :  { %4361 = vmatpush.bf16.msrb.mxu2 %v6806_v38  ;;  %v6306_v38 = vor.u32 %v7480_v27, %v6305_v25  ;;  %v7655_v25 = vld [vmem:[#allocation3 + $0x758] sm:$0xf0]  ;;  %v6558_v27 = vor.u32 %v7543_v21, %v6557_v22 }
 0x31e   :  { %4374 = vmatpush.bf16.msrb.mxu3 %v7030_v43  ;;  %v6282_v43 = vor.u32 %v7470_v30, %v6279_v31  ;;  %v6753_v30 = vld [vmem:[#allocation3 + $0x548] sm:$0xf]  ;;  %v6170_v31 = vor.u32 %v7442_v1, %v6167_v3  ;;  %v7006_v37 = vor.u32 %v7655_v25, %v7005_v24  ;;  %v7687_v3 = vld [vmem:[#allocation3 + $0x85c] sm:$0xf]  ;;  %v7617_v25 = vld [vmem:[#allocation3 + $0x62c] sm:$0xf] }
 0x31f   :  { %4387 = vmatpush.bf16.msra.mxu0 %v6138_v46  ;;  %4399 = vmatpush.bf16.msra.mxu1 %v6390_v57  ;;  %v6251_v46 = vld [vmem:[#allocation3 + $0x174] sm:$0xf0]  ;;  %v6866_v57 = vor.u32 %v7620_v49, %v6865_v48  ;;  %v6142_v48 = vor.u32 %v7435_v34, %v6139_v36  ;;  %v6754_v49 = vor.u32 %v7592_v35, %v6753_v30  ;;  %v6419_v1 = vld [vmem:[#allocation3 + $0x2c4] sm:$0xf0]  ;;  %v7680_v35 = vld [vmem:[#allocation3 + $0x824] sm:$0xf] }
 0x320   :  { %v6254_v26 = vor.u32 %v7463_v44, %v6251_v46  ;;  %v7638_v46 = vld [vmem:[#allocation3 + $0x6d4] sm:$0xf]  ;;  %v6643_v24 = vld [vmem:[#allocation3 + $0x484] sm:$0xf0]  ;;  %v7119_v34 = vld [vmem:[#allocation3 + $0x83c] sm:$0xf0] }
 0x321   :  { %4362 = vmatpush.bf16.msrb.mxu2 %v6778_v51  ;;  %v7676_v51 = vld [vmem:[#allocation3 + $0x800] sm:$0xf0] }
 0x322   :  { %4375 = vmatpush.bf16.msrb.mxu3 %v7002_v59  ;;  %v7557_v59 = vld [vmem:[#allocation3 + $0x448] sm:$0xf0]  ;;  %v7090_v29 = vor.u32 %v7676_v51, %v7089_v50  ;;  %v7428_v51 = vld [vmem:[#allocation3 + $0x44] sm:$0xf] }
 0x323   :  { %4388 = vmatpush.bf16.msra.mxu0 %v6110_v45  ;;  %4400 = vmatpush.bf16.msra.mxu1 %v6362_v12  ;;  %v6837_v45 = vld [vmem:[#allocation3 + $0x5f0] sm:$0xf]  ;;  %v6614_v6 = vor.u32 %v7557_v59, %v6613_v56  ;;  %v6195_v12 = vld [vmem:[#allocation3 + $0x104] sm:$0xf0]  ;;  %v6475_v59 = vld [vmem:[#allocation3 + $0x334] sm:$0xf0] }
 0x324   :  { %v6198_v20 = vor.u32 %v7449_v11, %v6195_v12  ;;  %v7694_v11 = vld [vmem:[#allocation3 + $0x894] sm:$0xf]  ;;  %v7175_v12 = vld [vmem:[#allocation3 + $0x8ac] sm:$0xf0] }
 0x325   :  { %4363 = vmatpush.bf16.msrb.mxu2 %v6750_v61  ;;  %v6838_v61 = vor.u32 %v7613_v2, %v6837_v45  ;;  %v7631_v45 = vld [vmem:[#allocation3 + $0x69c] sm:$0xf]  ;;  %v6923_v2 = vld [vmem:[#allocation3 + $0x6b4] sm:$0xf0] }
 0x326   :  { %4376 = vmatpush.bf16.msrb.mxu3 %v6974_v52  ;;  %v7062_v52 = vor.u32 %v7669_v14, %v7061_v5 }
 0x327   :  { %4389 = vmatpush.bf16.msra.mxu0 %v6082_v17  ;;  %4401 = vmatpush.bf16.msra.mxu1 %v6334_v63  ;;  %v6586_v17 = vor.u32 %v7550_v19, %v6585_v4  ;;  %v6781_v63 = vld [vmem:[#allocation3 + $0x580] sm:$0xf]  ;;  %v7421_v4 = vld [vmem:[#allocation3 + $0xc] sm:$0xf] }
 0x328   :  { %4364 = vmatmul.bf16.vlgmr.msrb.gmra.mxu2 %v8329_v18  ;;  %v6447_v19 = vld [vmem:[#allocation3 + $0x2fc] sm:$0xf0] }
 0x329   :  { %4408 = vmatpush.bf16.msra.mxu2 %v6726_v54  ;;  %4377 = vmatmul.bf16.vlgmr.msrb.gmra.mxu3 %v8334_v42  ;;  %v6809_v54 = vld [vmem:[#allocation3 + $0x5b8] sm:$0xf] }
 0x32a   :  { %4421 = vmatpush.bf16.msra.mxu3 %v6950_v15  ;;  %4390 = vmatmul.bf16.vlgmr.msra.gmra.mxu0 %v8314_v7  ;;  %v7662_v15 = vld [vmem:[#allocation3 + $0x790] sm:$0xf0] }
 0x32b   :  { %4434 = vmatpush.bf16.msrb.mxu0 %v7174_v62  ;;  %4402 = vmatpush.bf16.msra.mxu1 %v6306_v38  ;;  %v6810_v62 = vor.u32 %v7606_v0, %v6809_v54  ;;  %v7034_v23 = vor.u32 %v7662_v15, %v7033_v13  ;;  %v7526_v38 = vld [vmem:[#allocation3 + $0x354] sm:$0xf]  ;;  %v7568_v54 = vld [vmem:[#allocation3 + $0x4a4] sm:$0xf]  ;;  %v6671_v0 = vld [vmem:[#allocation3 + $0x4bc] sm:$0xf0] }
 0x32c   :  { %v7624_v13 = vld [vmem:[#allocation3 + $0x664] sm:$0xf]  ;;  %v6895_v15 = vld [vmem:[#allocation3 + $0x67c] sm:$0xf0]  ;;  %v6674_v21 = vor.u32 %v7568_v54, %v6671_v0  ;;  %v6531_v54 = vld [vmem:[#allocation3 + $0x3a4] sm:$0xf0] }
 0x32d   :  { %4409 = vmatpush.bf16.msra.mxu2 %v6698_v58  ;;  %v7599_v58 = vld [vmem:[#allocation3 + $0x598] sm:$0xf0] }
 0x32e   :  { %4422 = vmatpush.bf16.msra.mxu3 %v6922_v28  ;;  %4403 = vmatmul.bf16.vlgmr.msra.gmra.mxu1 %v8318_v55  ;;  %v6529_v28 = vld [vmem:[#allocation3 + $0x388] sm:$0xf]  ;;  %v7659_v0 = vld [vmem:[#allocation3 + $0x77c] sm:$0xf] }
 0x32f   :  { %4435 = vmatpush.bf16.msrb.mxu0 %v7146_v32  ;;  %4447 = vmatpush.bf16.msrb.mxu1 %v6282_v43  ;;  %v6782_v32 = vor.u32 %v7599_v58, %v6781_v63  ;;  %v6727_v43 = vld [vmem:[#allocation3 + $0x52c] sm:$0xf0]  ;;  %v6530_v44 = vor.u32 %v7536_v8, %v6529_v28  ;;  %v6898_v63 = vor.u32 %v7624_v13, %v6895_v15  ;;  %v7561_v58 = vld [vmem:[#allocation3 + $0x46c] sm:$0xf]  ;;  %v7498_v8 = vld [vmem:[#allocation3 + $0x274] sm:$0xf] }
 0x330   :  { %v6730_v56 = vor.u32 %v7582_v40, %v6727_v43  ;;  %v6839_v40 = vld [vmem:[#allocation3 + $0x60c] sm:$0xf0]  ;;  %v7035_v13 = vld [vmem:[#allocation3 + $0x794] sm:$0xf0] }
 0x331   :  { %4410 = vmatpush.bf16.msra.mxu2 %v6670_v39  ;;  %v6503_v39 = vld [vmem:[#allocation3 + $0x36c] sm:$0xf0] }
 0x332   :  { %4423 = vmatpush.bf16.msra.mxu3 %v6894_v16  ;;  %v6977_v16 = vld [vmem:[#allocation3 + $0x708] sm:$0xf]  ;;  %v6506_v50 = vor.u32 %v7526_v38, %v6503_v39  ;;  %v6615_v38 = vld [vmem:[#allocation3 + $0x44c] sm:$0xf0]  ;;  %v7610_v39 = vld [vmem:[#allocation3 + $0x5f4] sm:$0xf] }
 0x333   :  { %4436 = vmatpush.bf16.msrb.mxu0 %v7118_v47  ;;  %4448 = vmatpush.bf16.msrb.mxu1 %v6254_v26  ;;  %v6951_v47 = vld [vmem:[#allocation3 + $0x6ec] sm:$0xf0]  ;;  %v6978_v26 = vor.u32 %v7648_v9, %v6977_v16  ;;  %v7491_v16 = vld [vmem:[#allocation3 + $0x23c] sm:$0xf]  ;;  %v7122_v9 = vor.u32 %v7680_v35, %v7119_v34  ;;  %v6481_v34 = vld [vmem:[#allocation3 + $0x320] sm:$0xf] }
 0x334   :  { %v6954_v60 = vor.u32 %v7638_v46, %v6951_v47  ;;  %v6363_v46 = vld [vmem:[#allocation3 + $0x254] sm:$0xf0]  ;;  %v7673_v47 = vld [vmem:[#allocation3 + $0x7ec] sm:$0xf] }
 0x335   :  { %4411 = vmatpush.bf16.msra.mxu2 %v6642_v53  ;;  %v6111_v53 = vld [vmem:[#allocation3 + $0x5c] sm:$0xf0] }
 0x336   :  { %4424 = vmatpush.bf16.msra.mxu3 %v6866_v57  ;;  %v7519_v57 = vld [vmem:[#allocation3 + $0x31c] sm:$0xf]  ;;  %v6114_v5 = vor.u32 %v7428_v51, %v6111_v53  ;;  %v6587_v51 = vld [vmem:[#allocation3 + $0x414] sm:$0xf0] }
 0x337   :  { %4437 = vmatpush.bf16.msrb.mxu0 %v7090_v29  ;;  %4449 = vmatpush.bf16.msrb.mxu1 %v6226_v10  ;;  %v6699_v29 = vld [vmem:[#allocation3 + $0x4f4] sm:$0xf0]  ;;  %v6478_v14 = vor.u32 %v7519_v57, %v6475_v59  ;;  %v6083_v10 = vld [vmem:[#allocation3 + $0x24] sm:$0xf0]  ;;  %v7603_v53 = vld [vmem:[#allocation3 + $0x5bc] sm:$0xf] }
 0x338   :  { %v7484_v57 = vld [vmem:[#allocation3 + $0x204] sm:$0xf] }
 0x339   :  { %4412 = vmatpush.bf16.msra.mxu2 %v6614_v6  ;;  %v7512_v6 = vld [vmem:[#allocation3 + $0x2e4] sm:$0xf] }
 0x33a   :  { %4425 = vmatpush.bf16.msra.mxu3 %v6838_v61  ;;  %v6702_v61 = vor.u32 %v7575_v41, %v6699_v29  ;;  %v6450_v22 = vor.u32 %v7512_v6, %v6447_v19  ;;  %v6335_v41 = vld [vmem:[#allocation3 + $0x21c] sm:$0xf0]  ;;  %v7666_v29 = vld [vmem:[#allocation3 + $0x7b4] sm:$0xf]  ;;  %v7596_v6 = vld [vmem:[#allocation3 + $0x584] sm:$0xf] }
 0x33b   :  { %4438 = vmatpush.bf16.msrb.mxu0 %v7062_v52  ;;  %4450 = vmatpush.bf16.msrb.mxu1 %v6198_v20  ;;  %v6926_v52 = vor.u32 %v7631_v45, %v6923_v2  ;;  %v7505_v20 = vld [vmem:[#allocation3 + $0x2ac] sm:$0xf]  ;;  %v7063_v45 = vld [vmem:[#allocation3 + $0x7cc] sm:$0xf0]  ;;  %v6307_v19 = vld [vmem:[#allocation3 + $0x1e4] sm:$0xf0] }
 0x33c   :  { %v6422_v28 = vor.u32 %v7505_v20, %v6419_v1  ;;  %v6509_v20 = vld [vmem:[#allocation3 + $0x358] sm:$0xf]  ;;  %v6755_v1 = vld [vmem:[#allocation3 + $0x564] sm:$0xf0] }
 0x33d   :  { %4413 = vmatpush.bf16.msra.mxu2 %v6586_v17  ;;  %v6086_v17 = vor.u32 %v7421_v4, %v6083_v10  ;;  %v6783_v4 = vld [vmem:[#allocation3 + $0x59c] sm:$0xf0]  ;;  %v6338_v10 = vor.u32 %v7484_v57, %v6335_v41 }
 0x33e   :  { %4426 = vmatpush.bf16.msra.mxu3 %v6810_v62  ;;  %v7178_v62 = vor.u32 %v7694_v11, %v7175_v12  ;;  %v7533_v11 = vld [vmem:[#allocation3 + $0x38c] sm:$0xf]  ;;  %v7066_v12 = vor.u32 %v7666_v29, %v7063_v45  ;;  %v6786_v15 = vor.u32 %v7596_v6, %v6783_v4  ;;  %v6929_v45 = vld [vmem:[#allocation3 + $0x6a0] sm:$0xf]  ;;  %v6649_v4 = vld [vmem:[#allocation3 + $0x470] sm:$0xf] }
 0x33f   :  { %4439 = vmatpush.bf16.msrb.mxu0 %v7034_v23  ;;  %4451 = vmatpush.bf16.msrb.mxu1 %v6170_v31  ;;  %v7147_v23 = vld [vmem:[#allocation3 + $0x874] sm:$0xf0]  ;;  %v6646_v31 = vor.u32 %v7561_v58, %v6643_v24  ;;  %v7038_v58 = vor.u32 %v7659_v0, %v7035_v13  ;;  %v6534_v24 = vor.u32 %v7533_v11, %v6531_v54  ;;  %v7453_v29 = vld [vmem:[#allocation3 + $0x108] sm:$0xf0]  ;;  %v6901_v54 = vld [vmem:[#allocation3 + $0x668] sm:$0xf] }
 0x340   :  { %v7150_v30 = vor.u32 %v7687_v3, %v7147_v23  ;;  %v6733_v23 = vld [vmem:[#allocation3 + $0x518] sm:$0xf]  ;;  %v7509_v6 = vld [vmem:[#allocation3 + $0x2c8] sm:$0xf0]  ;;  %v7628_v0 = vld [vmem:[#allocation3 + $0x680] sm:$0xf0] }
 0x341   :  { %4414 = vmatpush.bf16.msra.mxu2 %v6558_v27  ;;  %v6867_v27 = vld [vmem:[#allocation3 + $0x644] sm:$0xf0] }
 0x342   :  { %4427 = vmatpush.bf16.msra.mxu3 %v6782_v32  ;;  %v6391_v32 = vld [vmem:[#allocation3 + $0x28c] sm:$0xf0]  ;;  %v6870_v36 = vor.u32 %v7617_v25, %v6867_v27  ;;  %v7652_v27 = vld [vmem:[#allocation3 + $0x744] sm:$0xf] }
 0x343   :  { %4440 = vmatpush.bf16.msrb.mxu0 %v7006_v37  ;;  %4452 = vmatpush.bf16.msrb.mxu1 %v6142_v48  ;;  %v7554_v37 = vld [vmem:[#allocation3 + $0x434] sm:$0xf]  ;;  %v6394_v43 = vor.u32 %v7498_v8, %v6391_v32  ;;  %v7091_v48 = vld [vmem:[#allocation3 + $0x804] sm:$0xf0]  ;;  %v7467_v32 = vld [vmem:[#allocation3 + $0x178] sm:$0xf0] }
 0x344   :  { %v7094_v59 = vor.u32 %v7673_v47, %v7091_v48  ;;  %v6957_v47 = vld [vmem:[#allocation3 + $0x6d8] sm:$0xf]  ;;  %v7642_v48 = vld [vmem:[#allocation3 + $0x6f0] sm:$0xf0] }
 0x345   :  { %4415 = vmatpush.bf16.msra.mxu2 %v6530_v44  ;;  %v6618_v44 = vor.u32 %v7554_v37, %v6615_v38  ;;  %v6705_v37 = vld [vmem:[#allocation3 + $0x4e0] sm:$0xf]  ;;  %v7579_v38 = vld [vmem:[#allocation3 + $0x4f8] sm:$0xf0] }
 0x346   :  { %4428 = vmatpush.bf16.msra.mxu3 %v6754_v49  ;;  %v6842_v49 = vor.u32 %v7610_v39, %v6839_v40 }
 0x347   :  { %4441 = vmatpush.bf16.msrb.mxu0 %v6978_v26  ;;  %4453 = vmatpush.bf16.msrb.mxu1 %v6114_v5  ;;  %v6366_v26 = vor.u32 %v7491_v16, %v6363_v46  ;;  %v7540_v5 = vld [vmem:[#allocation3 + $0x3c4] sm:$0xf]  ;;  %v7645_v16 = vld [vmem:[#allocation3 + $0x70c] sm:$0xf] }
 0x348   :  { %4416 = vmatmul.bf16.vlgmr.msra.gmra.mxu2 %v8322_v33  ;;  %v7460_v46 = vld [vmem:[#allocation3 + $0x140] sm:$0xf0] }
 0x349   :  { %4460 = vmatpush.bf16.msrb.mxu2 %v6506_v50  ;;  %4429 = vmatmul.bf16.vlgmr.msra.gmra.mxu3 %v8329_v18  ;;  %v7547_v50 = vld [vmem:[#allocation3 + $0x3fc] sm:$0xf] }
 0x34a   :  { %4473 = vmatpush.bf16.msrb.mxu3 %v6730_v56  ;;  %4442 = vmatmul.bf16.vlgmr.msrb.gmra.mxu0 %v8334_v42  ;;  %v6811_v56 = vld [vmem:[#allocation3 + $0x5d4] sm:$0xf0] }
 0x34b   :  { %4486 = vmatpush.bf16.msra.mxu0 %v6954_v60  ;;  %4454 = vmatpush.bf16.msrb.mxu1 %v6086_v17  ;;  %v6590_v60 = vor.u32 %v7547_v50, %v6587_v51  ;;  %v6814_v2 = vor.u32 %v7603_v53, %v6811_v56  ;;  %v6285_v17 = vld [vmem:[#allocation3 + $0x198] sm:$0xf]  ;;  %v6453_v50 = vld [vmem:[#allocation3 + $0x2e8] sm:$0xf]  ;;  %v7516_v51 = vld [vmem:[#allocation3 + $0x300] sm:$0xf0] }
 0x34c   :  { %v6677_v53 = vld [vmem:[#allocation3 + $0x4a8] sm:$0xf]  ;;  %v7572_v56 = vld [vmem:[#allocation3 + $0x4c0] sm:$0xf0]  ;;  %v6454_v41 = vor.u32 %v7516_v51, %v6453_v50  ;;  %v6089_v50 = vld [vmem:[#allocation3 + $0x10] sm:$0xf] }
 0x34d   :  { %4461 = vmatpush.bf16.msrb.mxu2 %v6478_v14  ;;  %v6559_v14 = vld [vmem:[#allocation3 + $0x3dc] sm:$0xf0]  ;;  %v7425_v51 = vld [vmem:[#allocation3 + $0x28] sm:$0xf0] }
 0x34e   :  { %4474 = vmatpush.bf16.msrb.mxu3 %v6702_v61  ;;  %4455 = vmatmul.bf16.vlgmr.msrb.gmra.mxu1 %v8314_v7  ;;  %v7477_v61 = vld [vmem:[#allocation3 + $0x1cc] sm:$0xf] }
 0x34f   :  { %4487 = vmatpush.bf16.msra.mxu0 %v6926_v52  ;;  %4499 = vmatpush.bf16.msra.mxu1 %v7178_v62  ;;  %v6562_v52 = vor.u32 %v7540_v5, %v6559_v14  ;;  %v7530_v62 = vld [vmem:[#allocation3 + $0x370] sm:$0xf0]  ;;  %v6310_v3 = vor.u32 %v7477_v61, %v6307_v19  ;;  %v6678_v5 = vor.u32 %v7572_v56, %v6677_v53  ;;  %v6425_v14 = vld [vmem:[#allocation3 + $0x2b0] sm:$0xf]  ;;  %v6173_v19 = vld [vmem:[#allocation3 + $0xb8] sm:$0xf] }
 0x350   :  { %v6510_v8 = vor.u32 %v7530_v62, %v6509_v20  ;;  %v7558_v20 = vld [vmem:[#allocation3 + $0x450] sm:$0xf0]  ;;  %v6313_v53 = vld [vmem:[#allocation3 + $0x1d0] sm:$0xf] }
 0x351   :  { %4462 = vmatpush.bf16.msrb.mxu2 %v6450_v22  ;;  %v7474_v22 = vld [vmem:[#allocation3 + $0x1b0] sm:$0xf0] }
 0x352   :  { %4475 = vmatpush.bf16.msrb.mxu3 %v6674_v21  ;;  %v7589_v21 = vld [vmem:[#allocation3 + $0x54c] sm:$0xf]  ;;  %v6286_v25 = vor.u32 %v7474_v22, %v6285_v17  ;;  %v7502_v17 = vld [vmem:[#allocation3 + $0x290] sm:$0xf0]  ;;  %v6621_v22 = vld [vmem:[#allocation3 + $0x438] sm:$0xf] }
 0x353   :  { %4488 = vmatpush.bf16.msra.mxu0 %v6898_v63  ;;  %4500 = vmatpush.bf16.msra.mxu1 %v7150_v30  ;;  %v7586_v63 = vld [vmem:[#allocation3 + $0x530] sm:$0xf0]  ;;  %v6758_v30 = vor.u32 %v7589_v21, %v6755_v1  ;;  %v6145_v21 = vld [vmem:[#allocation3 + $0x80] sm:$0xf]  ;;  %v6902_v1 = vor.u32 %v7628_v0, %v6901_v54 }
 0x354   :  { %v6734_v35 = vor.u32 %v7586_v63, %v6733_v23  ;;  %v7439_v23 = vld [vmem:[#allocation3 + $0x98] sm:$0xf0]  ;;  %v6873_v63 = vld [vmem:[#allocation3 + $0x630] sm:$0xf] }
 0x355   :  { %4463 = vmatpush.bf16.msrb.mxu2 %v6422_v28  ;;  %v7007_v28 = vld [vmem:[#allocation3 + $0x75c] sm:$0xf0] }
 0x356   :  { %4476 = vmatpush.bf16.msrb.mxu3 %v6646_v31  ;;  %v6257_v31 = vld [vmem:[#allocation3 + $0x160] sm:$0xf]  ;;  %v7010_v39 = vor.u32 %v7652_v27, %v7007_v28  ;;  %v7495_v28 = vld [vmem:[#allocation3 + $0x258] sm:$0xf0] }
 0x357   :  { %4489 = vmatpush.bf16.msra.mxu0 %v6870_v36  ;;  %4501 = vmatpush.bf16.msra.mxu1 %v7122_v9  ;;  %v7523_v36 = vld [vmem:[#allocation3 + $0x338] sm:$0xf0]  ;;  %v6258_v40 = vor.u32 %v7467_v32, %v6257_v31  ;;  %v6979_v9 = vld [vmem:[#allocation3 + $0x724] sm:$0xf0]  ;;  %v6369_v27 = vld [vmem:[#allocation3 + $0x240] sm:$0xf]  ;;  %v6146_v31 = vor.u32 %v7439_v23, %v6145_v21 }
 0x358   :  { %v6117_v32 = vld [vmem:[#allocation3 + $0x48] sm:$0xf]  ;;  %v7464_v23 = vld [vmem:[#allocation3 + $0x164] sm:$0xf] }
 0x359   :  { %4464 = vmatpush.bf16.msrb.mxu2 %v6394_v43  ;;  %v6229_v43 = vld [vmem:[#allocation3 + $0x128] sm:$0xf] }
 0x35a   :  { %4477 = vmatpush.bf16.msrb.mxu3 %v6618_v44  ;;  %v6482_v44 = vor.u32 %v7523_v36, %v6481_v34  ;;  %v6230_v57 = vor.u32 %v7460_v46, %v6229_v43  ;;  %v6370_v34 = vor.u32 %v7495_v28, %v6369_v27  ;;  %v7432_v36 = vld [vmem:[#allocation3 + $0x60] sm:$0xf0] }
 0x35b   :  { %4490 = vmatpush.bf16.msra.mxu0 %v6842_v49  ;;  %4502 = vmatpush.bf16.msra.mxu1 %v7094_v59  ;;  %v6706_v49 = vor.u32 %v7579_v38, %v6705_v37  ;;  %v6201_v59 = vld [vmem:[#allocation3 + $0xf0] sm:$0xf]  ;;  %v6845_v37 = vld [vmem:[#allocation3 + $0x5f8] sm:$0xf]  ;;  %v7614_v38 = vld [vmem:[#allocation3 + $0x610] sm:$0xf0] }
 0x35c   :  { %v6202_v61 = vor.u32 %v7453_v29, %v6201_v59  ;;  %v7488_v43 = vld [vmem:[#allocation3 + $0x220] sm:$0xf0]  ;;  %v6846_v56 = vor.u32 %v7614_v38, %v6845_v37  ;;  %v7457_v38 = vld [vmem:[#allocation3 + $0x12c] sm:$0xf] }
 0x35d   :  { %4465 = vmatpush.bf16.msrb.mxu2 %v6366_v26  ;;  %v6982_v26 = vor.u32 %v7645_v16, %v6979_v9  ;;  %v7544_v46 = vld [vmem:[#allocation3 + $0x3e0] sm:$0xf0] }
 0x35e   :  { %4478 = vmatpush.bf16.msrb.mxu3 %v6590_v60  ;;  %v6958_v60 = vor.u32 %v7642_v48, %v6957_v47 }
 0x35f   :  { %4491 = vmatpush.bf16.msra.mxu0 %v6814_v2  ;;  %4503 = vmatpush.bf16.msra.mxu1 %v7066_v12  ;;  %v7635_v2 = vld [vmem:[#allocation3 + $0x6b8] sm:$0xf0]  ;;  %v6426_v12 = vor.u32 %v7509_v6, %v6425_v14  ;;  %v6287_v6 = vld [vmem:[#allocation3 + $0x1b4] sm:$0xf0] }
 0x360   :  { %v6930_v11 = vor.u32 %v7635_v2, %v6929_v45  ;;  %v7181_v2 = vld [vmem:[#allocation3 + $0x898] sm:$0xf]  ;;  %v7471_v14 = vld [vmem:[#allocation3 + $0x19c] sm:$0xf] }
 0x361   :  { %4466 = vmatpush.bf16.msrb.mxu2 %v6338_v10  ;;  %v7565_v10 = vld [vmem:[#allocation3 + $0x488] sm:$0xf0] }
 0x362   :  { %4479 = vmatpush.bf16.msrb.mxu3 %v6562_v52  ;;  %v7446_v52 = vld [vmem:[#allocation3 + $0xd0] sm:$0xf0]  ;;  %v6650_v13 = vor.u32 %v7565_v10, %v6649_v4  ;;  %v6537_v4 = vld [vmem:[#allocation3 + $0x390] sm:$0xf]  ;;  %v7537_v10 = vld [vmem:[#allocation3 + $0x3a8] sm:$0xf0] }
 0x363   :  { %4492 = vmatpush.bf16.msra.mxu0 %v6786_v15  ;;  %4504 = vmatpush.bf16.msra.mxu1 %v7038_v58  ;;  %v6397_v15 = vld [vmem:[#allocation3 + $0x278] sm:$0xf]  ;;  %v6174_v62 = vor.u32 %v7446_v52, %v6173_v19  ;;  %v7621_v58 = vld [vmem:[#allocation3 + $0x648] sm:$0xf0]  ;;  %v6090_v19 = vor.u32 %v7425_v51, %v6089_v50  ;;  %v6707_v50 = vld [vmem:[#allocation3 + $0x4fc] sm:$0xf0] }
 0x365   :  { %4467 = vmatpush.bf16.msrb.mxu2 %v6310_v3  ;;  %v6398_v3 = vor.u32 %v7502_v17, %v6397_v15  ;;  %v7600_v15 = vld [vmem:[#allocation3 + $0x5a0] sm:$0xf0]  ;;  %v6290_v17 = vor.u32 %v7471_v14, %v6287_v6  ;;  %v7443_v6 = vld [vmem:[#allocation3 + $0xbc] sm:$0xf] }
 0x366   :  { %4480 = vmatpush.bf16.msrb.mxu3 %v6534_v24 }
 0x367   :  { %4493 = vmatpush.bf16.msra.mxu0 %v6758_v30  ;;  %4505 = vmatpush.bf16.msra.mxu1 %v7010_v39  ;;  %v4287_v24 = vpop.f32.mrf.mxu0  ;;  %v7551_v30 = vld [vmem:[#allocation3 + $0x418] sm:$0xf0] }
 0x368   :  { %4468 = vmatmul.bf16.vlgmr.msrb.gmra.mxu2 %v8318_v55 }
 0x369   :  { %4512 = vmatpush.bf16.msra.mxu2 %v6286_v25  ;;  %4481 = vmatmul.bf16.vlgmr.msrb.gmra.mxu3 %v8322_v33  ;;  %v6622_v25 = vor.u32 %v7558_v20, %v6621_v22  ;;  %v6538_v22 = vor.u32 %v7537_v10, %v6537_v4  ;;  %v7153_v20 = vld [vmem:[#allocation3 + $0x860] sm:$0xf]  ;;  %v6175_v4 = vld [vmem:[#allocation3 + $0xd4] sm:$0xf0]  ;;  %v7499_v10 = vld [vmem:[#allocation3 + $0x27c] sm:$0xf] }
 0x36a   :  { %4525 = vmatpush.bf16.msra.mxu3 %v6510_v8  ;;  %4494 = vmatmul.bf16.vlgmr.msra.gmra.mxu0 %v8329_v18  ;;  %v6593_v8 = vld [vmem:[#allocation3 + $0x400] sm:$0xf] }
 0x36b   :  { %4538 = vmatpush.bf16.msrb.mxu0 %v6734_v35  ;;  %4506 = vmatpush.bf16.msra.mxu1 %v6982_v26  ;;  %v6874_v35 = vor.u32 %v7621_v58, %v6873_v63  ;;  %v6594_v39 = vor.u32 %v7551_v30, %v6593_v8  ;;  %v4261_v16 = vpop.f32.mrf.mxu2  ;;  %v4300_v48 = vpop.f32.mrf.mxu1  ;;  %v6259_v63 = vld [vmem:[#allocation3 + $0x17c] sm:$0xf0]  ;;  %v7125_v8 = vld [vmem:[#allocation3 + $0x828] sm:$0xf]  ;;  %v6761_v30 = vld [vmem:[#allocation3 + $0x550] sm:$0xf] }
 0x36c   :  { %v4274_v9 = vpop.f32.mrf.mxu3 }
 0x36d   :  { %4513 = vmatpush.bf16.msra.mxu2 %v6258_v40  ;;  %v6341_v40 = vld [vmem:[#allocation3 + $0x208] sm:$0xf]  ;;  %v4275_v47 = vadd.f32 %v4274_v9, %v4261_v16 }
 0x36e   :  { %4526 = vmatpush.bf16.msra.mxu3 %v6482_v44  ;;  %4507 = vmatmul.bf16.vlgmr.msra.gmra.mxu1 %v8334_v42  ;;  %v6565_v44 = vld [vmem:[#allocation3 + $0x3c8] sm:$0xf]  ;;  %v6342_v26 = vor.u32 %v7488_v43, %v6341_v40  ;;  %v7513_v40 = vld [vmem:[#allocation3 + $0x2ec] sm:$0xf] }
 0x36f   :  { %4539 = vmatpush.bf16.msrb.mxu0 %v6706_v49  ;;  %4551 = vmatpush.bf16.msrb.mxu1 %v6958_v60  ;;  %v6118_v49 = vor.u32 %v7432_v36, %v6117_v32  ;;  %v4288_v59 = vadd.f32 %v4287_v24, %v4275_v47  ;;  %v6817_v60 = vld [vmem:[#allocation3 + $0x5c0] sm:$0xf]  ;;  %v4289_v29 = vpop.f32.mrf.mxu0  ;;  %v6566_v45 = vor.u32 %v7544_v46, %v6565_v44  ;;  %v7520_v24 = vld [vmem:[#allocation3 + $0x324] sm:$0xf]  ;;  %v6735_v36 = vld [vmem:[#allocation3 + $0x534] sm:$0xf0] }
 0x370   :  { %v6262_v32 = vor.u32 %v7464_v23, %v6259_v63  ;;  %v6455_v43 = vld [vmem:[#allocation3 + $0x304] sm:$0xf0]  ;;  %v7097_v44 = vld [vmem:[#allocation3 + $0x7f0] sm:$0xf] }
 0x371   :  { %4514 = vmatpush.bf16.msra.mxu2 %v6230_v57  ;;  %v7481_v57 = vld [vmem:[#allocation3 + $0x1e8] sm:$0xf0]  ;;  %v6458_v51 = vor.u32 %v7513_v40, %v6455_v43  ;;  %v7013_v23 = vld [vmem:[#allocation3 + $0x748] sm:$0xf] }
 0x372   :  { %4527 = vmatpush.bf16.msra.mxu3 %v6454_v41  ;;  %v7607_v41 = vld [vmem:[#allocation3 + $0x5d8] sm:$0xf0]  ;;  %v6314_v54 = vor.u32 %v7481_v57, %v6313_v53  ;;  %v7450_v53 = vld [vmem:[#allocation3 + $0xf4] sm:$0xf]  ;;  %v6427_v57 = vld [vmem:[#allocation3 + $0x2cc] sm:$0xf0] }
 0x373   :  { %4540 = vmatpush.bf16.msrb.mxu0 %v6678_v5  ;;  %4552 = vmatpush.bf16.msrb.mxu1 %v6930_v11  ;;  %v7698_v5 = vld [vmem:[#allocation3 + $0x8b0] sm:$0xf0]  ;;  %v7527_v11 = vld [vmem:[#allocation3 + $0x35c] sm:$0xf]  ;;  %v6818_v52 = vor.u32 %v7607_v41, %v6817_v60  ;;  %v4263_v21 = vpop.f32.mrf.mxu2  ;;  %v4302_v58 = vpop.f32.mrf.mxu1  ;;  %v7069_v60 = vld [vmem:[#allocation3 + $0x7b8] sm:$0xf] }
 0x374   :  { %v7182_v0 = vor.u32 %v7698_v5, %v7181_v2  ;;  %v7569_v2 = vld [vmem:[#allocation3 + $0x4ac] sm:$0xf]  ;;  %v6679_v5 = vld [vmem:[#allocation3 + $0x4c4] sm:$0xf0]  ;;  %v7492_v21 = vld [vmem:[#allocation3 + $0x244] sm:$0xf] }
 0x375   :  { %4515 = vmatpush.bf16.msra.mxu2 %v6202_v61  ;;  %v8352_v61 = vadd.f32 %v4300_v48, %v4288_v59  ;;  %v7677_v48 = vld [vmem:[#allocation3 + $0x808] sm:$0xf0] }
 0x376   :  { %4528 = vmatpush.bf16.msra.mxu3 %v6426_v12  ;;  %v6511_v12 = vld [vmem:[#allocation3 + $0x374] sm:$0xf0]  ;;  %v7098_v59 = vor.u32 %v7677_v48, %v7097_v44  ;;  %v6091_v44 = vld [vmem:[#allocation3 + $0x2c] sm:$0xf0]  ;;  %v7639_v48 = vld [vmem:[#allocation3 + $0x6dc] sm:$0xf] }
 0x377   :  { %4541 = vmatpush.bf16.msrb.mxu0 %v6650_v13  ;;  %4553 = vmatpush.bf16.msrb.mxu1 %v6902_v1  ;;  %v6789_v13 = vld [vmem:[#allocation3 + $0x588] sm:$0xf]  ;;  %v4276_v1 = vpop.f32.mrf.mxu3 }
 0x378   :  { %v6790_v27 = vor.u32 %v7600_v15, %v6789_v13  ;;  %v7562_v13 = vld [vmem:[#allocation3 + $0x474] sm:$0xf]  ;;  %v6651_v15 = vld [vmem:[#allocation3 + $0x48c] sm:$0xf0]  ;;  %v6371_v1 = vld [vmem:[#allocation3 + $0x25c] sm:$0xf0] }
 0x379   :  { %4516 = vmatpush.bf16.msra.mxu2 %v6174_v62  ;;  %v7691_v62 = vld [vmem:[#allocation3 + $0x878] sm:$0xf0]  ;;  %v6654_v63 = vor.u32 %v7562_v13, %v6651_v15  ;;  %v7632_v15 = vld [vmem:[#allocation3 + $0x6a4] sm:$0xf] }
 0x37a   :  { %4529 = vmatpush.bf16.msra.mxu3 %v6398_v3  ;;  %v6514_v3 = vor.u32 %v7527_v11, %v6511_v12  ;;  %v7154_v28 = vor.u32 %v7691_v62, %v7153_v20  ;;  %v7041_v12 = vld [vmem:[#allocation3 + $0x780] sm:$0xf]  ;;  %v7436_v20 = vld [vmem:[#allocation3 + $0x84] sm:$0xf] }
 0x37b   :  { %4542 = vmatpush.bf16.msrb.mxu0 %v6622_v25  ;;  %4554 = vmatpush.bf16.msrb.mxu1 %v6874_v35  ;;  %v6483_v25 = vld [vmem:[#allocation3 + $0x33c] sm:$0xf0]  ;;  %v7684_v35 = vld [vmem:[#allocation3 + $0x840] sm:$0xf0] }
 0x37c   :  { %v6486_v37 = vor.u32 %v7520_v24, %v6483_v25  ;;  %v7126_v9 = vor.u32 %v7684_v35, %v7125_v8  ;;  %v6147_v62 = vld [vmem:[#allocation3 + $0x9c] sm:$0xf0]  ;;  %v7656_v25 = vld [vmem:[#allocation3 + $0x760] sm:$0xf0]  ;;  %v7485_v35 = vld [vmem:[#allocation3 + $0x20c] sm:$0xf] }
 0x37d   :  { %4517 = vmatpush.bf16.msra.mxu2 %v6146_v31  ;;  %v7593_v31 = vld [vmem:[#allocation3 + $0x568] sm:$0xf0]  ;;  %v6150_v24 = vor.u32 %v7436_v20, %v6147_v62  ;;  %v7688_v62 = vld [vmem:[#allocation3 + $0x864] sm:$0xf] }
 0x37e   :  { %4530 = vmatpush.bf16.msra.mxu3 %v6370_v34  ;;  %v7583_v34 = vld [vmem:[#allocation3 + $0x51c] sm:$0xf]  ;;  %v6762_v16 = vor.u32 %v7593_v31, %v6761_v30  ;;  %v6374_v30 = vor.u32 %v7492_v21, %v6371_v1  ;;  %v7429_v31 = vld [vmem:[#allocation3 + $0x4c] sm:$0xf]  ;;  %v7155_v21 = vld [vmem:[#allocation3 + $0x87c] sm:$0xf0] }
 0x37f   :  { %4543 = vmatpush.bf16.msrb.mxu0 %v6594_v39  ;;  %4555 = vmatpush.bf16.msrb.mxu1 %v6846_v56  ;;  %v6231_v39 = vld [vmem:[#allocation3 + $0x144] sm:$0xf0]  ;;  %v6738_v46 = vor.u32 %v7583_v34, %v6735_v36  ;;  %v6203_v56 = vld [vmem:[#allocation3 + $0x10c] sm:$0xf0] }
 0x380   :  { %v6234_v47 = vor.u32 %v7457_v38, %v6231_v39  ;;  %v6206_v29 = vor.u32 %v7450_v53, %v6203_v56  ;;  %v6343_v36 = vld [vmem:[#allocation3 + $0x224] sm:$0xf0]  ;;  %v7649_v38 = vld [vmem:[#allocation3 + $0x728] sm:$0xf0] }
 0x381   :  { %4518 = vmatpush.bf16.msra.mxu2 %v6118_v49  ;;  %v7576_v49 = vld [vmem:[#allocation3 + $0x4e4] sm:$0xf] }
 0x382   :  { %4531 = vmatpush.bf16.msra.mxu3 %v6342_v26  ;;  %v7506_v26 = vld [vmem:[#allocation3 + $0x2b4] sm:$0xf]  ;;  %v6710_v41 = vor.u32 %v7576_v49, %v6707_v50  ;;  %v7548_v49 = vld [vmem:[#allocation3 + $0x404] sm:$0xf]  ;;  %v6595_v50 = vld [vmem:[#allocation3 + $0x41c] sm:$0xf0] }
 0x383   :  { %4544 = vmatpush.bf16.msrb.mxu0 %v6566_v45  ;;  %4556 = vmatpush.bf16.msrb.mxu1 %v6818_v52  ;;  %v7670_v45 = vld [vmem:[#allocation3 + $0x7d0] sm:$0xf0]  ;;  %v6430_v14 = vor.u32 %v7506_v26, %v6427_v57  ;;  %v6682_v52 = vor.u32 %v7569_v2, %v6679_v5  ;;  %v6346_v57 = vor.u32 %v7485_v35, %v6343_v36  ;;  %v6293_v5 = vld [vmem:[#allocation3 + $0x1a0] sm:$0xf] }
 0x384   :  { %v7070_v11 = vor.u32 %v7670_v45, %v7069_v60  ;;  %v7695_v60 = vld [vmem:[#allocation3 + $0x89c] sm:$0xf]  ;;  %v6315_v45 = vld [vmem:[#allocation3 + $0x1ec] sm:$0xf0]  ;;  %v6517_v35 = vld [vmem:[#allocation3 + $0x360] sm:$0xf] }
 0x385   :  { %4519 = vmatpush.bf16.msra.mxu2 %v6090_v19  ;;  %v6399_v19 = vld [vmem:[#allocation3 + $0x294] sm:$0xf0] }
 0x386   :  { %4532 = vmatpush.bf16.msra.mxu3 %v6314_v54  ;;  %v6178_v54 = vor.u32 %v7443_v6, %v6175_v4  ;;  %v6598_v6 = vor.u32 %v7548_v49, %v6595_v50  ;;  %v6489_v49 = vld [vmem:[#allocation3 + $0x328] sm:$0xf]  ;;  %v7524_v50 = vld [vmem:[#allocation3 + $0x340] sm:$0xf0] }
 0x387   :  { %4545 = vmatpush.bf16.msrb.mxu0 %v6538_v22  ;;  %4557 = vmatpush.bf16.msrb.mxu1 %v6790_v27  ;;  %v6402_v22 = vor.u32 %v7499_v10, %v6399_v19  ;;  %v7555_v27 = vld [vmem:[#allocation3 + $0x43c] sm:$0xf] }
 0x388   :  { %4520 = vmatmul.bf16.vlgmr.msra.gmra.mxu2 %v8314_v7 }
 0x389   :  { %4564 = vmatpush.bf16.msrb.mxu2 %v7182_v0  ;;  %4533 = vmatmul.bf16.vlgmr.msra.gmra.mxu3 %v8318_v55  ;;  %v7663_v0 = vld [vmem:[#allocation3 + $0x798] sm:$0xf0] }
 0x38a   :  { %4577 = vmatpush.bf16.msrb.mxu3 %v6290_v17  ;;  %4546 = vmatmul.bf16.vlgmr.msrb.gmra.mxu0 %v8322_v33  ;;  %v4339_v17 = vpop.f32.mrf.mxu0 }
 0x38b   :  { %4590 = vmatpush.bf16.msra.mxu0 %v6514_v3  ;;  %4558 = vmatpush.bf16.msrb.mxu1 %v6762_v16  ;;  %v7042_v3 = vor.u32 %v7663_v0, %v7041_v12  ;;  %v4313_v58 = vpop.f32.mrf.mxu2  ;;  %v4352_v40 = vpop.f32.mrf.mxu1  ;;  %v6567_v12 = vld [vmem:[#allocation3 + $0x3e4] sm:$0xf0] }
 0x38c   :  { %v8359_v8 = vadd.f32 %v4313_v58, %v8352_v61  ;;  %v4326_v34 = vpop.f32.mrf.mxu3  ;;  %v7422_v61 = vld [vmem:[#allocation3 + $0x14] sm:$0xf] }
 0x38d   :  { %4565 = vmatpush.bf16.msrb.mxu2 %v7154_v28  ;;  %v6623_v28 = vld [vmem:[#allocation3 + $0x454] sm:$0xf0]  ;;  %v4340_v39 = vadd.f32 %v4339_v17, %v4326_v34  ;;  %v6094_v4 = vor.u32 %v7422_v61, %v6091_v44  ;;  %v6931_v17 = vld [vmem:[#allocation3 + $0x6bc] sm:$0xf0]  ;;  %v7531_v34 = vld [vmem:[#allocation3 + $0x378] sm:$0xf0] }
 0x38e   :  { %4578 = vmatpush.bf16.msrb.mxu3 %v6262_v32  ;;  %4559 = vmatmul.bf16.vlgmr.msrb.gmra.mxu1 %v8329_v18  ;;  %v6119_v32 = vld [vmem:[#allocation3 + $0x64] sm:$0xf0]  ;;  %v4715_v43 = vrot.slane %v8359_v8, 4  ;;  %v4757_v16 = vmul.f32 %v8359_v8, %v8359_v8  ;;  %v6875_v61 = vld [vmem:[#allocation3 + $0x64c] sm:$0xf0]  ;;  %v6518_v44 = vor.u32 %v7531_v34, %v6517_v35 }
 0x38f   :  { %4591 = vmatpush.bf16.msra.mxu0 %v6486_v37  ;;  %4603 = vmatpush.bf16.msra.mxu1 %v6738_v46  ;;  %v6985_v37 = vld [vmem:[#allocation3 + $0x710] sm:$0xf]  ;;  %v6626_v46 = vor.u32 %v7555_v27, %v6623_v28  ;;  %v7534_v27 = vld [vmem:[#allocation3 + $0x394] sm:$0xf] }
 0x390   :  { %v4716_v56 = vadd.f32 %v4715_v43, %v8359_v8  ;;  %v4764_v26 = vrot.slane %v4757_v16, 4  ;;  %v6986_v2 = vor.u32 %v7649_v38, %v6985_v37  ;;  %v6539_v28 = vld [vmem:[#allocation3 + $0x3ac] sm:$0xf0]  ;;  %v7681_v37 = vld [vmem:[#allocation3 + $0x82c] sm:$0xf] }
 0x391   :  { %4566 = vmatpush.bf16.msrb.mxu2 %v7126_v9  ;;  %v7014_v9 = vor.u32 %v7656_v25, %v7013_v23  ;;  %v7468_v23 = vld [vmem:[#allocation3 + $0x180] sm:$0xf0]  ;;  %v6903_v25 = vld [vmem:[#allocation3 + $0x684] sm:$0xf0]  ;;  %v6542_v43 = vor.u32 %v7534_v27, %v6539_v28  ;;  %v7597_v27 = vld [vmem:[#allocation3 + $0x58c] sm:$0xf] }
 0x392   :  { %4579 = vmatpush.bf16.msrb.mxu3 %v6234_v47  ;;  %v6122_v47 = vor.u32 %v7429_v31, %v6119_v32  ;;  %v4341_v53 = vpop.f32.mrf.mxu0  ;;  %v7158_v32 = vor.u32 %v7688_v62, %v7155_v21  ;;  %v7127_v38 = vld [vmem:[#allocation3 + $0x844] sm:$0xf0]  ;;  %v6433_v21 = vld [vmem:[#allocation3 + $0x2b8] sm:$0xf] }
 0x393   :  { %4592 = vmatpush.bf16.msra.mxu0 %v6458_v51  ;;  %4604 = vmatpush.bf16.msra.mxu1 %v6710_v41  ;;  %v8364_v51 = vadd.f32 %v4352_v40, %v4340_v39  ;;  %v7183_v41 = vld [vmem:[#allocation3 + $0x8b4] sm:$0xf0]  ;;  %v4315_v19 = vpop.f32.mrf.mxu2  ;;  %v4354_v1 = vpop.f32.mrf.mxu1  ;;  %v6237_v39 = vld [vmem:[#allocation3 + $0x130] sm:$0xf]  ;;  %v7461_v40 = vld [vmem:[#allocation3 + $0x148] sm:$0xf0] }
 0x394   :  { %v7186_v0 = vor.u32 %v7695_v60, %v7183_v41  ;;  %v6238_v53 = vor.u32 %v7461_v40, %v6237_v39  ;;  %v7611_v41 = vld [vmem:[#allocation3 + $0x5fc] sm:$0xf]  ;;  %v7510_v1 = vld [vmem:[#allocation3 + $0x2d0] sm:$0xf0]  ;;  %v6791_v28 = vld [vmem:[#allocation3 + $0x5a4] sm:$0xf0] }
 0x395   :  { %4567 = vmatpush.bf16.msrb.mxu2 %v7098_v59  ;;  %v6959_v59 = vld [vmem:[#allocation3 + $0x6f4] sm:$0xf0]  ;;  %v7667_v19 = vld [vmem:[#allocation3 + $0x7bc] sm:$0xf] }
 0x396   :  { %4580 = vmatpush.bf16.msrb.mxu3 %v6206_v29  ;;  %v7478_v29 = vld [vmem:[#allocation3 + $0x1d4] sm:$0xf]  ;;  %v6962_v10 = vor.u32 %v7639_v48, %v6959_v59  ;;  %v7130_v48 = vor.u32 %v7681_v37, %v7127_v38  ;;  %v7503_v37 = vld [vmem:[#allocation3 + $0x298] sm:$0xf0] }
 0x397   :  { %4593 = vmatpush.bf16.msra.mxu0 %v6430_v14  ;;  %4605 = vmatpush.bf16.msra.mxu1 %v6682_v52  ;;  %v7475_v14 = vld [vmem:[#allocation3 + $0x1b8] sm:$0xf0]  ;;  %v4717_v52 = vrot.slane %v4716_v56, 2  ;;  %v6318_v13 = vor.u32 %v7478_v29, %v6315_v45  ;;  %v7454_v59 = vld [vmem:[#allocation3 + $0x110] sm:$0xf0]  ;;  %v6490_v45 = vor.u32 %v7524_v50, %v6489_v49 }
 0x398   :  { %v6294_v20 = vor.u32 %v7475_v14, %v6293_v5  ;;  %v6847_v29 = vld [vmem:[#allocation3 + $0x614] sm:$0xf0]  ;;  %v6763_v49 = vld [vmem:[#allocation3 + $0x56c] sm:$0xf0]  ;;  %v7646_v50 = vld [vmem:[#allocation3 + $0x714] sm:$0xf] }
 0x399   :  { %4568 = vmatpush.bf16.msrb.mxu2 %v7070_v11  ;;  %v7541_v11 = vld [vmem:[#allocation3 + $0x3cc] sm:$0xf] }
 0x39a   :  { %4581 = vmatpush.bf16.msrb.mxu3 %v6178_v54  ;;  %v4765_v54 = vadd.f32 %v4764_v26, %v4757_v16  ;;  %v6570_v58 = vor.u32 %v7541_v11, %v6567_v12  ;;  %v7099_v26 = vld [vmem:[#allocation3 + $0x80c] sm:$0xf0]  ;;  %v7071_v11 = vld [vmem:[#allocation3 + $0x7d4] sm:$0xf0]  ;;  %v6181_v12 = vld [vmem:[#allocation3 + $0xc0] sm:$0xf] }
 0x39b   :  { %4594 = vmatpush.bf16.msra.mxu0 %v6402_v22  ;;  %4606 = vmatpush.bf16.msra.mxu1 %v6654_v63  ;;  %v4328_v22 = vpop.f32.mrf.mxu3  ;;  %v7625_v63 = vld [vmem:[#allocation3 + $0x66c] sm:$0xf] }
 0x39c   :  { %v4766_v31 = vrot.slane %v4765_v54, 2  ;;  %v6906_v16 = vor.u32 %v7625_v63, %v6903_v25  ;;  %v7043_v63 = vld [vmem:[#allocation3 + $0x79c] sm:$0xf0] }
 0x39d   :  { %4569 = vmatpush.bf16.msrb.mxu2 %v7042_v3  ;;  %v6265_v3 = vld [vmem:[#allocation3 + $0x168] sm:$0xf] }
 0x39e   :  { %4582 = vmatpush.bf16.msrb.mxu3 %v6150_v24  ;;  %v6934_v24 = vor.u32 %v7632_v15, %v6931_v17  ;;  %v6266_v36 = vor.u32 %v7468_v23, %v6265_v3  ;;  %v7660_v23 = vld [vmem:[#allocation3 + $0x784] sm:$0xf] }
 0x39f   :  { %4595 = vmatpush.bf16.msra.mxu0 %v6374_v30  ;;  %4607 = vmatpush.bf16.msra.mxu1 %v6626_v46  ;;  %v4718_v30 = vadd.f32 %v4717_v52, %v4716_v56  ;;  %v7674_v56 = vld [vmem:[#allocation3 + $0x7f4] sm:$0xf]  ;;  %v7447_v52 = vld [vmem:[#allocation3 + $0xd8] sm:$0xf0]  ;;  %v7046_v34 = vor.u32 %v7660_v23, %v7043_v63 }
 0x3a0   :  { %v7102_v14 = vor.u32 %v7674_v56, %v7099_v26  ;;  %v6182_v3 = vor.u32 %v7447_v52, %v6181_v12 }
 0x3a1   :  { %4570 = vmatpush.bf16.msrb.mxu2 %v7014_v9  ;;  %v7618_v9 = vld [vmem:[#allocation3 + $0x634] sm:$0xf]  ;;  %v4719_v46 = vrot.slane %v4718_v30, 1 }
 0x3a2   :  { %4583 = vmatpush.bf16.msrb.mxu3 %v6122_v47  ;;  %v4767_v47 = vadd.f32 %v4766_v31, %v4765_v54  ;;  %v6878_v60 = vor.u32 %v7618_v9, %v6875_v61  ;;  %v6850_v54 = vor.u32 %v7611_v41, %v6847_v29  ;;  %v6794_v9 = vor.u32 %v7597_v27, %v6791_v28  ;;  %v6125_v61 = vld [vmem:[#allocation3 + $0x50] sm:$0xf]  ;;  %v6377_v41 = vld [vmem:[#allocation3 + $0x248] sm:$0xf]  ;;  %v7496_v29 = vld [vmem:[#allocation3 + $0x260] sm:$0xf0] }
 0x3a3   :  { %4596 = vmatpush.bf16.msra.mxu0 %v6346_v57  ;;  %4608 = vmatpush.bf16.msra.mxu1 %v6598_v6  ;;  %v6209_v57 = vld [vmem:[#allocation3 + $0xf8] sm:$0xf]  ;;  %v6461_v6 = vld [vmem:[#allocation3 + $0x2f0] sm:$0xf] }
 0x3a4   :  { %v4768_v5 = vrot.slane %v4767_v47, 1 }
 0x3a5   :  { %4571 = vmatpush.bf16.msrb.mxu2 %v6986_v2  ;;  %v4720_v2 = vadd.f32 %v4719_v46, %v4718_v30  ;;  %v6434_v30 = vor.u32 %v7510_v1, %v6433_v21  ;;  %v7590_v46 = vld [vmem:[#allocation3 + $0x554] sm:$0xf]  ;;  %v6349_v21 = vld [vmem:[#allocation3 + $0x210] sm:$0xf]  ;;  %v7489_v1 = vld [vmem:[#allocation3 + $0x228] sm:$0xf0] }
 0x3a6   :  { %4584 = vmatpush.bf16.msrb.mxu3 %v6094_v4  ;;  %v7517_v4 = vld [vmem:[#allocation3 + $0x308] sm:$0xf0]  ;;  %v4769_v17 = vadd.f32 %v4768_v5, %v4767_v47  ;;  %v6766_v52 = vor.u32 %v7590_v46, %v6763_v49  ;;  %v6685_v46 = vld [vmem:[#allocation3 + $0x4b0] sm:$0xf] }
 0x3a7   :  { %4597 = vmatpush.bf16.msra.mxu0 %v6318_v13  ;;  %4609 = vmatpush.bf16.msra.mxu1 %v6570_v58  ;;  %v6819_v13 = vld [vmem:[#allocation3 + $0x5dc] sm:$0xf0]  ;;  %v6462_v15 = vor.u32 %v7517_v4, %v6461_v6  ;;  %v8371_v22 = vmul.f32 0.125, %v4720_v2  ;;  %v4391_v62 = vpop.f32.mrf.mxu0  ;;  %v6153_v58 = vld [vmem:[#allocation3 + $0x88] sm:$0xf] }
 0x3a8   :  { %4572 = vmatmul.bf16.vlgmr.msrb.gmra.mxu2 %v8334_v42  ;;  %v4813_v31 = vmul.f32 0.125, %v4769_v17  ;;  %v6965_v6 = vld [vmem:[#allocation3 + $0x6e0] sm:$0xf]  ;;  %v7643_v4 = vld [vmem:[#allocation3 + $0x6f8] sm:$0xf0] }
 0x3a9   :  { %4616 = vmatpush.bf16.msra.mxu2 %v6962_v10  ;;  %4585 = vmatmul.bf16.vlgmr.msrb.gmra.mxu3 %v8314_v7  ;;  %v6210_v10 = vor.u32 %v7454_v59, %v6209_v57  ;;  %v6741_v59 = vld [vmem:[#allocation3 + $0x520] sm:$0xf]  ;;  %v6966_v63 = vor.u32 %v7643_v4, %v6965_v6  ;;  %v6881_v4 = vld [vmem:[#allocation3 + $0x638] sm:$0xf] }
 0x3aa   :  { %4629 = vmatpush.bf16.msra.mxu3 %v7186_v0  ;;  %4598 = vmatmul.bf16.vlgmr.msra.gmra.mxu0 %v8318_v55  ;;  %v7604_v0 = vld [vmem:[#allocation3 + $0x5c4] sm:$0xf] }
 0x3ab   :  { %4642 = vmatpush.bf16.msrb.mxu0 %v6294_v20  ;;  %4610 = vmatpush.bf16.msra.mxu1 %v6542_v43  ;;  %v7074_v20 = vor.u32 %v7667_v19, %v7071_v11  ;;  %v6822_v25 = vor.u32 %v7604_v0, %v6819_v13  ;;  %v4365_v35 = vpop.f32.mrf.mxu2  ;;  %v7653_v43 = vld [vmem:[#allocation3 + $0x74c] sm:$0xf]  ;;  %v4404_v47 = vpop.f32.mrf.mxu1  ;;  %v7426_v19 = vld [vmem:[#allocation3 + $0x30] sm:$0xf0]  ;;  %v7699_v0 = vld [vmem:[#allocation3 + $0x8b8] sm:$0xf0]  ;;  %v6378_v13 = vor.u32 %v7496_v29, %v6377_v41 }
 0x3ac   :  { %v4366_v38 = vadd.f32 %v4365_v35, %v8364_v51  ;;  %v4378_v39 = vpop.f32.mrf.mxu3  ;;  %v8378_v26 = vadd.f32 %v4404_v47, %v4391_v62  ;;  %v7573_v47 = vld [vmem:[#allocation3 + $0x4c8] sm:$0xf0] }
 0x3ad   :  { %4617 = vmatpush.bf16.msra.mxu2 %v6934_v24  ;;  %v7440_v24 = vld [vmem:[#allocation3 + $0xa0] sm:$0xf0]  ;;  %v6686_v41 = vor.u32 %v7573_v47, %v6685_v46  ;;  %v6797_v46 = vld [vmem:[#allocation3 + $0x590] sm:$0xf]  ;;  %v7601_v47 = vld [vmem:[#allocation3 + $0x5a8] sm:$0xf0] }
 0x3ae   :  { %4630 = vmatpush.bf16.msra.mxu3 %v7158_v32  ;;  %4611 = vmatmul.bf16.vlgmr.msra.gmra.mxu1 %v8322_v33  ;;  %v4820_v32 = vmul.f32 %v8371_v22, %v8371_v22  ;;  %v6154_v40 = vor.u32 %v7440_v24, %v6153_v58  ;;  %v6713_v24 = vld [vmem:[#allocation3 + $0x4e8] sm:$0xf] }
 0x3af   :  { %4643 = vmatpush.bf16.msrb.mxu0 %v6266_v36  ;;  %4655 = vmatpush.bf16.msrb.mxu1 %v6518_v44  ;;  %v6405_v36 = vld [vmem:[#allocation3 + $0x280] sm:$0xf]  ;;  %v7433_v44 = vld [vmem:[#allocation3 + $0x68] sm:$0xf0] }
 0x3b0   :  { %v6406_v56 = vor.u32 %v7503_v37, %v6405_v36  ;;  %v4827_v51 = vsub.f32 %v4813_v31, %v4820_v32  ;;  %v6126_v5 = vor.u32 %v7433_v44, %v6125_v61  ;;  %v7636_v31 = vld [vmem:[#allocation3 + $0x6c0] sm:$0xf0]  ;;  %v7161_v36 = vld [vmem:[#allocation3 + $0x868] sm:$0xf] }
 0x3b1   :  { %4618 = vmatpush.bf16.msra.mxu2 %v6906_v16  ;;  %v7015_v16 = vld [vmem:[#allocation3 + $0x764] sm:$0xf0]  ;;  %v7692_v37 = vld [vmem:[#allocation3 + $0x880] sm:$0xf0] }
 0x3b2   :  { %4631 = vmatpush.bf16.msra.mxu3 %v7130_v48  ;;  %v8376_v48 = vadd.f32 %v4378_v39, %v4366_v38  ;;  %v7018_v57 = vor.u32 %v7653_v43, %v7015_v16  ;;  %v6350_v38 = vor.u32 %v7489_v1, %v6349_v21  ;;  %v6321_v43 = vld [vmem:[#allocation3 + $0x1d8] sm:$0xf]  ;;  %v7482_v16 = vld [vmem:[#allocation3 + $0x1f0] sm:$0xf0]  ;;  %v7162_v49 = vor.u32 %v7692_v37, %v7161_v36  ;;  %v7615_v21 = vld [vmem:[#allocation3 + $0x618] sm:$0xf0] }
 0x3b3   :  { %4644 = vmatpush.bf16.msrb.mxu0 %v6238_v53  ;;  %4656 = vmatpush.bf16.msrb.mxu1 %v6490_v45  ;;  %v6987_v53 = vld [vmem:[#allocation3 + $0x72c] sm:$0xf0]  ;;  %v4367_v62 = vpop.f32.mrf.mxu2  ;;  %v4406_v32 = vpop.f32.mrf.mxu1 }
 0x3b4   :  { %v4721_v45 = vrot.slane %v8376_v48, 4  ;;  %v4758_v2 = vmul.f32 %v8376_v48, %v8376_v48  ;;  %v6990_v17 = vor.u32 %v7646_v50, %v6987_v53  ;;  %v4380_v27 = vpop.f32.mrf.mxu3  ;;  %v6909_v50 = vld [vmem:[#allocation3 + $0x670] sm:$0xf]  ;;  %v7629_v53 = vld [vmem:[#allocation3 + $0x688] sm:$0xf0] }
 0x3b5   :  { %4619 = vmatpush.bf16.msra.mxu2 %v6878_v60  ;;  %v4393_v60 = vpop.f32.mrf.mxu0  ;;  %v6853_v62 = vld [vmem:[#allocation3 + $0x600] sm:$0xf]  ;;  %v6601_v27 = vld [vmem:[#allocation3 + $0x408] sm:$0xf] }
 0x3b6   :  { %4632 = vmatpush.bf16.msra.mxu3 %v7102_v14  ;;  %v7587_v14 = vld [vmem:[#allocation3 + $0x538] sm:$0xf0]  ;;  %v4722_v11 = vadd.f32 %v4721_v45, %v8376_v48  ;;  %v4770_v12 = vrot.slane %v4758_v2, 4  ;;  %v6322_v60 = vor.u32 %v7482_v16, %v6321_v43  ;;  %v6825_v32 = vld [vmem:[#allocation3 + $0x5c8] sm:$0xf] }
 0x3b7   :  { %4645 = vmatpush.bf16.msrb.mxu0 %v6210_v10  ;;  %4657 = vmatpush.bf16.msrb.mxu1 %v6462_v15  ;;  %v6097_v10 = vld [vmem:[#allocation3 + $0x18] sm:$0xf]  ;;  %v4834_v15 = vmax.f32 %v4827_v51, 0.0  ;;  %v6573_v43 = vld [vmem:[#allocation3 + $0x3d0] sm:$0xf] }
 0x3b8   :  { %v4771_v23 = vadd.f32 %v4770_v12, %v4758_v2  ;;  %v6098_v58 = vor.u32 %v7426_v19, %v6097_v10  ;;  %v6910_v2 = vor.u32 %v7629_v53, %v6909_v50  ;;  %v7622_v10 = vld [vmem:[#allocation3 + $0x650] sm:$0xf0]  ;;  %v7105_v12 = vld [vmem:[#allocation3 + $0x7f8] sm:$0xf]  ;;  %v7545_v16 = vld [vmem:[#allocation3 + $0x3e8] sm:$0xf0] }
 0x3b9   :  { %4620 = vmatpush.bf16.msra.mxu2 %v6850_v54  ;;  %v7189_v54 = vld [vmem:[#allocation3 + $0x8a0] sm:$0xf]  ;;  %v8384_v39 = vadd.f32 1e-05, %v4834_v15  ;;  %v7559_v15 = vld [vmem:[#allocation3 + $0x458] sm:$0xf0] }
 0x3ba   :  { %4633 = vmatpush.bf16.msra.mxu3 %v7074_v20  ;;  %v6742_v20 = vor.u32 %v7587_v14, %v6741_v59  ;;  %v7190_v28 = vor.u32 %v7699_v0, %v7189_v54  ;;  %v7685_v59 = vld [vmem:[#allocation3 + $0x848] sm:$0xf0]  ;;  %v7566_v14 = vld [vmem:[#allocation3 + $0x490] sm:$0xf0]  ;;  %v6882_v0 = vor.u32 %v7622_v10, %v6881_v4  ;;  %v6993_v10 = vld [vmem:[#allocation3 + $0x718] sm:$0xf] }
 0x3bb   :  { %4646 = vmatpush.bf16.msrb.mxu0 %v6182_v3  ;;  %4658 = vmatpush.bf16.msrb.mxu1 %v6434_v30  ;;  %v4723_v3 = vrot.slane %v4722_v11, 2  ;;  %v6937_v30 = vld [vmem:[#allocation3 + $0x6a8] sm:$0xf]  ;;  %7768 = vrsqrt.f32 %v8384_v39  ;;  %v7657_v50 = vld [vmem:[#allocation3 + $0x768] sm:$0xf0]  ;;  %vm4854_vm2 = vweird.f32 %v8384_v39 }
 0x3bc   :  { %v6938_v44 = vor.u32 %v7636_v31, %v6937_v30  ;;  %v7594_v4 = vld [vmem:[#allocation3 + $0x570] sm:$0xf0] }
 0x3bd   :  { %4621 = vmatpush.bf16.msra.mxu2 %v6822_v25  ;;  %v7580_v25 = vld [vmem:[#allocation3 + $0x500] sm:$0xf0]  ;;  %v4724_v35 = vadd.f32 %v4723_v3, %v4722_v11  ;;  %v7077_v3 = vld [vmem:[#allocation3 + $0x7c0] sm:$0xf] }
 0x3be   :  { %4634 = vmatpush.bf16.msra.mxu3 %v7046_v34  ;;  %v4772_v34 = vrot.slane %v4771_v23, 2 }
 0x3bf   :  { %4647 = vmatpush.bf16.msrb.mxu0 %v6154_v40  ;;  %4659 = vmatpush.bf16.msrb.mxu1 %v6406_v56  ;;  %v6714_v40 = vor.u32 %v7580_v25, %v6713_v24  ;;  %v6854_v25 = vor.u32 %v7615_v21, %v6853_v62 }
 0x3c0   :  { %v4773_v61 = vadd.f32 %v4772_v34, %v4771_v23  ;;  %v7671_v23 = vld [vmem:[#allocation3 + $0x7d8] sm:$0xf0]  ;;  %v7664_v34 = vld [vmem:[#allocation3 + $0x7a0] sm:$0xf0] }
 0x3c1   :  { %4622 = vmatpush.bf16.msra.mxu2 %v6794_v9  ;;  %v4725_v9 = vrot.slane %v4724_v35, 1  ;;  %v7078_v31 = vor.u32 %v7671_v23, %v7077_v3 }
 0x3c2   :  { %4635 = vmatpush.bf16.msra.mxu3 %v7018_v57  ;;  %v4774_v51 = vrot.slane %v4773_v61, 1  ;;  %v7133_v57 = vld [vmem:[#allocation3 + $0x830] sm:$0xf] }
 0x3c3   :  { %4648 = vmatpush.bf16.msrb.mxu0 %v6126_v5  ;;  %4660 = vmatpush.bf16.msrb.mxu1 %v6378_v13  ;;  %v4726_v56 = vadd.f32 %v4725_v9, %v4724_v35  ;;  %v6657_v5 = vld [vmem:[#allocation3 + $0x478] sm:$0xf]  ;;  %v7134_v6 = vor.u32 %v7685_v59, %v7133_v57  ;;  %v6629_v13 = vld [vmem:[#allocation3 + $0x440] sm:$0xf]  ;;  %v7608_v35 = vld [vmem:[#allocation3 + $0x5e0] sm:$0xf0] }
 0x3c4   :  { %v4775_v29 = vadd.f32 %v4774_v51, %v4773_v61  ;;  %v6574_v51 = vor.u32 %v7545_v16, %v6573_v43 }
 0x3c5   :  { %4623 = vmatpush.bf16.msra.mxu2 %v6766_v52  ;;  %v8390_v45 = vmul.f32 0.125, %v4726_v56  ;;  %v7678_v52 = vld [vmem:[#allocation3 + $0x810] sm:$0xf0] }
 0x3c6   :  { %4636 = vmatpush.bf16.msra.mxu3 %v6990_v17  ;;  %v4814_v19 = vmul.f32 0.125, %v4775_v29  ;;  %v8394_v17 = vpop.eup %7768  ;;  %v7538_v29 = vld [vmem:[#allocation3 + $0x3b0] sm:$0xf0] }
 0x3c7   :  { %4649 = vmatpush.bf16.msrb.mxu0 %v6098_v58  ;;  %4661 = vmatpush.bf16.msrb.mxu1 %v6350_v38  ;;  %v4821_v11 = vmul.f32 %v8390_v45, %v8390_v45  ;;  %v4849_v58 = vmul.f32 %v8394_v17, %v8384_v39  ;;  %v4443_v30 = vpop.f32.mrf.mxu0  ;;  %vm4855_vm14 = vweird.f32 %v8394_v17 }
 0x3c8   :  { %4624 = vmatmul.bf16.vlgmr.msra.gmra.mxu2 %v8329_v18  ;;  %vm4856_vm3 = vmor %vm4854_vm2, %vm4855_vm14 }
 0x3c9   :  { %4668 = vmatpush.bf16.msrb.mxu2 %v6742_v20  ;;  %4637 = vmatmul.bf16.vlgmr.msra.gmra.mxu3 %v8334_v42  ;;  %v4828_v54 = vsub.f32 %v4814_v19, %v4821_v11  ;;  %v7106_v20 = vor.u32 %v7678_v52, %v7105_v12  ;;  %v4850_v37 = vmul.f32 %v8394_v17, %v4849_v58  ;;  %v7650_v19 = vld [vmem:[#allocation3 + $0x730] sm:$0xf0] }
 0x3ca   :  { %4681 = vmatpush.bf16.msrb.mxu3 %v6966_v63  ;;  %4650 = vmatmul.bf16.vlgmr.msrb.gmra.mxu0 %v8314_v7  ;;  %v6658_v7 = vor.u32 %v7566_v14, %v6657_v5  ;;  %v6630_v63 = vor.u32 %v7559_v15, %v6629_v13  ;;  %v6994_v21 = vor.u32 %v7650_v19, %v6993_v10 }
 0x3cb   :  { %4694 = vmatpush.bf16.msra.mxu0 %v7190_v28  ;;  %4662 = vmatpush.bf16.msrb.mxu1 %v6322_v60  ;;  %v4835_v1 = vmax.f32 %v4828_v54, 0.0  ;;  %v7552_v28 = vld [vmem:[#allocation3 + $0x420] sm:$0xf0]  ;;  %v4417_v38 = vpop.f32.mrf.mxu2  ;;  %v8404_v53 = vpop.f32.mrf.mxu1  ;;  %v4851_v59 = vmul.f32 0.5, %v4850_v37  ;;  %v6798_v60 = vor.u32 %v7601_v47, %v6797_v46 }
 0x3cc   :  { %v6602_v36 = vor.u32 %v7552_v28, %v6601_v27  ;;  %v4418_v9 = vadd.f32 %v4417_v38, %v8378_v26  ;;  %v4430_v61 = vpop.f32.mrf.mxu3 }
 0x3cd   :  { %4669 = vmatpush.bf16.msrb.mxu2 %v6714_v40  ;;  %v8399_v24 = vadd.f32 1e-05, %v4835_v1  ;;  %v6826_v40 = vor.u32 %v7608_v35, %v6825_v32  ;;  %v4852_v54 = vsub.f32 1.5, %v4851_v59 }
 0x3ce   :  { %4682 = vmatpush.bf16.msrb.mxu3 %v6938_v44  ;;  %4663 = vmatmul.bf16.vlgmr.msrb.gmra.mxu1 %v8318_v55  ;;  %v7049_v55 = vld [vmem:[#allocation3 + $0x788] sm:$0xf]  ;;  %v4431_v56 = vadd.f32 %v4430_v61, %v4418_v9 }
 0x3cf   :  { %4695 = vmatpush.bf16.msra.mxu0 %v7162_v49  ;;  %7770 = vrsqrt.f32 %v8399_v24  ;;  %v7050_v44 = vor.u32 %v7664_v34, %v7049_v55  ;;  %v7021_v49 = vld [vmem:[#allocation3 + $0x750] sm:$0xf]  ;;  %vm4864_vm0 = vweird.f32 %v8399_v24 }
 0x3d0   :  { %v8407_v5 = vadd.f32 %v4443_v30, %v4431_v56  ;;  %v7022_v14 = vor.u32 %v7657_v50, %v7021_v49 }
 0x3d1   :  { %4670 = vmatpush.bf16.msrb.mxu2 %v6686_v41  ;;  %v6545_v41 = vld [vmem:[#allocation3 + $0x398] sm:$0xf] }
 0x3d2   :  { %4683 = vmatpush.bf16.msrb.mxu3 %v6910_v2  ;;  %v4445_v2 = vpop.f32.mrf.mxu0  ;;  %v4727_v12 = vrot.slane %v8407_v5, 4  ;;  %v4759_v52 = vmul.f32 %v8407_v5, %v8407_v5 }
 0x3d3   :  { %4696 = vmatpush.bf16.msra.mxu0 %v7134_v6  ;;  %v6769_v6 = vld [vmem:[#allocation3 + $0x558] sm:$0xf]  ;;  %v4419_v13 = vpop.f32.mrf.mxu2  ;;  %v4458_v3 = vpop.f32.mrf.mxu1 }
 0x3d4   :  { %v4776_v62 = vrot.slane %v4759_v52, 4  ;;  %v4432_v1 = vpop.f32.mrf.mxu3 }
 0x3d5   :  { %4671 = vmatpush.bf16.msrb.mxu2 %v6658_v7  ;;  %v7771_v57 = vpop.eup %7770  ;;  %v6546_v7 = vor.u32 %v7538_v29, %v6545_v41 }
 0x3d6   :  { %4684 = vmatpush.bf16.msrb.mxu3 %v6882_v0  ;;  %v4859_v26 = vmul.f32 %v7771_v57, %v8399_v24  ;;  %v6770_v0 = vor.u32 %v7594_v4, %v6769_v6  ;;  %vm4865_vm13 = vweird.f32 %v7771_v57  ;;  %v4777_v58 = vadd.f32 %v4776_v62, %v4759_v52 }
 0x3d7   :  { %4697 = vmatpush.bf16.msra.mxu0 %v7106_v20  ;;  %v4728_v20 = vadd.f32 %v4727_v12, %v8407_v5  ;;  %vm4866_vm4 = vmor %vm4864_vm0, %vm4865_vm13 }
 0x3d8   :  { %v4860_v11 = vmul.f32 %v7771_v57, %v4859_v26  ;;  %v4778_v30 = vrot.slane %v4777_v58, 2 }
 0x3d9   :  { %4672 = vmatpush.bf16.msrb.mxu2 %v6630_v63  ;;  %v4729_v63 = vrot.slane %v4728_v20, 2 }
 0x3da   :  { %4685 = vmatpush.bf16.msrb.mxu3 %v6854_v25  ;;  %v4861_v15 = vmul.f32 0.5, %v4860_v11  ;;  %v4853_v25 = vmul.f32 %v8394_v17, %v4852_v54  ;;  %v4779_v34 = vadd.f32 %v4778_v30, %v4777_v58 }
 0x3db   :  { %4698 = vmatpush.bf16.msra.mxu0 %v7078_v31  ;;  %v4730_v28 = vadd.f32 %v4729_v63, %v4728_v20 }
 0x3dc   :  { %v4862_v23 = vsub.f32 1.5, %v4861_v15  ;;  %v4857_v35 = vsel %vm4856_vm3, %v8394_v17, %v4853_v25  ;;  %v4780_v37 = vrot.slane %v4779_v34, 1 }
 0x3dd   :  { %4673 = vmatpush.bf16.msrb.mxu2 %v6602_v36  ;;  %v4731_v24 = vrot.slane %v4730_v28, 1 }
 0x3de   :  { %4686 = vmatpush.bf16.msrb.mxu3 %v6826_v40  ;;  %v4863_v27 = vmul.f32 %v7771_v57, %v4862_v23 }
 0x3df   :  { %4699 = vmatpush.bf16.msra.mxu0 %v7050_v44  ;;  %v4732_v36 = vadd.f32 %v4731_v24, %v4730_v28 }
 0x3e0   :  { %v4867_v31 = vsel %vm4866_vm4, %v7771_v57, %v4863_v27 }
 0x3e1   :  { %4674 = vmatpush.bf16.msrb.mxu2 %v6574_v51  ;;  %v4925_v32 = vrot.slane %v4867_v31, 7  ;;  %v8424_v40 = vmul.f32 0.125, %v4732_v36 }
 0x3e2   :  { %4687 = vmatpush.bf16.msrb.mxu3 %v6798_v60 }
 0x3e3   :  { %4700 = vmatpush.bf16.msra.mxu0 %v7022_v14  ;;  %v8422_v55 = vsel %vm434_vm15, %v4857_v35, %v4925_v32 }
 0x3e5   :  { %4675 = vmatpush.bf16.msrb.mxu2 %v6546_v7 }
 0x3e6   :  { %4688 = vmatpush.bf16.msrb.mxu3 %v6770_v0 }
 0x3e7   :  { %4701 = vmatpush.bf16.msra.mxu0 %v6994_v21  ;;  %v4495_v38 = vpop.f32.mrf.mxu0 }
 0x3e8   :  { %4676 = vmatmul.bf16.vlgmr.msrb.gmra.mxu2 %v8322_v33  ;;  %v4781_v33 = vadd.f32 %v4780_v37, %v4779_v34 }
 0x3e9   :  { %4689 = vmatmul.bf16.vlgmr.msrb.gmra.mxu3 %v8329_v18  ;;  %v4822_v18 = vmul.f32 %v8424_v40, %v8424_v40 }
 0x3ea   :  { %4702 = vmatmul.bf16.vlgmr.msra.gmra.mxu0 %v8334_v42  ;;  %v4815_v43 = vmul.f32 0.125, %v4781_v33 }
 0x3eb   :  { %v4469_v39 = vpop.f32.mrf.mxu2  ;;  %v4508_v17 = vpop.f32.mrf.mxu1 }
 0x3ec   :  { %v4470_v42 = vadd.f32 %v4469_v39, %v8404_v53  ;;  %v4482_v16 = vpop.f32.mrf.mxu3  ;;  %v4829_v44 = vsub.f32 %v4815_v43, %v4822_v18 }
 0x3ee   :  { %v4483_v9 = vadd.f32 %v4482_v16, %v4470_v42  ;;  %v4836_v50 = vmax.f32 %v4829_v44, 0.0 }
 0x3ef   :  { %v4497_v61 = vpop.f32.mrf.mxu0 }
 0x3f0   :  { %v4496_v46 = vadd.f32 %v4495_v38, %v4483_v9  ;;  %v4843_v41 = vadd.f32 1e-05, %v4836_v50 }
 0x3f2   :  { %v8429_v47 = vadd.f32 %v4508_v17, %v4496_v46  ;;  %7772 = vrsqrt.f32 %v4843_v41  ;;  %vm4874_vm8 = vweird.f32 %v4843_v41 }
 0x3f3   :  { %v4471_v49 = vpop.f32.mrf.mxu2  ;;  %v4510_v59 = vpop.f32.mrf.mxu1 }
 0x3f4   :  { %v4733_v56 = vrot.slane %v8429_v47, 4  ;;  %v4760_v51 = vmul.f32 %v8429_v47, %v8429_v47  ;;  %v4484_v57 = vpop.f32.mrf.mxu3 }
 0x3f6   :  { %v4734_v60 = vadd.f32 %v4733_v56, %v8429_v47  ;;  %v4782_v53 = vrot.slane %v4760_v51, 4 }
 0x3f8   :  { %v4735_v29 = vrot.slane %v4734_v60, 2  ;;  %v4783_v2 = vadd.f32 %v4782_v53, %v4760_v51  ;;  %v7773_v52 = vpop.eup %7772 }
 0x3f9   :  { %v4869_v15 = vmul.f32 %v7773_v52, %v4843_v41  ;;  %vm4875_vm5 = vweird.f32 %v7773_v52 }
 0x3fa   :  { %v4736_v26 = vadd.f32 %v4735_v29, %v4734_v60  ;;  %v4784_v14 = vrot.slane %v4783_v2, 2  ;;  %vm4876_vm9 = vmor %vm4874_vm8, %vm4875_vm5  ;;  %vm4937_vm8 = vcmask 1045508  }
 0x3fb   :  { %v4870_v1 = vmul.f32 %v7773_v52, %v4869_v15 }
 0x3fc   :  { %v4737_v6 = vrot.slane %v4736_v26, 1  ;;  %v4785_v4 = vadd.f32 %v4784_v14, %v4783_v2 }
 0x3fd   :  { %v4871_v27 = vmul.f32 0.5, %v4870_v1 }
 0x3fe   :  { %v4738_v10 = vadd.f32 %v4737_v6, %v4736_v26  ;;  %v4786_v19 = vrot.slane %v4785_v4, 1 }
 0x3ff   :  { %v4872_v32 = vsub.f32 1.5, %v4871_v27 }
 0x400   :  { %v4787_v11 = vadd.f32 %v4786_v19, %v4785_v4  ;;  %v8435_v12 = vmul.f32 0.125, %v4738_v10 }
 0x401   :  { %v4873_v37 = vmul.f32 %v7773_v52, %v4872_v32 }
 0x402   :  { %v4816_v7 = vmul.f32 0.125, %v4787_v11  ;;  %v4823_v54 = vmul.f32 %v8435_v12, %v8435_v12 }
 0x403   :  { %v4877_v39 = vsel %vm4876_vm9, %v7773_v52, %v4873_v37  ;;  %vm4939_vm9 = vcmask 1043456  }
 0x404   :  { %v4830_v0 = vsub.f32 %v4816_v7, %v4823_v54  ;;  %v4926_v42 = vrot.slane %v4877_v39, 6 }
 0x406   :  { %v4837_v20 = vmax.f32 %v4830_v0, 0.0 }
 0x407   :  { %v4547_v13 = vpop.f32.mrf.mxu0 }
 0x408   :  { %v4844_v62 = vadd.f32 1e-05, %v4837_v20 }
 0x40a   :  { %7774 = vrsqrt.f32 %v4844_v62  ;;  %vm4884_vm6 = vweird.f32 %v4844_v62 }
 0x40b   :  { %v4521_v21 = vpop.f32.mrf.mxu2  ;;  %v4560_v63 = vpop.f32.mrf.mxu1 }
 0x40c   :  { %v4534_v3 = vpop.f32.mrf.mxu3 }
 0x40d   :  { %v4535_v23 = vadd.f32 %v4534_v3, %v4521_v21 }
 0x40f   :  { %v4548_v58 = vadd.f32 %v4547_v13, %v4535_v23  ;;  %v4549_v25 = vpop.f32.mrf.mxu0 }
 0x410   :  { %v7775_v30 = vpop.eup %7774 }
 0x411   :  { %v4561_v28 = vadd.f32 %v4560_v63, %v4548_v58  ;;  %v4879_v35 = vmul.f32 %v7775_v30, %v4844_v62  ;;  %vm4885_vm7 = vweird.f32 %v7775_v30 }
 0x412   :  { %vm4886_vm10 = vmor %vm4884_vm6, %vm4885_vm7  ;;  %vm4935_vm7 = vcmask 1044484  }
 0x413   :  { %v4523_v31 = vpop.f32.mrf.mxu2  ;;  %v4562_v34 = vpop.f32.mrf.mxu1  ;;  %v4880_v36 = vmul.f32 %v7775_v30, %v4879_v35 }
 0x414   :  { %v4536_v24 = vpop.f32.mrf.mxu3 }
 0x415   :  { %v4881_v38 = vmul.f32 0.5, %v4880_v36 }
 0x417   :  { %v4882_v33 = vsub.f32 1.5, %v4881_v38 }
 0x419   :  { %v4883_v43 = vmul.f32 %v7775_v30, %v4882_v33 }
 0x41b   :  { %v4887_v18 = vsel %vm4886_vm10, %v7775_v30, %v4883_v43 }
 0x41c   :  { %v4927_v16 = vrot.slane %v4887_v18, 5 }
 0x41e   :  { %v4933_v17 = vsel %vm4932_vm11, %v4926_v42, %v4927_v16 }
 0x41f   :  { %v8442_v9 = vsel %vm436_vm1, %v8422_v55, %v4933_v17 }
 0x427   :  { %v4599_v61 = vpop.f32.mrf.mxu0 }
 0x42b   :  { %v4573_v44 = vpop.f32.mrf.mxu2  ;;  %v4612_v49 = vpop.f32.mrf.mxu1 }
 0x42c   :  { %v4586_v46 = vpop.f32.mrf.mxu3  ;;  %v8444_v60 = vadd.f32 %v4573_v44, %v4561_v28 }
 0x42d   :  { %v4600_v59 = vadd.f32 %v4599_v61, %v4586_v46 }
 0x42e   :  { %v4739_v29 = vrot.slane %v8444_v60, 4  ;;  %v4761_v2 = vmul.f32 %v8444_v60, %v8444_v60 }
 0x42f   :  { %v4601_v50 = vpop.f32.mrf.mxu0  ;;  %v4613_v41 = vadd.f32 %v4612_v49, %v4600_v59 }
 0x430   :  { %v4740_v4 = vadd.f32 %v4739_v29, %v8444_v60  ;;  %v4788_v10 = vrot.slane %v4761_v2, 4 }
 0x432   :  { %v4741_v54 = vrot.slane %v4740_v4, 2  ;;  %v4789_v0 = vadd.f32 %v4788_v10, %v4761_v2 }
 0x433   :  { %v4575_v56 = vpop.f32.mrf.mxu2  ;;  %v4614_v57 = vpop.f32.mrf.mxu1 }
 0x434   :  { %v4588_v51 = vpop.f32.mrf.mxu3  ;;  %v4742_v23 = vadd.f32 %v4741_v54, %v4740_v4  ;;  %v4790_v63 = vrot.slane %v4789_v0, 2 }
 0x436   :  { %v4743_v30 = vrot.slane %v4742_v23, 1  ;;  %v4791_v31 = vadd.f32 %v4790_v63, %v4789_v0 }
 0x438   :  { %v4744_v24 = vadd.f32 %v4743_v30, %v4742_v23  ;;  %v4792_v34 = vrot.slane %v4791_v31, 1 }
 0x43a   :  { %v4793_v38 = vadd.f32 %v4792_v34, %v4791_v31  ;;  %v8458_v33 = vmul.f32 0.125, %v4744_v24 }
 0x43c   :  { %v4817_v42 = vmul.f32 0.125, %v4793_v38  ;;  %v4824_v16 = vmul.f32 %v8458_v33, %v8458_v33 }
 0x43e   :  { %v4831_v50 = vsub.f32 %v4817_v42, %v4824_v16 }
 0x447   :  { %v4651_v53 = vpop.f32.mrf.mxu0 }
 0x44b   :  { %v4625_v55 = vpop.f32.mrf.mxu2  ;;  %v4664_v6 = vpop.f32.mrf.mxu1 }
 0x44c   :  { %v4626_v26 = vadd.f32 %v4625_v55, %v4613_v41  ;;  %v4638_v14 = vpop.f32.mrf.mxu3  ;;  %v4665_v17 = vadd.f32 %v4664_v6, %v4651_v53  ;;  %v4838_v41 = vmax.f32 %v4831_v50, 0.0 }
 0x44e   :  { %v8450_v19 = vadd.f32 %v4638_v14, %v4626_v26  ;;  %v4845_v4 = vadd.f32 1e-05, %v4838_v41 }
 0x44f   :  { %v4653_v11 = vpop.f32.mrf.mxu0 }
 0x450   :  { %v4745_v52 = vrot.slane %v8450_v19, 4  ;;  %v4762_v7 = vmul.f32 %v8450_v19, %v8450_v19  ;;  %vm4894_vm4 = vweird.f32 %v4845_v4 }
 0x452   :  { %v4746_v13 = vadd.f32 %v4745_v52, %v8450_v19  ;;  %v4794_v15 = vrot.slane %v4762_v7, 4 }
 0x453   :  { %v4627_v20 = vpop.f32.mrf.mxu2  ;;  %v4666_v3 = vpop.f32.mrf.mxu1 }
 0x454   :  { %v4747_v62 = vrot.slane %v4746_v13, 2  ;;  %v4795_v21 = vadd.f32 %v4794_v15, %v4762_v7  ;;  %v4640_v1 = vpop.f32.mrf.mxu3 }
 0x456   :  { %v4748_v58 = vadd.f32 %v4747_v62, %v4746_v13  ;;  %v4796_v25 = vrot.slane %v4795_v21, 2 }
 0x458   :  { %v4749_v27 = vrot.slane %v4748_v58, 1  ;;  %v4797_v28 = vadd.f32 %v4796_v25, %v4795_v21 }
 0x45a   :  { %v4750_v32 = vadd.f32 %v4749_v27, %v4748_v58  ;;  %v4798_v35 = vrot.slane %v4797_v28, 1 }
 0x45c   :  { %v4799_v36 = vadd.f32 %v4798_v35, %v4797_v28  ;;  %v8456_v37 = vmul.f32 0.125, %v4750_v32 }
 0x45e   :  { %v4818_v39 = vmul.f32 0.125, %v4799_v36  ;;  %v4825_v43 = vmul.f32 %v8456_v37, %v8456_v37 }
 0x460   :  { %v4832_v61 = vsub.f32 %v4818_v39, %v4825_v43 }
 0x462   :  { %v4839_v51 = vmax.f32 %v4832_v61, 0.0 }
 0x464   :  { %v4846_v55 = vadd.f32 1e-05, %v4839_v51 }
 0x466   :  { %7776 = vrsqrt.f32 %v4846_v55  ;;  %vm4904_vm14 = vweird.f32 %v4846_v55 }
 0x467   :  { %v4703_v18 = vpop.f32.mrf.mxu0  ;;  %7778 = vrsqrt.f32 %v4845_v4 }
 0x46b   :  { %v4677_v44 = vpop.f32.mrf.mxu2 }
 0x46c   :  { %v4678_v46 = vadd.f32 %v4677_v44, %v4665_v17  ;;  %v4690_v49 = vpop.f32.mrf.mxu3  ;;  %v7777_v20 = vpop.eup %7776  ;;  %v4708_v44 = vld [vmem:[#allocation10 + $0x4] ss:$8 sm:$0xf] }
 0x46d   :  { %v7779_v1 = vpop.eup %7778  ;;  %v4899_v3 = vmul.f32 %v7777_v20, %v4846_v55  ;;  %vm4905_vm12 = vweird.f32 %v7777_v20 }
 0x46e   :  { %v4691_v56 = vadd.f32 %v4690_v49, %v4678_v46  ;;  %v4889_v58 = vmul.f32 %v7779_v1, %v4845_v4  ;;  %vm4895_vm13 = vweird.f32 %v7779_v1  ;;  %vm4906_vm0 = vmor %vm4904_vm14, %vm4905_vm12  ;;  %v4709_v49 = vld [vmem:[#allocation10 + $0x4] ss:$8 sm:$0xf0] }
 0x46f   :  { %v4705_v57 = vpop.f32.mrf.mxu0  ;;  %v4900_v27 = vmul.f32 %v7777_v20, %v4899_v3  ;;  %vm4896_vm2 = vmor %vm4894_vm4, %vm4895_vm13 }
 0x470   :  { %v8464_v59 = vadd.f32 %v4703_v18, %v4691_v56  ;;  %v4890_v30 = vmul.f32 %v7779_v1, %v4889_v58  ;;  %v4710_v57 = vor.u32 %v4709_v49, %v4708_v44 }
 0x471   :  { %v4901_v32 = vmul.f32 0.5, %v4900_v27 }
 0x472   :  { %v4751_v29 = vrot.slane %v8464_v59, 4  ;;  %v4763_v2 = vmul.f32 %v8464_v59, %v8464_v59  ;;  %v4891_v35 = vmul.f32 0.5, %v4890_v30 }
 0x473   :  { %v4679_v26 = vpop.f32.mrf.mxu2  ;;  %v4902_v24 = vsub.f32 1.5, %v4901_v32 }
 0x474   :  { %v4752_v53 = vadd.f32 %v4751_v29, %v8464_v59  ;;  %v4800_v14 = vrot.slane %v4763_v2, 4  ;;  %v4692_v6 = vpop.f32.mrf.mxu3  ;;  %v4892_v36 = vsub.f32 1.5, %v4891_v35  ;;  %v4712_v26 = vld [vmem:[#allocation10 + $0x5] ss:$8 sm:$0xf] }
 0x475   :  { %v4903_v39 = vmul.f32 %v7777_v20, %v4902_v24 }
 0x476   :  { %v4753_v10 = vrot.slane %v4752_v53, 2  ;;  %v4801_v11 = vadd.f32 %v4800_v14, %v4763_v2  ;;  %v4893_v18 = vmul.f32 %v7779_v1, %v4892_v36 }
 0x477   :  { %v4907_v16 = vsel %vm4906_vm0, %v7777_v20, %v4903_v39 }
 0x478   :  { %v4754_v52 = vadd.f32 %v4753_v10, %v4752_v53  ;;  %v4802_v7 = vrot.slane %v4801_v11, 2  ;;  %v4897_v61 = vsel %vm4896_vm2, %v7779_v1, %v4893_v18  ;;  %v4929_v46 = vrot.slane %v4907_v16, 3  ;;  %v4713_v53 = vld [vmem:[#allocation10 + $0x5] ss:$8 sm:$0xf0] }
 0x479   :  { %v4928_v56 = vrot.slane %v4897_v61, 4 }
 0x47a   :  { %v4755_v54 = vrot.slane %v4754_v52, 1  ;;  %v4803_v0 = vadd.f32 %v4802_v7, %v4801_v11 }
 0x47b   :  { %v4936_v29 = vsel %vm4935_vm7, %v4928_v56, %v4929_v46 }
 0x47c   :  { %v4756_v13 = vadd.f32 %v4755_v54, %v4754_v52  ;;  %v4804_v15 = vrot.slane %v4803_v0, 1  ;;  %v4714_v52 = vor.u32 %v4713_v53, %v4712_v26 }
 0x47e   :  { %v4805_v62 = vadd.f32 %v4804_v15, %v4803_v0  ;;  %v8470_v21 = vmul.f32 0.125, %v4756_v13 }
 0x480   :  { %v4819_v23 = vmul.f32 0.125, %v4805_v62  ;;  %v4826_v63 = vmul.f32 %v8470_v21, %v8470_v21 }
 0x482   :  { %v4833_v25 = vsub.f32 %v4819_v23, %v4826_v63 }
 0x484   :  { %v4840_v28 = vmax.f32 %v4833_v25, 0.0 }
 0x486   :  { %v4847_v31 = vadd.f32 1e-05, %v4840_v28 }
 0x488   :  { %7780 = vrsqrt.f32 %v4847_v31  ;;  %vm4914_vm5 = vweird.f32 %v4847_v31 }
 0x48e   :  { %v7781_v34 = vpop.eup %7780 }
 0x48f   :  { %v4909_v38 = vmul.f32 %v7781_v34, %v4847_v31  ;;  %vm4915_vm3 = vweird.f32 %v7781_v34 }
 0x490   :  { %vm4916_vm6 = vmor %vm4914_vm5, %vm4915_vm3 }
 0x491   :  { %v4910_v43 = vmul.f32 %v7781_v34, %v4909_v38 }
 0x493   :  { %v4911_v42 = vmul.f32 0.5, %v4910_v43 }
 0x495   :  { %v4912_v17 = vsub.f32 1.5, %v4911_v42 }
 0x497   :  { %v4913_v50 = vmul.f32 %v7781_v34, %v4912_v17 }
 0x499   :  { %v4917_v51 = vsel %vm4916_vm6, %v7781_v34, %v4913_v50 }
 0x49a   :  { %v4930_v41 = vrot.slane %v4917_v51, 2 }
 0x49c   :  { %v4938_v2 = vsel %vm4937_vm8, %v4936_v29, %v4930_v41 }
 0x49d   :  { %v4940_v55 = vsel %vm4939_vm9, %v8442_v9, %v4938_v2 }
 0x49e   :  { %v4942_v14 = vmul.f32 %v4940_v55, %v4710_v57 }
 0x4a0   :  { %v4944_v6 = vperm.slane %v4942_v14, 0  ;;  %v4945_v4 = vperm.slane %v4942_v14, 1  ;;  %v4946_v10 = vperm.slane %v4942_v14, 2  ;;  %v4947_v11 = vperm.slane %v4942_v14, 3 }
 0x4a1   :  { %v4948_v7 = vperm.slane %v4942_v14, 4  ;;  %v4949_v54 = vperm.slane %v4942_v14, 5  ;;  %v4950_v0 = vperm.slane %v4942_v14, 6 }
 0x4a2   :  { %v4958_v13 = vmul.f32 %v4944_v6, %v8371_v22  ;;  %v4959_v15 = vmul.f32 %v4945_v4, %v8390_v45  ;;  %v4960_v20 = vmul.f32 %v4946_v10, %v8424_v40  ;;  %v4961_v62 = vmul.f32 %v4947_v11, %v8435_v12 }
 0x4a3   :  { %v4962_v9 = vmul.f32 %v4948_v7, %v8458_v33  ;;  %v4963_v1 = vmul.f32 %v4949_v54, %v8456_v37  ;;  %v4964_v3 = vmul.f32 %v4950_v0, %v8470_v21  ;;  %v4986_v23 = vmul.f32 %v4944_v6, %v8359_v8 }
 0x4a4   :  { %v4972_v63 = vrot.slane %v4959_v15, 7  ;;  %v4973_v58 = vrot.slane %v4960_v20, 6  ;;  %v4974_v25 = vrot.slane %v4961_v62, 5  ;;  %v4987_v27 = vmul.f32 %v4945_v4, %v8376_v48 }
 0x4a5   :  { %v4975_v22 = vrot.slane %v4962_v9, 4  ;;  %v4976_v28 = vrot.slane %v4963_v1, 3  ;;  %v4977_v45 = vrot.slane %v4964_v3, 2  ;;  %v4988_v40 = vmul.f32 %v4946_v10, %v8407_v5 }
 0x4a6   :  { %v4978_v12 = vsel %vm434_vm15, %v4958_v13, %v4972_v63  ;;  %v4979_v33 = vsel %vm4932_vm11, %v4973_v58, %v4974_v25  ;;  %v4989_v37 = vmul.f32 %v4947_v11, %v8429_v47  ;;  %v4990_v21 = vmul.f32 %v4948_v7, %v8444_v60 }
 0x4a7   :  { %v4980_v8 = vsel %vm436_vm1, %v4978_v12, %v4979_v33  ;;  %v4981_v30 = vsel %vm4935_vm7, %v4975_v22, %v4976_v28  ;;  %v4992_v31 = vmul.f32 %v4950_v0, %v8464_v59  ;;  %v4991_v38 = vmul.f32 %v4949_v54, %v8450_v19 }
 0x4a8   :  { %v4982_v48 = vsel %vm4937_vm8, %v4981_v30, %v4977_v45 }
 0x4a9   :  { %v4983_v32 = vsel %vm4939_vm9, %v4980_v8, %v4982_v48 }
 0x4aa   :  { %v4985_v35 = vsub.f32 %v4714_v52, %v4983_v32 }
 0x4ac   :  { %v4994_v5 = vperm.slane %v4985_v35, 0  ;;  %v4995_v24 = vperm.slane %v4985_v35, 1  ;;  %v4996_v34 = vperm.slane %v4985_v35, 2  ;;  %v4997_v36 = vperm.slane %v4985_v35, 3 }
 0x4ad   :  { %v4998_v47 = vperm.slane %v4985_v35, 4  ;;  %v4999_v39 = vperm.slane %v4985_v35, 5  ;;  %v5000_v60 = vperm.slane %v4985_v35, 6 }
 0x4ae   :  { %v5008_v43 = vadd.f32 %v4994_v5, %v4986_v23  ;;  %v5009_v18 = vadd.f32 %v4995_v24, %v4987_v27  ;;  %v5010_v42 = vadd.f32 %v4996_v34, %v4988_v40  ;;  %v5011_v16 = vadd.f32 %v4997_v36, %v4989_v37 }
 0x4af   :  { %v5012_v17 = vadd.f32 %v4998_v47, %v4990_v21  ;;  %v5013_v59 = vadd.f32 %v4999_v39, %v4991_v38  ;;  %v5014_v61 = vadd.f32 %v5000_v60, %v4992_v31 }
 0x4b0   :  { %v7191_v44 = vmul.f32 -1.442695, %v5008_v43  ;;  %v7192_v46 = vmul.f32 -1.442695, %v5009_v18  ;;  %v7193_v49 = vmul.f32 -1.442695, %v5010_v42 }
 0x4b1   :  { %v7194_v50 = vmul.f32 -1.442695, %v5011_v16  ;;  %v7195_v56 = vmul.f32 -1.442695, %v5012_v17  ;;  %v7196_v51 = vmul.f32 -1.442695, %v5013_v59 }
 0x4b2   :  { %7782 = vpow2.f32 %v7191_v44  ;;  %v7197_v19 = vmul.f32 -1.442695, %v5014_v61 }
 0x4b3   :  { %7784 = vpow2.f32 %v7192_v46 }
 0x4b4   :  { %7786 = vpow2.f32 %v7193_v49 }
 0x4b5   :  { %7788 = vpow2.f32 %v7194_v50 }
 0x4b6   :  { %7790 = vpow2.f32 %v7195_v56 }
 0x4b7   :  { %7792 = vpow2.f32 %v7196_v51 }
 0x4b8   :  { %v7783_v57 = vpop.eup %7782  ;;  %7794 = vpow2.f32 %v7197_v19 }
 0x4b9   :  { %v7785_v41 = vpop.eup %7784  ;;  %v8498_v29 = vadd.f32 1.0, %v7783_v57 }
 0x4ba   :  { %v7787_v2 = vpop.eup %7786  ;;  %v8500_v55 = vadd.f32 1.0, %v7785_v41 }
 0x4bb   :  { %v7789_v26 = vpop.eup %7788  ;;  %v8502_v53 = vadd.f32 1.0, %v7787_v2  ;;  %7796 = vrcp.f32 %v8498_v29  ;;  %v5054_v11 = vand.u32 2147483648, %v8498_v29  ;;  %v5052_v54 = vand.u32 2147483647, %v8498_v29 }
 0x4bc   :  { %v7791_v14 = vpop.eup %7790  ;;  %v8505_v6 = vadd.f32 1.0, %v7789_v26  ;;  %7798 = vrcp.f32 %v8500_v55  ;;  %v5069_v0 = vand.u32 2147483648, %v8500_v55  ;;  %v5067_v15 = vand.u32 2147483647, %v8500_v55 }
 0x4bd   :  { %v7793_v4 = vpop.eup %7792  ;;  %v8508_v10 = vadd.f32 1.0, %v7791_v14  ;;  %7800 = vrcp.f32 %v8502_v53  ;;  %v5082_v20 = vand.u32 2147483647, %v8502_v53  ;;  %v5084_v62 = vand.u32 2147483648, %v8502_v53 }
 0x4be   :  { %v7795_v52 = vpop.eup %7794  ;;  %v8512_v7 = vadd.f32 1.0, %v7793_v4  ;;  %7802 = vrcp.f32 %v8505_v6  ;;  %vm5048_vm15 = vweird.f32 %v8498_v29  ;;  %v5055_v1 = vor.u32 1.1754944e-38, %v5054_v11 }
 0x4bf   :  { %v8517_v13 = vadd.f32 1.0, %v7795_v52  ;;  %7804 = vrcp.f32 %v8508_v10  ;;  %vm5063_vm1 = vweird.f32 %v8500_v55  ;;  %vm8528_vm10 = vcmp.eq.f32.partialorder %v5052_v54, 8.507059e+37 }
 0x4c0   :  { %v5070_v58 = vor.u32 1.1754944e-38, %v5069_v0  ;;  %vm5078_vm11 = vweird.f32 %v8502_v53  ;;  %vm8535_vm13 = vcmp.eq.f32.partialorder %v5067_v15, 8.507059e+37  ;;  %v5085_v45 = vor.u32 1.1754944e-38, %v5084_v62 }
 0x4c1   :  { %v7797_v9 = vpop.eup %7796  ;;  %7806 = vrcp.f32 %v8517_v13  ;;  %v5144_v27 = vand.u32 2147483648, %v8517_v13  ;;  %vm8540_vm0 = vcmp.eq.f32.partialorder %v5082_v20, 8.507059e+37  ;;  %v5097_v21 = vand.u32 2147483647, %v8505_v6 }
 0x4c2   :  { %v7799_v3 = vpop.eup %7798  ;;  %7808 = vrcp.f32 %v8512_v7  ;;  %v5044_v23 = vmul.f32 %v7797_v9, %v8498_v29  ;;  %vm5049_vm12 = vweird.f32 %v7797_v9  ;;  %vm5093_vm4 = vweird.f32 %v8505_v6 }
 0x4c3   :  { %v7801_v25 = vpop.eup %7800  ;;  %v5059_v22 = vmul.f32 %v7799_v3, %v8500_v55  ;;  %vm5064_vm14 = vweird.f32 %v7799_v3  ;;  %v5099_v48 = vand.u32 2147483648, %v8505_v6  ;;  %vm8549_vm5 = vcmp.eq.f32.partialorder %v5097_v21, 8.507059e+37  ;;  %vm5050_vm6 = vmor %vm5048_vm15, %vm5049_vm12 }
 0x4c4   :  { %v7803_v40 = vpop.eup %7802  ;;  %v5045_v12 = vsub.f32 1.0, %v5044_v23  ;;  %v5074_v33 = vmul.f32 %v7801_v25, %v8502_v53  ;;  %vm5079_vm2 = vweird.f32 %v7801_v25  ;;  %vm5108_vm7 = vweird.f32 %v8508_v10  ;;  %vm5065_vm8 = vmor %vm5063_vm1, %vm5064_vm14 }
 0x4c5   :  { %v7805_v8 = vpop.eup %7804  ;;  %v5060_v30 = vsub.f32 1.0, %v5059_v22  ;;  %v5089_v31 = vmul.f32 %v7803_v40, %v8505_v6  ;;  %vm5094_vm3 = vweird.f32 %v7803_v40  ;;  %v5100_v18 = vor.u32 1.1754944e-38, %v5099_v48  ;;  %vm5080_vm15 = vmor %vm5078_vm11, %vm5079_vm2 }
 0x4c6   :  { %v5046_v32 = vmul.f32 %v7797_v9, %v5045_v12  ;;  %v5075_v35 = vsub.f32 1.0, %v5074_v33  ;;  %v5104_v5 = vmul.f32 %v7805_v8, %v8508_v10  ;;  %vm5109_vm9 = vweird.f32 %v7805_v8  ;;  %vm5095_vm1 = vmor %vm5093_vm4, %vm5094_vm3 }
 0x4c7   :  { %v7807_v24 = vpop.eup %7806  ;;  %v5061_v34 = vmul.f32 %v7799_v3, %v5060_v30  ;;  %v5090_v36 = vsub.f32 1.0, %v5089_v31  ;;  %v5112_v41 = vand.u32 2147483647, %v8508_v10  ;;  %v5114_v26 = vand.u32 2147483648, %v8508_v10  ;;  %vm5110_vm11 = vmor %vm5108_vm7, %vm5109_vm9 }
 0x4c8   :  { %v8553_v47 = vpop.eup %7808  ;;  %v5134_v39 = vmul.f32 %v7807_v24, %v8517_v13  ;;  %v5047_v60 = vadd.f32 %v7797_v9, %v5046_v32  ;;  %v5076_v43 = vmul.f32 %v7801_v25, %v5075_v35  ;;  %v5105_v17 = vsub.f32 1.0, %v5104_v5 }
 0x4c9   :  { %v5062_v42 = vadd.f32 %v7799_v3, %v5061_v34  ;;  %v5091_v16 = vmul.f32 %v7803_v40, %v5090_v36  ;;  %v5142_v53 = vand.u32 2147483647, %v8517_v13  ;;  %v5119_v6 = vmul.f32 %v8553_v47, %v8512_v7 }
 0x4ca   :  { %v5135_v59 = vsub.f32 1.0, %v5134_v39  ;;  %v5051_v61 = vsel %vm5050_vm6, %v7797_v9, %v5047_v60  ;;  %v5077_v44 = vadd.f32 %v7801_v25, %v5076_v43  ;;  %v5106_v56 = vmul.f32 %v7805_v8, %v5105_v17 }
 0x4cb   :  { %v5056_v46 = vsel %vm8528_vm10, %v5055_v1, %v5051_v61  ;;  %v5066_v49 = vsel %vm5065_vm8, %v7799_v3, %v5062_v42  ;;  %v5092_v50 = vadd.f32 %v7803_v40, %v5091_v16  ;;  %vm5139_vm10 = vweird.f32 %v7807_v24 }
 0x4cc   :  { %v5136_v51 = vmul.f32 %v7807_v24, %v5135_v59  ;;  %v5071_v19 = vsel %vm8535_vm13, %v5070_v58, %v5066_v49  ;;  %v5081_v57 = vsel %vm5080_vm15, %v7801_v25, %v5077_v44  ;;  %5148 = vst [vmem:[#allocation11] sm:$0xff] %v5056_v46  ;;  %v5107_v55 = vadd.f32 %v7805_v8, %v5106_v56 }
 0x4cd   :  { %v5086_v29 = vsel %vm8540_vm0, %v5085_v45, %v5081_v57  ;;  %v5096_v2 = vsel %vm5095_vm1, %v7803_v40, %v5092_v50  ;;  %5149 = vst [vmem:[#allocation11 + $0x8] sm:$0xff] %v5071_v19  ;;  %v5115_v11 = vor.u32 1.1754944e-38, %v5114_v26  ;;  %vm5138_vm12 = vweird.f32 %v8517_v13 }
 0x4ce   :  { %v5101_v14 = vsel %vm8549_vm5, %v5100_v18, %v5096_v2  ;;  %5150 = vst [vmem:[#allocation11 + $0x10] sm:$0xff] %v5086_v29  ;;  %v5111_v4 = vsel %vm5110_vm11, %v7805_v8, %v5107_v55  ;;  %vm5113_vm13 = vcmp.eq.f32.partialorder %v5112_v41, 8.507059e+37  ;;  %v5120_v52 = vsub.f32 1.0, %v5119_v6  ;;  %vm5140_vm14 = vmor %vm5138_vm12, %vm5139_vm10 }
 0x4cf   :  { %5151 = vst [vmem:[#allocation11 + $0x18] sm:$0xff] %v5101_v14  ;;  %v5137_v54 = vadd.f32 %v7807_v24, %v5136_v51  ;;  %v5145_v0 = vor.u32 1.1754944e-38, %v5144_v27  ;;  %v5116_v15 = vsel %vm5113_vm13, %v5115_v11, %v5111_v4  ;;  %vm5124_vm0 = vweird.f32 %v8553_v47 }
 0x4d0   :  { %v5129_v10 = vand.u32 2147483648, %v8512_v7  ;;  %v5121_v20 = vmul.f32 %v8553_v47, %v5120_v52  ;;  %v5127_v62 = vand.u32 2147483647, %v8512_v7  ;;  %vm5143_vm4 = vcmp.eq.f32.partialorder %v5142_v53, 8.507059e+37  ;;  %5152 = vst [vmem:[#allocation11 + $0x20] sm:$0xff] %v5116_v15 }
 0x4d1   :  { %v5141_v9 = vsel %vm5140_vm14, %v7807_v24, %v5137_v54  ;;  %vm5123_vm2 = vweird.f32 %v8512_v7 }
 0x4d2   :  { %v5146_v1 = vsel %vm5143_vm4, %v5145_v0, %v5141_v9  ;;  %v5122_v13 = vadd.f32 %v8553_v47, %v5121_v20  ;;  %vm5125_vm3 = vmor %vm5123_vm2, %vm5124_vm0  ;;  %v5130_v3 = vor.u32 1.1754944e-38, %v5129_v10  ;;  %vm5128_vm5 = vcmp.eq.f32.partialorder %v5127_v62, 8.507059e+37 }
 0x4d3   :  { %5154 = vst [vmem:[#allocation11 + $0x30] sm:$0xff] %v5146_v1 }
 0x4d4   :  { %v5126_v23 = vsel %vm5125_vm3, %v8553_v47, %v5122_v13 }
 0x4d5   :  { %v5131_v63 = vsel %vm5128_vm5, %v5130_v3, %v5126_v23 }
 0x4d6   :  { %5153 = vst [vmem:[#allocation11 + $0x28] sm:$0xff] %v5131_v63 }
 0x4d7   :  { %5165 = dma.vmem_to_hbm [thread:$0]  %s5161_s16, 896, %s5163_s19, [#allocation7]  }
 0x4d8   :  { %7962 = dma.done.wait [#allocation7], 896  }
 0x4d9   :  { %7963 = vsyncadd [#allocation7], 4294966400 }
 0x4da   :  { %5170 = vsyncpa [#allocation6], 1 }
 0x4db   :  { %5171 = vsyncpa [#allocation9], 1 }
 0x4dc   :  { %5172 = vsyncpa [#allocation7], 1 }
 0x4dd   :  { %5173 = vsyncmov [#allocation4] }
 0x4e0   :  { %s5174_s5 = vpop.sfrf %5173 }
 0x4e1   :  { %p7198_p0 = scmp.ne.s32.totalorder %s5174_s5, 0 }
 0x4e3   :  { %5178 = shalt.err (%p7198_p0)  }
 0x4e4   :  { %5180 = vsyncmov [#allocation4 + $0x1] }
 0x4e7   :  { %s5181_s20 = vpop.sfrf %5180 }
 0x4e8   :  { %p7199_p1 = scmp.ne.s32.totalorder %s5181_s20, 0 }
 0x4ea   :  { %5185 = shalt.err (%p7199_p1)  }

</bundles_post_ra>
